<compile_context>
chip_gen: v7x
topology: tpu7x:2x2x1
jax: 0.10.0
libtpu: 0.0.40
codegen_flags: <defaults>
</compile_context>

<pallas_src>
import random
from functools import partial

import numpy as np
import jax
import jax.numpy as jnp
from jax import lax
from jax.experimental import pallas as pl
from jax.experimental.pallas import tpu as pltpu

_VMEM = pl.BlockSpec(memory_space=pltpu.MemorySpace.VMEM)


# ----------------------------------------------------------------------------
# Kernel 1: fused 2-layer bidirectional GRU  ->  rnn_embeds [B, 2H]
# ----------------------------------------------------------------------------
def _bigru_kernel(x_ref, wih0_ref, whh0_ref, bih0_ref, bhh0_ref,
                  wih1_ref, whh1_ref, bih1_ref, bhh1_ref,
                  out_ref, l0_ref, *, T, B, H):
    H2, H3, H5, H6 = 2 * H, 3 * H, 5 * H, 6 * H

    def run_layer(gi_all, whh, bhh, store):
        # gi_all: [T*B, 6H]  (cols 0:3H fwd gates r|z|n, cols 3H:6H bwd gates)
        # whh   : [2H, 6H] block-diagonal (fwd rows -> cols 0:3H, bwd -> 3H:6H)
        h = jnp.zeros((B, H2), jnp.float32)          # [h_fwd | h_bwd]
        for t in range(T):                           # fully unrolled, static
            tt = T - 1 - t
            # ONE recurrent matmul per step for both directions.
            gh = jnp.dot(h, whh, preferred_element_type=jnp.float32) + bhh
            # forward direction consumes input time t
            gi_f = gi_all[t * B:(t + 1) * B, 0:H3]
            rz_f = jax.nn.sigmoid(gi_f[:, 0:H2] + gh[:, 0:H2])      # r|z fused
            n_f = jnp.tanh(gi_f[:, H2:H3] + rz_f[:, 0:H] * gh[:, H2:H3])
            h_f = (1.0 - rz_f[:, H:H2]) * n_f + rz_f[:, H:H2] * h[:, 0:H]
            # backward direction consumes input time T-1-t
            gi_b = gi_all[tt * B:(tt + 1) * B, H3:H6]
            rz_b = jax.nn.sigmoid(gi_b[:, 0:H2] + gh[:, H3:H5])
            n_b = jnp.tanh(gi_b[:, H2:H3] + rz_b[:, 0:H] * gh[:, H5:H6])
            h_b = (1.0 - rz_b[:, H:H2]) * n_b + rz_b[:, H:H2] * h[:, H:H2]
            h = jnp.concatenate([h_f, h_b], axis=1)
            if store is not None:
                # PyTorch bidirectional layout: fwd output at time t,
                # bwd output at time tt -- written straight into the flat
                # (T*B, 2H) scratch (no 3-D reshapes / flips).
                store[pl.ds(t * B, B), pl.ds(0, H)] = h_f
                store[pl.ds(tt * B, B), pl.ds(H, H)] = h_b
        return h

    # Layer 0: input projection hoisted out of the recurrence (one matmul).
    gi0 = (jnp.dot(x_ref[...], wih0_ref[...], preferred_element_type=jnp.float32)
           + bih0_ref[...])
    run_layer(gi0, whh0_ref[...], bhh0_ref[...], l0_ref)
    # TODO(synk): nn.GRU inter-layer dropout (p=0.5, training mode) skipped (identity).
    gi1 = (jnp.dot(l0_ref[...], wih1_ref[...], preferred_element_type=jnp.float32)
           + bih1_ref[...])
    # rnn_embeds = [fwd hidden at t=T-1 | bwd hidden at t=0] = final fused h.
    out_ref[...] = run_layer(gi1, whh1_ref[...], bhh1_ref[...], None)


def bigru_2layer(x_flat, T, B, gru_params):
    """x_flat: time-major flattened input [T*B, E]; returns [B, 2H]."""
    H = gru_params["l0"]["whh"].shape[1] // 6
    args = [x_flat]
    for layer in ("l0", "l1"):
        p = gru_params[layer]
        args += [p["wih"], p["whh"], p["bih"], p["bhh"]]
    return pl.pallas_call(
        partial(_bigru_kernel, T=T, B=B, H=H),
        out_shape=jax.ShapeDtypeStruct((B, 2 * H), jnp.float32),
        in_specs=[_VMEM] * len(args),
        out_specs=_VMEM,
        scratch_shapes=[pltpu.VMEM((T * B, 2 * H), jnp.float32)],
    )(*args)


# ----------------------------------------------------------------------------
# Kernel 2: fused graph pipeline (enc1 + enc2 + top attention + classifier)
# ----------------------------------------------------------------------------
def _seq_attention(seq_flat, wa, ba, ctx, N, S):
    """Softmax attention over S-slot segments of seq_flat [N*S, D] -> [N, D]."""
    NS = N * S
    A = wa.shape[1]
    att = jnp.tanh(jnp.dot(seq_flat, wa, preferred_element_type=jnp.float32)
                   + ba)                                            # [NS, A]
    logits = jnp.sum(att.reshape(N, S, A) * ctx, axis=-1)           # [N, S]
    m = jnp.max(logits, axis=-1, keepdims=True)
    e = jnp.exp(logits - m)
    w = e / jnp.sum(e, axis=-1, keepdims=True)                      # exact div
    # Weighted segment-sum on the MXU: build the [N, N*S] block-diagonal
    # weight matrix with iota masks (no relayout reshapes), then one matmul.
    rows = lax.broadcasted_iota(jnp.int32, (N, NS), 0)
    cols = lax.broadcasted_iota(jnp.int32, (N, NS), 1)
    wsel = jnp.zeros((N, NS), jnp.float32)
    for j in range(S):
        wsel = wsel + (cols == rows * S + j).astype(jnp.float32) * w[:, j:j + 1]
    return jnp.dot(wsel, seq_flat, preferred_element_type=jnp.float32)  # [N, D]


def _graph_kernel(feat_ref, oh1_ref, inn1_ref, wa1_ref, ba1_ref, ctx1_ref,
                  e1w_ref, oh2_ref, inn2_ref, wa2_ref, ba2_ref, ctx2_ref,
                  e2w_ref, rnn_ref, wat_ref, bat_ref, ctxt_ref, w2_ref,
                  out_ref, *, N1, S1, B, S2):
    # ---- Level 1: enc1 embeddings for every (padded-)unique level-2 node ----
    # Neighbour gather as a one-hot matmul on the MXU (invalid slots = 0 rows).
    seq1 = jnp.dot(oh1_ref[...], feat_ref[...],
                   preferred_element_type=jnp.float32)              # [N1*S1, E]
    wsum1 = _seq_attention(seq1, wa1_ref[...], ba1_ref[...], ctx1_ref[...],
                           N1, S1)                                  # [N1, E]
    # TODO(synk): MeanAggregator F.dropout(p=0.5) skipped (identity).
    feats1 = jnp.maximum(wsum1 * inn1_ref[...], 0.0)
    enc1 = jnp.maximum(
        jnp.dot(feats1, e1w_ref[...], preferred_element_type=jnp.float32), 0.0)

    # ---- Level 2: gather enc1 rows, aggregate, project ----
    seq2 = jnp.dot(oh2_ref[...], enc1, preferred_element_type=jnp.float32)
    wsum2 = _seq_attention(seq2, wa2_ref[...], ba2_ref[...], ctx2_ref[...],
                           B, S2)                                   # [B, D1]
    feats2 = jnp.maximum(wsum2 * inn2_ref[...], 0.0)
    graph = jnp.maximum(
        jnp.dot(feats2, e2w_ref[...], preferred_element_type=jnp.float32), 0.0)

    # ---- Top attention over the (rnn, graph) pair + classifier ----
    rnn = rnn_ref[...]
    wa, ba, ctx = wat_ref[...], bat_ref[...], ctxt_ref[...]
    lr = jnp.sum(jnp.tanh(jnp.dot(rnn, wa, preferred_element_type=jnp.float32)
                          + ba) * ctx, axis=-1, keepdims=True)      # [B, 1]
    lg = jnp.sum(jnp.tanh(jnp.dot(graph, wa, preferred_element_type=jnp.float32)
                          + ba) * ctx, axis=-1, keepdims=True)      # [B, 1]
    m = jnp.maximum(lr, lg)
    er = jnp.exp(lr - m)
    eg = jnp.exp(lg - m)
    inv = 1.0 / (er + eg)
    combined = (er * inv) * rnn + (eg * inv) * graph                # [B, D2]
    out_ref[...] = jnp.dot(combined, w2_ref[...],
                           preferred_element_type=jnp.float32)


def graph_forward(params, oh1, inn1, oh2, inn2, rnn_embeds, *, N1, S1, B, S2):
    args = [params["feat_embedding"], oh1, inn1,
            params["att1"]["wa_t"], params["att1"]["ba"], params["att1"]["ctx"],
            params["enc1_w_t"],
            oh2, inn2,
            params["att2"]["wa_t"], params["att2"]["ba"], params["att2"]["ctx"],
            params["enc2_w_t"],
            rnn_embeds,
            params["att_top"]["wa_t"], params["att_top"]["ba"],
            params["att_top"]["ctx"],
            params["weight2"]]
    C = params["weight2"].shape[1]
    return pl.pallas_call(
        partial(_graph_kernel, N1=N1, S1=S1, B=B, S2=S2),
        out_shape=jax.ShapeDtypeStruct((B, C), jnp.float32),
        in_specs=[_VMEM] * len(args),
        out_specs=_VMEM,
    )(*args)


# ----------------------------------------------------------------------------
# Host glue: neighbour sampling -> one-hot gather matrices (static shapes)
# ----------------------------------------------------------------------------
def build_graph_inputs(nodes, adj_lists, num_sample1, num_sample2, V, rng):
    """Replicates the two MeanAggregator sampling steps on the host and turns
    them into dense one-hot gather matrices + exact 1/num_neigh factors so the
    kernel can do both gathers as MXU matmuls with fully static shapes."""
    B = len(nodes)
    # Level-2 sampling (neighbours of the batch nodes).
    samp2 = []
    for n in nodes:
        nb = adj_lists[int(n)]
        samp2.append(set(rng.sample(sorted(nb), num_sample2))
                     if len(nb) >= num_sample2 else set(nb))
    uniq2_list = sorted(set.union(*samp2))            # nodes enc1 must embed
    uniq2 = {n: i for i, n in enumerate(uniq2_list)}
    N1 = V                                            # padded enc1 row count
    onehot2 = np.zeros((B * num_sample2, N1), np.float32)
    invnn2 = np.zeros((B, 1), np.float32)
    for i, s in enumerate(samp2):
        cols = [uniq2[n] for n in sorted(s)]
        for j, c in enumerate(cols):
            onehot2[i * num_sample2 + j, c] = 1.0
        invnn2[i, 0] = 1.0 / float(len(cols))
    # Level-1 sampling (neighbours of every unique level-2 node); padded rows
    # keep all-zero one-hots (-> zero enc1 rows, never selected by onehot2).
    onehot1 = np.zeros((N1 * num_sample1, V), np.float32)
    invnn1 = np.ones((N1, 1), np.float32)
    for i, node in enumerate(uniq2_list):
        nb = adj_lists[int(node)]
        s = (set(rng.sample(sorted(nb), num_sample1))
             if len(nb) >= num_sample1 else set(nb))
        for j, g in enumerate(sorted(s)):
            onehot1[i * num_sample1 + j, g] = 1.0     # gather by global node id
        invnn1[i, 0] = 1.0 / float(len(s))
    return (jnp.asarray(onehot1), jnp.asarray(invnn1),
            jnp.asarray(onehot2), jnp.asarray(invnn2))


def sequence_graph_att_forward(nodes, seq_input, params, adj_lists, cfg, rng):
    B = len(nodes)
    # Sequence branch: embedding gather + [B,T,E] -> time-major [T*B, E] (XLA glue).
    x = jnp.take(params["seq_embedding"], seq_input, axis=0)        # [B, T, E]
    T, E = x.shape[1], x.shape[2]
    x_flat = jnp.transpose(x, (1, 0, 2)).reshape(T * B, E).astype(jnp.float32)
    rnn_embeds = bigru_2layer(x_flat, T, B, params["gru"])          # [B, 2H]
    # TODO(synk): F.dropout(rnn_embeds, p=0.5) skipped (identity / eval mode).

    # Graph branch + top attention + classifier: single fused pallas_call.
    oh1, inn1, oh2, inn2 = build_graph_inputs(
        nodes, adj_lists, cfg["num_sample1"], cfg["num_sample2"],
        cfg["num_nodes"], rng)
    return graph_forward(params, oh1, inn1, oh2, inn2, rnn_embeds,
                         N1=cfg["num_nodes"], S1=cfg["num_sample1"],
                         B=B, S2=cfg["num_sample2"])


# ----------------------------------------------------------------------------
# Deterministic parameter initialization
# ----------------------------------------------------------------------------
def xavier_uniform(key, shape):
    limit = float(np.sqrt(6.0 / (shape[0] + shape[1])))
    return jax.random.uniform(key, shape, jnp.float32, -limit, limit)


def make_att_params(key, in_dim, att_size):
    k1, k2, k3 = jax.random.split(key, 3)
    w = xavier_uniform(k1, (att_size, in_dim))          # torch Linear [out, in]
    b = jax.random.normal(k2, (att_size,), jnp.float32) * 0.01
    ctx = xavier_uniform(k3, (1, att_size))             # context Linear [1, A]
    return dict(wa_t=jnp.transpose(w), ba=b.reshape(1, att_size), ctx=ctx)


def make_gru_dir_params(key, d_in, h):
    # PyTorch gate order (r | z | n): W_ih [d_in, 3h], W_hh [h, 3h] (pre-transposed).
    k1, k2, k3, k4 = jax.random.split(key, 4)
    w_ih = jax.random.normal(k1, (3 * h, d_in), jnp.float32) * 0.1
    w_hh = jax.random.normal(k2, (3 * h, h), jnp.float32) * 0.1
    b_ih = jax.random.normal(k3, (3 * h,), jnp.float32) * 0.1
    b_hh = jax.random.normal(k4, (3 * h,), jnp.float32) * 0.1
    return dict(wih=jnp.transpose(w_ih), whh=jnp.transpose(w_hh),
                bih=b_ih.reshape(1, 3 * h), bhh=b_hh.reshape(1, 3 * h))


def make_gru_params(keys, E, H):
    """Build both layers with the forward/backward directions fused:
    W_ih [Din, 6H] (fwd cols | bwd cols), block-diagonal W_hh [2H, 6H]."""
    dirs = {"l0f": make_gru_dir_params(keys[0], E, H),
            "l0b": make_gru_dir_params(keys[1], E, H),
            "l1f": make_gru_dir_params(keys[2], 2 * H, H),
            "l1b": make_gru_dir_params(keys[3], 2 * H, H)}

    def fuse(pf, pb, h):
        whh = jnp.zeros((2 * h, 6 * h), jnp.float32)
        whh = whh.at[:h, :3 * h].set(pf["whh"])
        whh = whh.at[h:, 3 * h:].set(pb["whh"])
        return dict(wih=jnp.concatenate([pf["wih"], pb["wih"]], axis=1),
                    whh=whh,
                    bih=jnp.concatenate([pf["bih"], pb["bih"]], axis=1),
                    bhh=jnp.concatenate([pf["bhh"], pb["bhh"]], axis=1))

    return {"l0": fuse(dirs["l0f"], dirs["l0b"], H),
            "l1": fuse(dirs["l1f"], dirs["l1b"], H)}


if __name__ == "__main__":
    key = jax.random.PRNGKey(0)
    rng = random.Random(0)   # deterministic neighbour sampling (host glue)

    # Small config consistent with the module's constraints.
    V, E = 12, 32                     # graph nodes, feature embedding dim
    seq_vocab, T, B = 20, 8, 4        # sequence vocab, seq len, batch (= #nodes)
    enc1_hidden = enc2_hidden = 32
    rnn_hidden = 16                   # 2*rnn_hidden == enc2_hidden (required)
    att_size = 16
    num_classes = 5
    num_sample1, num_sample2 = 4, 3

    # Adjacency lists.
    adj_lists = {i: set() for i in range(V)}
    for i in range(V):
        for d in (1, 2, 5):
            adj_lists[i].add((i + d) % V)
            adj_lists[(i + d) % V].add(i)

    ks = jax.random.split(key, 16)
    params = {
        "feat_embedding": jax.random.normal(ks[0], (V, E), jnp.float32) * 0.1,
        "seq_embedding": jax.random.normal(ks[1], (seq_vocab, E), jnp.float32) * 0.1,
        "gru": make_gru_params([ks[2], ks[3], ks[4], ks[5]], E, rnn_hidden),
        "att1": make_att_params(ks[6], E, att_size),
        "enc1_w_t": jnp.transpose(xavier_uniform(ks[7], (enc1_hidden, E))),
        "att2": make_att_params(ks[8], enc1_hidden, att_size),
        "enc2_w_t": jnp.transpose(xavier_uniform(ks[9], (enc2_hidden, enc1_hidden))),
        "att_top": make_att_params(ks[10], enc2_hidden, att_size),
        # weight1 exists in __init__ but is unused in forward; omitted.
        "weight2": xavier_uniform(ks[11], (enc2_hidden, num_classes)),
    }
    cfg = {"num_sample1": num_sample1, "num_sample2": num_sample2, "num_nodes": V}

    nodes = [0, 1, 2, 3]
    seq_input = jax.random.randint(ks[12], (B, T), 0, seq_vocab)

    scores = sequence_graph_att_forward(nodes, seq_input, params, adj_lists, cfg, rng)
    scores = jax.block_until_ready(scores)
    assert scores.shape == (B, num_classes)
    assert bool(jnp.all(jnp.isfinite(scores)))
    print("KERNEL_OK")
</pallas_src>

<mosaic_0001>
module attributes {stable_mosaic.version = 11 : i64} {
  func.func @_bigru_kernel(%arg0: memref<32x32xf32, #tpu.memory_space<vmem>>, %arg1: memref<32x96xf32, #tpu.memory_space<vmem>>, %arg2: memref<32x96xf32, #tpu.memory_space<vmem>>, %arg3: memref<1x96xf32, #tpu.memory_space<vmem>>, %arg4: memref<1x96xf32, #tpu.memory_space<vmem>>, %arg5: memref<32x96xf32, #tpu.memory_space<vmem>>, %arg6: memref<32x96xf32, #tpu.memory_space<vmem>>, %arg7: memref<1x96xf32, #tpu.memory_space<vmem>>, %arg8: memref<1x96xf32, #tpu.memory_space<vmem>>, %arg9: memref<4x32xf32, #tpu.memory_space<vmem>>, %arg10: memref<32x32xf32, #tpu.memory_space<vmem>>) attributes {dimension_semantics = [], scalar_prefetch = 0 : i64, scratch_operands = 1 : i64, tpu.core_type = #tpu.core_type<tc>} {
    %c0 = arith.constant 0 : index
    %c0_0 = arith.constant 0 : index
    %0 = vector.load %arg0[%c0, %c0_0] : memref<32x32xf32, #tpu.memory_space<vmem>>, vector<32x32xf32>
    %c0_1 = arith.constant 0 : index
    %c0_2 = arith.constant 0 : index
    %1 = vector.load %arg1[%c0_1, %c0_2] : memref<32x96xf32, #tpu.memory_space<vmem>>, vector<32x96xf32>
    %cst = arith.constant dense<0.000000e+00> : vector<32x96xf32>
    %2 = tpu.matmul %0, %1, %cst {dimension_numbers = #tpu.dot_dimension_numbers<[1], [0], [0], [1], [0, 0, 1, 1], [], []>} : vector<32x32xf32>, vector<32x96xf32>, vector<32x96xf32> -> vector<32x96xf32>
    %c0_3 = arith.constant 0 : index
    %c0_4 = arith.constant 0 : index
    %3 = vector.load %arg3[%c0_3, %c0_4] : memref<1x96xf32, #tpu.memory_space<vmem>>, vector<1x96xf32>
    %4 = vector.broadcast %3 : vector<1x96xf32> to vector<32x96xf32>
    %5 = arith.addf %2, %4 : vector<32x96xf32>
    %c0_5 = arith.constant 0 : index
    %c0_6 = arith.constant 0 : index
    %6 = vector.load %arg2[%c0_5, %c0_6] : memref<32x96xf32, #tpu.memory_space<vmem>>, vector<32x96xf32>
    %c0_7 = arith.constant 0 : index
    %c0_8 = arith.constant 0 : index
    %7 = vector.load %arg4[%c0_7, %c0_8] : memref<1x96xf32, #tpu.memory_space<vmem>>, vector<1x96xf32>
    %cst_9 = arith.constant 0.000000e+00 : f32
    %8 = vector.broadcast %cst_9 : f32 to vector<4x32xf32>
    %cst_10 = arith.constant dense<0.000000e+00> : vector<4x96xf32>
    %9 = tpu.matmul %8, %6, %cst_10 {dimension_numbers = #tpu.dot_dimension_numbers<[1], [0], [0], [1], [0, 0, 1, 1], [], []>} : vector<4x32xf32>, vector<32x96xf32>, vector<4x96xf32> -> vector<4x96xf32>
    %10 = vector.broadcast %7 : vector<1x96xf32> to vector<4x96xf32>
    %11 = arith.addf %9, %10 : vector<4x96xf32>
    %12 = vector.extract_strided_slice %5 {offsets = [0, 0], sizes = [4, 48], strides = [1, 1]} : vector<32x96xf32> to vector<4x48xf32>
    %13 = vector.extract_strided_slice %12 {offsets = [0, 0], sizes = [4, 32], strides = [1, 1]} : vector<4x48xf32> to vector<4x32xf32>
    %14 = vector.extract_strided_slice %11 {offsets = [0, 0], sizes = [4, 32], strides = [1, 1]} : vector<4x96xf32> to vector<4x32xf32>
    %15 = arith.addf %13, %14 : vector<4x32xf32>
    %16 = arith.negf %15 : vector<4x32xf32>
    %17 = math.exp %16 : vector<4x32xf32>
    %cst_11 = arith.constant 1.000000e+00 : f32
    %18 = vector.broadcast %cst_11 : f32 to vector<4x32xf32>
    %19 = arith.addf %18, %17 : vector<4x32xf32>
    %20 = arith.divf %18, %19 : vector<4x32xf32>
    %21 = vector.extract_strided_slice %12 {offsets = [0, 32], sizes = [4, 16], strides = [1, 1]} : vector<4x48xf32> to vector<4x16xf32>
    %22 = vector.extract_strided_slice %20 {offsets = [0, 0], sizes = [4, 16], strides = [1, 1]} : vector<4x32xf32> to vector<4x16xf32>
    %23 = vector.extract_strided_slice %11 {offsets = [0, 32], sizes = [4, 16], strides = [1, 1]} : vector<4x96xf32> to vector<4x16xf32>
    %24 = arith.mulf %22, %23 : vector<4x16xf32>
    %25 = arith.addf %21, %24 : vector<4x16xf32>
    %26 = math.tanh %25 : vector<4x16xf32>
    %27 = vector.extract_strided_slice %20 {offsets = [0, 16], sizes = [4, 16], strides = [1, 1]} : vector<4x32xf32> to vector<4x16xf32>
    %cst_12 = arith.constant 1.000000e+00 : f32
    %28 = vector.broadcast %cst_12 : f32 to vector<4x16xf32>
    %29 = arith.subf %28, %27 : vector<4x16xf32>
    %30 = arith.mulf %29, %26 : vector<4x16xf32>
    %31 = vector.extract_strided_slice %20 {offsets = [0, 16], sizes = [4, 16], strides = [1, 1]} : vector<4x32xf32> to vector<4x16xf32>
    %32 = vector.extract_strided_slice %8 {offsets = [0, 0], sizes = [4, 16], strides = [1, 1]} : vector<4x32xf32> to vector<4x16xf32>
    %33 = arith.mulf %31, %32 : vector<4x16xf32>
    %34 = arith.addf %30, %33 : vector<4x16xf32>
    %35 = vector.extract_strided_slice %5 {offsets = [28, 48], sizes = [4, 48], strides = [1, 1]} : vector<32x96xf32> to vector<4x48xf32>
    %36 = vector.extract_strided_slice %35 {offsets = [0, 0], sizes = [4, 32], strides = [1, 1]} : vector<4x48xf32> to vector<4x32xf32>
    %37 = vector.extract_strided_slice %11 {offsets = [0, 48], sizes = [4, 32], strides = [1, 1]} : vector<4x96xf32> to vector<4x32xf32>
    %38 = arith.addf %36, %37 : vector<4x32xf32>
    %39 = arith.negf %38 : vector<4x32xf32>
    %40 = math.exp %39 : vector<4x32xf32>
    %cst_13 = arith.constant 1.000000e+00 : f32
    %41 = vector.broadcast %cst_13 : f32 to vector<4x32xf32>
    %42 = arith.addf %41, %40 : vector<4x32xf32>
    %43 = arith.divf %41, %42 : vector<4x32xf32>
    %44 = vector.extract_strided_slice %35 {offsets = [0, 32], sizes = [4, 16], strides = [1, 1]} : vector<4x48xf32> to vector<4x16xf32>
    %45 = vector.extract_strided_slice %43 {offsets = [0, 0], sizes = [4, 16], strides = [1, 1]} : vector<4x32xf32> to vector<4x16xf32>
    %46 = vector.extract_strided_slice %11 {offsets = [0, 80], sizes = [4, 16], strides = [1, 1]} : vector<4x96xf32> to vector<4x16xf32>
    %47 = arith.mulf %45, %46 : vector<4x16xf32>
    %48 = arith.addf %44, %47 : vector<4x16xf32>
    %49 = math.tanh %48 : vector<4x16xf32>
    %50 = vector.extract_strided_slice %43 {offsets = [0, 16], sizes = [4, 16], strides = [1, 1]} : vector<4x32xf32> to vector<4x16xf32>
    %cst_14 = arith.constant 1.000000e+00 : f32
    %51 = vector.broadcast %cst_14 : f32 to vector<4x16xf32>
    %52 = arith.subf %51, %50 : vector<4x16xf32>
    %53 = arith.mulf %52, %49 : vector<4x16xf32>
    %54 = vector.extract_strided_slice %43 {offsets = [0, 16], sizes = [4, 16], strides = [1, 1]} : vector<4x32xf32> to vector<4x16xf32>
    %55 = vector.extract_strided_slice %8 {offsets = [0, 16], sizes = [4, 16], strides = [1, 1]} : vector<4x32xf32> to vector<4x16xf32>
    %56 = arith.mulf %54, %55 : vector<4x16xf32>
    %57 = arith.addf %53, %56 : vector<4x16xf32>
    %58 = tpu.concatenate %34, %57 in 1 : vector<4x16xf32>, vector<4x16xf32> -> vector<4x32xf32>
    %c0_15 = arith.constant 0 : index
    %c0_16 = arith.constant 0 : index
    %59 = vector.load %arg10[%c0_15, %c0_16] : memref<32x32xf32, #tpu.memory_space<vmem>>, vector<4x16xf32>
    tpu.vector_store %arg10[%c0_15, %c0_16], %34 {strides = array<i32>} : memref<32x32xf32, #tpu.memory_space<vmem>>, vector<4x16xf32>,
    %c28 = arith.constant 28 : index
    %c16 = arith.constant 16 : index
    %60 = vector.load %arg10[%c28, %c16] : memref<32x32xf32, #tpu.memory_space<vmem>>, vector<4x16xf32>
    tpu.vector_store %arg10[%c28, %c16], %57 {strides = array<i32>} : memref<32x32xf32, #tpu.memory_space<vmem>>, vector<4x16xf32>,
    %cst_17 = arith.constant dense<0.000000e+00> : vector<4x96xf32>
    %61 = tpu.matmul %58, %6, %cst_17 {dimension_numbers = #tpu.dot_dimension_numbers<[1], [0], [0], [1], [0, 0, 1, 1], [], []>} : vector<4x32xf32>, vector<32x96xf32>, vector<4x96xf32> -> vector<4x96xf32>
    %62 = vector.broadcast %7 : vector<1x96xf32> to vector<4x96xf32>
    %63 = arith.addf %61, %62 : vector<4x96xf32>
    %64 = vector.extract_strided_slice %5 {offsets = [4, 0], sizes = [4, 48], strides = [1, 1]} : vector<32x96xf32> to vector<4x48xf32>
    %65 = vector.extract_strided_slice %64 {offsets = [0, 0], sizes = [4, 32], strides = [1, 1]} : vector<4x48xf32> to vector<4x32xf32>
    %66 = vector.extract_strided_slice %63 {offsets = [0, 0], sizes = [4, 32], strides = [1, 1]} : vector<4x96xf32> to vector<4x32xf32>
    %67 = arith.addf %65, %66 : vector<4x32xf32>
    %68 = arith.negf %67 : vector<4x32xf32>
    %69 = math.exp %68 : vector<4x32xf32>
    %cst_18 = arith.constant 1.000000e+00 : f32
    %70 = vector.broadcast %cst_18 : f32 to vector<4x32xf32>
    %71 = arith.addf %70, %69 : vector<4x32xf32>
    %72 = arith.divf %70, %71 : vector<4x32xf32>
    %73 = vector.extract_strided_slice %64 {offsets = [0, 32], sizes = [4, 16], strides = [1, 1]} : vector<4x48xf32> to vector<4x16xf32>
    %74 = vector.extract_strided_slice %72 {offsets = [0, 0], sizes = [4, 16], strides = [1, 1]} : vector<4x32xf32> to vector<4x16xf32>
    %75 = vector.extract_strided_slice %63 {offsets = [0, 32], sizes = [4, 16], strides = [1, 1]} : vector<4x96xf32> to vector<4x16xf32>
    %76 = arith.mulf %74, %75 : vector<4x16xf32>
    %77 = arith.addf %73, %76 : vector<4x16xf32>
    %78 = math.tanh %77 : vector<4x16xf32>
    %79 = vector.extract_strided_slice %72 {offsets = [0, 16], sizes = [4, 16], strides = [1, 1]} : vector<4x32xf32> to vector<4x16xf32>
    %cst_19 = arith.constant 1.000000e+00 : f32
    %80 = vector.broadcast %cst_19 : f32 to vector<4x16xf32>
    %81 = arith.subf %80, %79 : vector<4x16xf32>
    %82 = arith.mulf %81, %78 : vector<4x16xf32>
    %83 = vector.extract_strided_slice %72 {offsets = [0, 16], sizes = [4, 16], strides = [1, 1]} : vector<4x32xf32> to vector<4x16xf32>
    %84 = vector.extract_strided_slice %58 {offsets = [0, 0], sizes = [4, 16], strides = [1, 1]} : vector<4x32xf32> to vector<4x16xf32>
    %85 = arith.mulf %83, %84 : vector<4x16xf32>
    %86 = arith.addf %82, %85 : vector<4x16xf32>
    %87 = vector.extract_strided_slice %5 {offsets = [24, 48], sizes = [4, 48], strides = [1, 1]} : vector<32x96xf32> to vector<4x48xf32>
    %88 = vector.extract_strided_slice %87 {offsets = [0, 0], sizes = [4, 32], strides = [1, 1]} : vector<4x48xf32> to vector<4x32xf32>
    %89 = vector.extract_strided_slice %63 {offsets = [0, 48], sizes = [4, 32], strides = [1, 1]} : vector<4x96xf32> to vector<4x32xf32>
    %90 = arith.addf %88, %89 : vector<4x32xf32>
    %91 = arith.negf %90 : vector<4x32xf32>
    %92 = math.exp %91 : vector<4x32xf32>
    %cst_20 = arith.constant 1.000000e+00 : f32
    %93 = vector.broadcast %cst_20 : f32 to vector<4x32xf32>
    %94 = arith.addf %93, %92 : vector<4x32xf32>
    %95 = arith.divf %93, %94 : vector<4x32xf32>
    %96 = vector.extract_strided_slice %87 {offsets = [0, 32], sizes = [4, 16], strides = [1, 1]} : vector<4x48xf32> to vector<4x16xf32>
    %97 = vector.extract_strided_slice %95 {offsets = [0, 0], sizes = [4, 16], strides = [1, 1]} : vector<4x32xf32> to vector<4x16xf32>
    %98 = vector.extract_strided_slice %63 {offsets = [0, 80], sizes = [4, 16], strides = [1, 1]} : vector<4x96xf32> to vector<4x16xf32>
    %99 = arith.mulf %97, %98 : vector<4x16xf32>
    %100 = arith.addf %96, %99 : vector<4x16xf32>
    %101 = math.tanh %100 : vector<4x16xf32>
    %102 = vector.extract_strided_slice %95 {offsets = [0, 16], sizes = [4, 16], strides = [1, 1]} : vector<4x32xf32> to vector<4x16xf32>
    %cst_21 = arith.constant 1.000000e+00 : f32
    %103 = vector.broadcast %cst_21 : f32 to vector<4x16xf32>
    %104 = arith.subf %103, %102 : vector<4x16xf32>
    %105 = arith.mulf %104, %101 : vector<4x16xf32>
    %106 = vector.extract_strided_slice %95 {offsets = [0, 16], sizes = [4, 16], strides = [1, 1]} : vector<4x32xf32> to vector<4x16xf32>
    %107 = vector.extract_strided_slice %58 {offsets = [0, 16], sizes = [4, 16], strides = [1, 1]} : vector<4x32xf32> to vector<4x16xf32>
    %108 = arith.mulf %106, %107 : vector<4x16xf32>
    %109 = arith.addf %105, %108 : vector<4x16xf32>
    %110 = tpu.concatenate %86, %109 in 1 : vector<4x16xf32>, vector<4x16xf32> -> vector<4x32xf32>
    %c4 = arith.constant 4 : index
    %c0_22 = arith.constant 0 : index
    %111 = vector.load %arg10[%c4, %c0_22] : memref<32x32xf32, #tpu.memory_space<vmem>>, vector<4x16xf32>
    tpu.vector_store %arg10[%c4, %c0_22], %86 {strides = array<i32>} : memref<32x32xf32, #tpu.memory_space<vmem>>, vector<4x16xf32>,
    %c24 = arith.constant 24 : index
    %c16_23 = arith.constant 16 : index
    %112 = vector.load %arg10[%c24, %c16_23] : memref<32x32xf32, #tpu.memory_space<vmem>>, vector<4x16xf32>
    tpu.vector_store %arg10[%c24, %c16_23], %109 {strides = array<i32>} : memref<32x32xf32, #tpu.memory_space<vmem>>, vector<4x16xf32>,
    %cst_24 = arith.constant dense<0.000000e+00> : vector<4x96xf32>
    %113 = tpu.matmul %110, %6, %cst_24 {dimension_numbers = #tpu.dot_dimension_numbers<[1], [0], [0], [1], [0, 0, 1, 1], [], []>} : vector<4x32xf32>, vector<32x96xf32>, vector<4x96xf32> -> vector<4x96xf32>
    %114 = vector.broadcast %7 : vector<1x96xf32> to vector<4x96xf32>
    %115 = arith.addf %113, %114 : vector<4x96xf32>
    %116 = vector.extract_strided_slice %5 {offsets = [8, 0], sizes = [4, 48], strides = [1, 1]} : vector<32x96xf32> to vector<4x48xf32>
    %117 = vector.extract_strided_slice %116 {offsets = [0, 0], sizes = [4, 32], strides = [1, 1]} : vector<4x48xf32> to vector<4x32xf32>
    %118 = vector.extract_strided_slice %115 {offsets = [0, 0], sizes = [4, 32], strides = [1, 1]} : vector<4x96xf32> to vector<4x32xf32>
    %119 = arith.addf %117, %118 : vector<4x32xf32>
    %120 = arith.negf %119 : vector<4x32xf32>
    %121 = math.exp %120 : vector<4x32xf32>
    %cst_25 = arith.constant 1.000000e+00 : f32
    %122 = vector.broadcast %cst_25 : f32 to vector<4x32xf32>
    %123 = arith.addf %122, %121 : vector<4x32xf32>
    %124 = arith.divf %122, %123 : vector<4x32xf32>
    %125 = vector.extract_strided_slice %116 {offsets = [0, 32], sizes = [4, 16], strides = [1, 1]} : vector<4x48xf32> to vector<4x16xf32>
    %126 = vector.extract_strided_slice %124 {offsets = [0, 0], sizes = [4, 16], strides = [1, 1]} : vector<4x32xf32> to vector<4x16xf32>
    %127 = vector.extract_strided_slice %115 {offsets = [0, 32], sizes = [4, 16], strides = [1, 1]} : vector<4x96xf32> to vector<4x16xf32>
    %128 = arith.mulf %126, %127 : vector<4x16xf32>
    %129 = arith.addf %125, %128 : vector<4x16xf32>
    %130 = math.tanh %129 : vector<4x16xf32>
    %131 = vector.extract_strided_slice %124 {offsets = [0, 16], sizes = [4, 16], strides = [1, 1]} : vector<4x32xf32> to vector<4x16xf32>
    %cst_26 = arith.constant 1.000000e+00 : f32
    %132 = vector.broadcast %cst_26 : f32 to vector<4x16xf32>
    %133 = arith.subf %132, %131 : vector<4x16xf32>
    %134 = arith.mulf %133, %130 : vector<4x16xf32>
    %135 = vector.extract_strided_slice %124 {offsets = [0, 16], sizes = [4, 16], strides = [1, 1]} : vector<4x32xf32> to vector<4x16xf32>
    %136 = vector.extract_strided_slice %110 {offsets = [0, 0], sizes = [4, 16], strides = [1, 1]} : vector<4x32xf32> to vector<4x16xf32>
    %137 = arith.mulf %135, %136 : vector<4x16xf32>
    %138 = arith.addf %134, %137 : vector<4x16xf32>
    %139 = vector.extract_strided_slice %5 {offsets = [20, 48], sizes = [4, 48], strides = [1, 1]} : vector<32x96xf32> to vector<4x48xf32>
    %140 = vector.extract_strided_slice %139 {offsets = [0, 0], sizes = [4, 32], strides = [1, 1]} : vector<4x48xf32> to vector<4x32xf32>
    %141 = vector.extract_strided_slice %115 {offsets = [0, 48], sizes = [4, 32], strides = [1, 1]} : vector<4x96xf32> to vector<4x32xf32>
    %142 = arith.addf %140, %141 : vector<4x32xf32>
    %143 = arith.negf %142 : vector<4x32xf32>
    %144 = math.exp %143 : vector<4x32xf32>
    %cst_27 = arith.constant 1.000000e+00 : f32
    %145 = vector.broadcast %cst_27 : f32 to vector<4x32xf32>
    %146 = arith.addf %145, %144 : vector<4x32xf32>
    %147 = arith.divf %145, %146 : vector<4x32xf32>
    %148 = vector.extract_strided_slice %139 {offsets = [0, 32], sizes = [4, 16], strides = [1, 1]} : vector<4x48xf32> to vector<4x16xf32>
    %149 = vector.extract_strided_slice %147 {offsets = [0, 0], sizes = [4, 16], strides = [1, 1]} : vector<4x32xf32> to vector<4x16xf32>
    %150 = vector.extract_strided_slice %115 {offsets = [0, 80], sizes = [4, 16], strides = [1, 1]} : vector<4x96xf32> to vector<4x16xf32>
    %151 = arith.mulf %149, %150 : vector<4x16xf32>
    %152 = arith.addf %148, %151 : vector<4x16xf32>
    %153 = math.tanh %152 : vector<4x16xf32>
    %154 = vector.extract_strided_slice %147 {offsets = [0, 16], sizes = [4, 16], strides = [1, 1]} : vector<4x32xf32> to vector<4x16xf32>
    %cst_28 = arith.constant 1.000000e+00 : f32
    %155 = vector.broadcast %cst_28 : f32 to vector<4x16xf32>
    %156 = arith.subf %155, %154 : vector<4x16xf32>
    %157 = arith.mulf %156, %153 : vector<4x16xf32>
    %158 = vector.extract_strided_slice %147 {offsets = [0, 16], sizes = [4, 16], strides = [1, 1]} : vector<4x32xf32> to vector<4x16xf32>
    %159 = vector.extract_strided_slice %110 {offsets = [0, 16], sizes = [4, 16], strides = [1, 1]} : vector<4x32xf32> to vector<4x16xf32>
    %160 = arith.mulf %158, %159 : vector<4x16xf32>
    %161 = arith.addf %157, %160 : vector<4x16xf32>
    %162 = tpu.concatenate %138, %161 in 1 : vector<4x16xf32>, vector<4x16xf32> -> vector<4x32xf32>
    %c8 = arith.constant 8 : index
    %c0_29 = arith.constant 0 : index
    %163 = vector.load %arg10[%c8, %c0_29] : memref<32x32xf32, #tpu.memory_space<vmem>>, vector<4x16xf32>
    tpu.vector_store %arg10[%c8, %c0_29], %138 {strides = array<i32>} : memref<32x32xf32, #tpu.memory_space<vmem>>, vector<4x16xf32>,
    %c20 = arith.constant 20 : index
    %c16_30 = arith.constant 16 : index
    %164 = vector.load %arg10[%c20, %c16_30] : memref<32x32xf32, #tpu.memory_space<vmem>>, vector<4x16xf32>
    tpu.vector_store %arg10[%c20, %c16_30], %161 {strides = array<i32>} : memref<32x32xf32, #tpu.memory_space<vmem>>, vector<4x16xf32>,
    %cst_31 = arith.constant dense<0.000000e+00> : vector<4x96xf32>
    %165 = tpu.matmul %162, %6, %cst_31 {dimension_numbers = #tpu.dot_dimension_numbers<[1], [0], [0], [1], [0, 0, 1, 1], [], []>} : vector<4x32xf32>, vector<32x96xf32>, vector<4x96xf32> -> vector<4x96xf32>
    %166 = vector.broadcast %7 : vector<1x96xf32> to vector<4x96xf32>
    %167 = arith.addf %165, %166 : vector<4x96xf32>
    %168 = vector.extract_strided_slice %5 {offsets = [12, 0], sizes = [4, 48], strides = [1, 1]} : vector<32x96xf32> to vector<4x48xf32>
    %169 = vector.extract_strided_slice %168 {offsets = [0, 0], sizes = [4, 32], strides = [1, 1]} : vector<4x48xf32> to vector<4x32xf32>
    %170 = vector.extract_strided_slice %167 {offsets = [0, 0], sizes = [4, 32], strides = [1, 1]} : vector<4x96xf32> to vector<4x32xf32>
    %171 = arith.addf %169, %170 : vector<4x32xf32>
    %172 = arith.negf %171 : vector<4x32xf32>
    %173 = math.exp %172 : vector<4x32xf32>
    %cst_32 = arith.constant 1.000000e+00 : f32
    %174 = vector.broadcast %cst_32 : f32 to vector<4x32xf32>
    %175 = arith.addf %174, %173 : vector<4x32xf32>
    %176 = arith.divf %174, %175 : vector<4x32xf32>
    %177 = vector.extract_strided_slice %168 {offsets = [0, 32], sizes = [4, 16], strides = [1, 1]} : vector<4x48xf32> to vector<4x16xf32>
    %178 = vector.extract_strided_slice %176 {offsets = [0, 0], sizes = [4, 16], strides = [1, 1]} : vector<4x32xf32> to vector<4x16xf32>
    %179 = vector.extract_strided_slice %167 {offsets = [0, 32], sizes = [4, 16], strides = [1, 1]} : vector<4x96xf32> to vector<4x16xf32>
    %180 = arith.mulf %178, %179 : vector<4x16xf32>
    %181 = arith.addf %177, %180 : vector<4x16xf32>
    %182 = math.tanh %181 : vector<4x16xf32>
    %183 = vector.extract_strided_slice %176 {offsets = [0, 16], sizes = [4, 16], strides = [1, 1]} : vector<4x32xf32> to vector<4x16xf32>
    %cst_33 = arith.constant 1.000000e+00 : f32
    %184 = vector.broadcast %cst_33 : f32 to vector<4x16xf32>
    %185 = arith.subf %184, %183 : vector<4x16xf32>
    %186 = arith.mulf %185, %182 : vector<4x16xf32>
    %187 = vector.extract_strided_slice %176 {offsets = [0, 16], sizes = [4, 16], strides = [1, 1]} : vector<4x32xf32> to vector<4x16xf32>
    %188 = vector.extract_strided_slice %162 {offsets = [0, 0], sizes = [4, 16], strides = [1, 1]} : vector<4x32xf32> to vector<4x16xf32>
    %189 = arith.mulf %187, %188 : vector<4x16xf32>
    %190 = arith.addf %186, %189 : vector<4x16xf32>
    %191 = vector.extract_strided_slice %5 {offsets = [16, 48], sizes = [4, 48], strides = [1, 1]} : vector<32x96xf32> to vector<4x48xf32>
    %192 = vector.extract_strided_slice %191 {offsets = [0, 0], sizes = [4, 32], strides = [1, 1]} : vector<4x48xf32> to vector<4x32xf32>
    %193 = vector.extract_strided_slice %167 {offsets = [0, 48], sizes = [4, 32], strides = [1, 1]} : vector<4x96xf32> to vector<4x32xf32>
    %194 = arith.addf %192, %193 : vector<4x32xf32>
    %195 = arith.negf %194 : vector<4x32xf32>
    %196 = math.exp %195 : vector<4x32xf32>
    %cst_34 = arith.constant 1.000000e+00 : f32
    %197 = vector.broadcast %cst_34 : f32 to vector<4x32xf32>
    %198 = arith.addf %197, %196 : vector<4x32xf32>
    %199 = arith.divf %197, %198 : vector<4x32xf32>
    %200 = vector.extract_strided_slice %191 {offsets = [0, 32], sizes = [4, 16], strides = [1, 1]} : vector<4x48xf32> to vector<4x16xf32>
    %201 = vector.extract_strided_slice %199 {offsets = [0, 0], sizes = [4, 16], strides = [1, 1]} : vector<4x32xf32> to vector<4x16xf32>
    %202 = vector.extract_strided_slice %167 {offsets = [0, 80], sizes = [4, 16], strides = [1, 1]} : vector<4x96xf32> to vector<4x16xf32>
    %203 = arith.mulf %201, %202 : vector<4x16xf32>
    %204 = arith.addf %200, %203 : vector<4x16xf32>
    %205 = math.tanh %204 : vector<4x16xf32>
    %206 = vector.extract_strided_slice %199 {offsets = [0, 16], sizes = [4, 16], strides = [1, 1]} : vector<4x32xf32> to vector<4x16xf32>
    %cst_35 = arith.constant 1.000000e+00 : f32
    %207 = vector.broadcast %cst_35 : f32 to vector<4x16xf32>
    %208 = arith.subf %207, %206 : vector<4x16xf32>
    %209 = arith.mulf %208, %205 : vector<4x16xf32>
    %210 = vector.extract_strided_slice %199 {offsets = [0, 16], sizes = [4, 16], strides = [1, 1]} : vector<4x32xf32> to vector<4x16xf32>
    %211 = vector.extract_strided_slice %162 {offsets = [0, 16], sizes = [4, 16], strides = [1, 1]} : vector<4x32xf32> to vector<4x16xf32>
    %212 = arith.mulf %210, %211 : vector<4x16xf32>
    %213 = arith.addf %209, %212 : vector<4x16xf32>
    %214 = tpu.concatenate %190, %213 in 1 : vector<4x16xf32>, vector<4x16xf32> -> vector<4x32xf32>
    %c12 = arith.constant 12 : index
    %c0_36 = arith.constant 0 : index
    %215 = vector.load %arg10[%c12, %c0_36] : memref<32x32xf32, #tpu.memory_space<vmem>>, vector<4x16xf32>
    tpu.vector_store %arg10[%c12, %c0_36], %190 {strides = array<i32>} : memref<32x32xf32, #tpu.memory_space<vmem>>, vector<4x16xf32>,
    %c16_37 = arith.constant 16 : index
    %c16_38 = arith.constant 16 : index
    %216 = vector.load %arg10[%c16_37, %c16_38] : memref<32x32xf32, #tpu.memory_space<vmem>>, vector<4x16xf32>
    tpu.vector_store %arg10[%c16_37, %c16_38], %213 {strides = array<i32>} : memref<32x32xf32, #tpu.memory_space<vmem>>, vector<4x16xf32>,
    %cst_39 = arith.constant dense<0.000000e+00> : vector<4x96xf32>
    %217 = tpu.matmul %214, %6, %cst_39 {dimension_numbers = #tpu.dot_dimension_numbers<[1], [0], [0], [1], [0, 0, 1, 1], [], []>} : vector<4x32xf32>, vector<32x96xf32>, vector<4x96xf32> -> vector<4x96xf32>
    %218 = vector.broadcast %7 : vector<1x96xf32> to vector<4x96xf32>
    %219 = arith.addf %217, %218 : vector<4x96xf32>
    %220 = vector.extract_strided_slice %5 {offsets = [16, 0], sizes = [4, 48], strides = [1, 1]} : vector<32x96xf32> to vector<4x48xf32>
    %221 = vector.extract_strided_slice %220 {offsets = [0, 0], sizes = [4, 32], strides = [1, 1]} : vector<4x48xf32> to vector<4x32xf32>
    %222 = vector.extract_strided_slice %219 {offsets = [0, 0], sizes = [4, 32], strides = [1, 1]} : vector<4x96xf32> to vector<4x32xf32>
    %223 = arith.addf %221, %222 : vector<4x32xf32>
    %224 = arith.negf %223 : vector<4x32xf32>
    %225 = math.exp %224 : vector<4x32xf32>
    %cst_40 = arith.constant 1.000000e+00 : f32
    %226 = vector.broadcast %cst_40 : f32 to vector<4x32xf32>
    %227 = arith.addf %226, %225 : vector<4x32xf32>
    %228 = arith.divf %226, %227 : vector<4x32xf32>
    %229 = vector.extract_strided_slice %220 {offsets = [0, 32], sizes = [4, 16], strides = [1, 1]} : vector<4x48xf32> to vector<4x16xf32>
    %230 = vector.extract_strided_slice %228 {offsets = [0, 0], sizes = [4, 16], strides = [1, 1]} : vector<4x32xf32> to vector<4x16xf32>
    %231 = vector.extract_strided_slice %219 {offsets = [0, 32], sizes = [4, 16], strides = [1, 1]} : vector<4x96xf32> to vector<4x16xf32>
    %232 = arith.mulf %230, %231 : vector<4x16xf32>
    %233 = arith.addf %229, %232 : vector<4x16xf32>
    %234 = math.tanh %233 : vector<4x16xf32>
    %235 = vector.extract_strided_slice %228 {offsets = [0, 16], sizes = [4, 16], strides = [1, 1]} : vector<4x32xf32> to vector<4x16xf32>
    %cst_41 = arith.constant 1.000000e+00 : f32
    %236 = vector.broadcast %cst_41 : f32 to vector<4x16xf32>
    %237 = arith.subf %236, %235 : vector<4x16xf32>
    %238 = arith.mulf %237, %234 : vector<4x16xf32>
    %239 = vector.extract_strided_slice %228 {offsets = [0, 16], sizes = [4, 16], strides = [1, 1]} : vector<4x32xf32> to vector<4x16xf32>
    %240 = vector.extract_strided_slice %214 {offsets = [0, 0], sizes = [4, 16], strides = [1, 1]} : vector<4x32xf32> to vector<4x16xf32>
    %241 = arith.mulf %239, %240 : vector<4x16xf32>
    %242 = arith.addf %238, %241 : vector<4x16xf32>
    %243 = vector.extract_strided_slice %5 {offsets = [12, 48], sizes = [4, 48], strides = [1, 1]} : vector<32x96xf32> to vector<4x48xf32>
    %244 = vector.extract_strided_slice %243 {offsets = [0, 0], sizes = [4, 32], strides = [1, 1]} : vector<4x48xf32> to vector<4x32xf32>
    %245 = vector.extract_strided_slice %219 {offsets = [0, 48], sizes = [4, 32], strides = [1, 1]} : vector<4x96xf32> to vector<4x32xf32>
    %246 = arith.addf %244, %245 : vector<4x32xf32>
    %247 = arith.negf %246 : vector<4x32xf32>
    %248 = math.exp %247 : vector<4x32xf32>
    %cst_42 = arith.constant 1.000000e+00 : f32
    %249 = vector.broadcast %cst_42 : f32 to vector<4x32xf32>
    %250 = arith.addf %249, %248 : vector<4x32xf32>
    %251 = arith.divf %249, %250 : vector<4x32xf32>
    %252 = vector.extract_strided_slice %243 {offsets = [0, 32], sizes = [4, 16], strides = [1, 1]} : vector<4x48xf32> to vector<4x16xf32>
    %253 = vector.extract_strided_slice %251 {offsets = [0, 0], sizes = [4, 16], strides = [1, 1]} : vector<4x32xf32> to vector<4x16xf32>
    %254 = vector.extract_strided_slice %219 {offsets = [0, 80], sizes = [4, 16], strides = [1, 1]} : vector<4x96xf32> to vector<4x16xf32>
    %255 = arith.mulf %253, %254 : vector<4x16xf32>
    %256 = arith.addf %252, %255 : vector<4x16xf32>
    %257 = math.tanh %256 : vector<4x16xf32>
    %258 = vector.extract_strided_slice %251 {offsets = [0, 16], sizes = [4, 16], strides = [1, 1]} : vector<4x32xf32> to vector<4x16xf32>
    %cst_43 = arith.constant 1.000000e+00 : f32
    %259 = vector.broadcast %cst_43 : f32 to vector<4x16xf32>
    %260 = arith.subf %259, %258 : vector<4x16xf32>
    %261 = arith.mulf %260, %257 : vector<4x16xf32>
    %262 = vector.extract_strided_slice %251 {offsets = [0, 16], sizes = [4, 16], strides = [1, 1]} : vector<4x32xf32> to vector<4x16xf32>
    %263 = vector.extract_strided_slice %214 {offsets = [0, 16], sizes = [4, 16], strides = [1, 1]} : vector<4x32xf32> to vector<4x16xf32>
    %264 = arith.mulf %262, %263 : vector<4x16xf32>
    %265 = arith.addf %261, %264 : vector<4x16xf32>
    %266 = tpu.concatenate %242, %265 in 1 : vector<4x16xf32>, vector<4x16xf32> -> vector<4x32xf32>
    %c16_44 = arith.constant 16 : index
    %c0_45 = arith.constant 0 : index
    %267 = vector.load %arg10[%c16_44, %c0_45] : memref<32x32xf32, #tpu.memory_space<vmem>>, vector<4x16xf32>
    tpu.vector_store %arg10[%c16_44, %c0_45], %242 {strides = array<i32>} : memref<32x32xf32, #tpu.memory_space<vmem>>, vector<4x16xf32>,
    %c12_46 = arith.constant 12 : index
    %c16_47 = arith.constant 16 : index
    %268 = vector.load %arg10[%c12_46, %c16_47] : memref<32x32xf32, #tpu.memory_space<vmem>>, vector<4x16xf32>
    tpu.vector_store %arg10[%c12_46, %c16_47], %265 {strides = array<i32>} : memref<32x32xf32, #tpu.memory_space<vmem>>, vector<4x16xf32>,
    %cst_48 = arith.constant dense<0.000000e+00> : vector<4x96xf32>
    %269 = tpu.matmul %266, %6, %cst_48 {dimension_numbers = #tpu.dot_dimension_numbers<[1], [0], [0], [1], [0, 0, 1, 1], [], []>} : vector<4x32xf32>, vector<32x96xf32>, vector<4x96xf32> -> vector<4x96xf32>
    %270 = vector.broadcast %7 : vector<1x96xf32> to vector<4x96xf32>
    %271 = arith.addf %269, %270 : vector<4x96xf32>
    %272 = vector.extract_strided_slice %5 {offsets = [20, 0], sizes = [4, 48], strides = [1, 1]} : vector<32x96xf32> to vector<4x48xf32>
    %273 = vector.extract_strided_slice %272 {offsets = [0, 0], sizes = [4, 32], strides = [1, 1]} : vector<4x48xf32> to vector<4x32xf32>
    %274 = vector.extract_strided_slice %271 {offsets = [0, 0], sizes = [4, 32], strides = [1, 1]} : vector<4x96xf32> to vector<4x32xf32>
    %275 = arith.addf %273, %274 : vector<4x32xf32>
    %276 = arith.negf %275 : vector<4x32xf32>
    %277 = math.exp %276 : vector<4x32xf32>
    %cst_49 = arith.constant 1.000000e+00 : f32
    %278 = vector.broadcast %cst_49 : f32 to vector<4x32xf32>
    %279 = arith.addf %278, %277 : vector<4x32xf32>
    %280 = arith.divf %278, %279 : vector<4x32xf32>
    %281 = vector.extract_strided_slice %272 {offsets = [0, 32], sizes = [4, 16], strides = [1, 1]} : vector<4x48xf32> to vector<4x16xf32>
    %282 = vector.extract_strided_slice %280 {offsets = [0, 0], sizes = [4, 16], strides = [1, 1]} : vector<4x32xf32> to vector<4x16xf32>
    %283 = vector.extract_strided_slice %271 {offsets = [0, 32], sizes = [4, 16], strides = [1, 1]} : vector<4x96xf32> to vector<4x16xf32>
    %284 = arith.mulf %282, %283 : vector<4x16xf32>
    %285 = arith.addf %281, %284 : vector<4x16xf32>
    %286 = math.tanh %285 : vector<4x16xf32>
    %287 = vector.extract_strided_slice %280 {offsets = [0, 16], sizes = [4, 16], strides = [1, 1]} : vector<4x32xf32> to vector<4x16xf32>
    %cst_50 = arith.constant 1.000000e+00 : f32
    %288 = vector.broadcast %cst_50 : f32 to vector<4x16xf32>
    %289 = arith.subf %288, %287 : vector<4x16xf32>
    %290 = arith.mulf %289, %286 : vector<4x16xf32>
    %291 = vector.extract_strided_slice %280 {offsets = [0, 16], sizes = [4, 16], strides = [1, 1]} : vector<4x32xf32> to vector<4x16xf32>
    %292 = vector.extract_strided_slice %266 {offsets = [0, 0], sizes = [4, 16], strides = [1, 1]} : vector<4x32xf32> to vector<4x16xf32>
    %293 = arith.mulf %291, %292 : vector<4x16xf32>
    %294 = arith.addf %290, %293 : vector<4x16xf32>
    %295 = vector.extract_strided_slice %5 {offsets = [8, 48], sizes = [4, 48], strides = [1, 1]} : vector<32x96xf32> to vector<4x48xf32>
    %296 = vector.extract_strided_slice %295 {offsets = [0, 0], sizes = [4, 32], strides = [1, 1]} : vector<4x48xf32> to vector<4x32xf32>
    %297 = vector.extract_strided_slice %271 {offsets = [0, 48], sizes = [4, 32], strides = [1, 1]} : vector<4x96xf32> to vector<4x32xf32>
    %298 = arith.addf %296, %297 : vector<4x32xf32>
    %299 = arith.negf %298 : vector<4x32xf32>
    %300 = math.exp %299 : vector<4x32xf32>
    %cst_51 = arith.constant 1.000000e+00 : f32
    %301 = vector.broadcast %cst_51 : f32 to vector<4x32xf32>
    %302 = arith.addf %301, %300 : vector<4x32xf32>
    %303 = arith.divf %301, %302 : vector<4x32xf32>
    %304 = vector.extract_strided_slice %295 {offsets = [0, 32], sizes = [4, 16], strides = [1, 1]} : vector<4x48xf32> to vector<4x16xf32>
    %305 = vector.extract_strided_slice %303 {offsets = [0, 0], sizes = [4, 16], strides = [1, 1]} : vector<4x32xf32> to vector<4x16xf32>
    %306 = vector.extract_strided_slice %271 {offsets = [0, 80], sizes = [4, 16], strides = [1, 1]} : vector<4x96xf32> to vector<4x16xf32>
    %307 = arith.mulf %305, %306 : vector<4x16xf32>
    %308 = arith.addf %304, %307 : vector<4x16xf32>
    %309 = math.tanh %308 : vector<4x16xf32>
    %310 = vector.extract_strided_slice %303 {offsets = [0, 16], sizes = [4, 16], strides = [1, 1]} : vector<4x32xf32> to vector<4x16xf32>
    %cst_52 = arith.constant 1.000000e+00 : f32
    %311 = vector.broadcast %cst_52 : f32 to vector<4x16xf32>
    %312 = arith.subf %311, %310 : vector<4x16xf32>
    %313 = arith.mulf %312, %309 : vector<4x16xf32>
    %314 = vector.extract_strided_slice %303 {offsets = [0, 16], sizes = [4, 16], strides = [1, 1]} : vector<4x32xf32> to vector<4x16xf32>
    %315 = vector.extract_strided_slice %266 {offsets = [0, 16], sizes = [4, 16], strides = [1, 1]} : vector<4x32xf32> to vector<4x16xf32>
    %316 = arith.mulf %314, %315 : vector<4x16xf32>
    %317 = arith.addf %313, %316 : vector<4x16xf32>
    %318 = tpu.concatenate %294, %317 in 1 : vector<4x16xf32>, vector<4x16xf32> -> vector<4x32xf32>
    %c20_53 = arith.constant 20 : index
    %c0_54 = arith.constant 0 : index
    %319 = vector.load %arg10[%c20_53, %c0_54] : memref<32x32xf32, #tpu.memory_space<vmem>>, vector<4x16xf32>
    tpu.vector_store %arg10[%c20_53, %c0_54], %294 {strides = array<i32>} : memref<32x32xf32, #tpu.memory_space<vmem>>, vector<4x16xf32>,
    %c8_55 = arith.constant 8 : index
    %c16_56 = arith.constant 16 : index
    %320 = vector.load %arg10[%c8_55, %c16_56] : memref<32x32xf32, #tpu.memory_space<vmem>>, vector<4x16xf32>
    tpu.vector_store %arg10[%c8_55, %c16_56], %317 {strides = array<i32>} : memref<32x32xf32, #tpu.memory_space<vmem>>, vector<4x16xf32>,
    %cst_57 = arith.constant dense<0.000000e+00> : vector<4x96xf32>
    %321 = tpu.matmul %318, %6, %cst_57 {dimension_numbers = #tpu.dot_dimension_numbers<[1], [0], [0], [1], [0, 0, 1, 1], [], []>} : vector<4x32xf32>, vector<32x96xf32>, vector<4x96xf32> -> vector<4x96xf32>
    %322 = vector.broadcast %7 : vector<1x96xf32> to vector<4x96xf32>
    %323 = arith.addf %321, %322 : vector<4x96xf32>
    %324 = vector.extract_strided_slice %5 {offsets = [24, 0], sizes = [4, 48], strides = [1, 1]} : vector<32x96xf32> to vector<4x48xf32>
    %325 = vector.extract_strided_slice %324 {offsets = [0, 0], sizes = [4, 32], strides = [1, 1]} : vector<4x48xf32> to vector<4x32xf32>
    %326 = vector.extract_strided_slice %323 {offsets = [0, 0], sizes = [4, 32], strides = [1, 1]} : vector<4x96xf32> to vector<4x32xf32>
    %327 = arith.addf %325, %326 : vector<4x32xf32>
    %328 = arith.negf %327 : vector<4x32xf32>
    %329 = math.exp %328 : vector<4x32xf32>
    %cst_58 = arith.constant 1.000000e+00 : f32
    %330 = vector.broadcast %cst_58 : f32 to vector<4x32xf32>
    %331 = arith.addf %330, %329 : vector<4x32xf32>
    %332 = arith.divf %330, %331 : vector<4x32xf32>
    %333 = vector.extract_strided_slice %324 {offsets = [0, 32], sizes = [4, 16], strides = [1, 1]} : vector<4x48xf32> to vector<4x16xf32>
    %334 = vector.extract_strided_slice %332 {offsets = [0, 0], sizes = [4, 16], strides = [1, 1]} : vector<4x32xf32> to vector<4x16xf32>
    %335 = vector.extract_strided_slice %323 {offsets = [0, 32], sizes = [4, 16], strides = [1, 1]} : vector<4x96xf32> to vector<4x16xf32>
    %336 = arith.mulf %334, %335 : vector<4x16xf32>
    %337 = arith.addf %333, %336 : vector<4x16xf32>
    %338 = math.tanh %337 : vector<4x16xf32>
    %339 = vector.extract_strided_slice %332 {offsets = [0, 16], sizes = [4, 16], strides = [1, 1]} : vector<4x32xf32> to vector<4x16xf32>
    %cst_59 = arith.constant 1.000000e+00 : f32
    %340 = vector.broadcast %cst_59 : f32 to vector<4x16xf32>
    %341 = arith.subf %340, %339 : vector<4x16xf32>
    %342 = arith.mulf %341, %338 : vector<4x16xf32>
    %343 = vector.extract_strided_slice %332 {offsets = [0, 16], sizes = [4, 16], strides = [1, 1]} : vector<4x32xf32> to vector<4x16xf32>
    %344 = vector.extract_strided_slice %318 {offsets = [0, 0], sizes = [4, 16], strides = [1, 1]} : vector<4x32xf32> to vector<4x16xf32>
    %345 = arith.mulf %343, %344 : vector<4x16xf32>
    %346 = arith.addf %342, %345 : vector<4x16xf32>
    %347 = vector.extract_strided_slice %5 {offsets = [4, 48], sizes = [4, 48], strides = [1, 1]} : vector<32x96xf32> to vector<4x48xf32>
    %348 = vector.extract_strided_slice %347 {offsets = [0, 0], sizes = [4, 32], strides = [1, 1]} : vector<4x48xf32> to vector<4x32xf32>
    %349 = vector.extract_strided_slice %323 {offsets = [0, 48], sizes = [4, 32], strides = [1, 1]} : vector<4x96xf32> to vector<4x32xf32>
    %350 = arith.addf %348, %349 : vector<4x32xf32>
    %351 = arith.negf %350 : vector<4x32xf32>
    %352 = math.exp %351 : vector<4x32xf32>
    %cst_60 = arith.constant 1.000000e+00 : f32
    %353 = vector.broadcast %cst_60 : f32 to vector<4x32xf32>
    %354 = arith.addf %353, %352 : vector<4x32xf32>
    %355 = arith.divf %353, %354 : vector<4x32xf32>
    %356 = vector.extract_strided_slice %347 {offsets = [0, 32], sizes = [4, 16], strides = [1, 1]} : vector<4x48xf32> to vector<4x16xf32>
    %357 = vector.extract_strided_slice %355 {offsets = [0, 0], sizes = [4, 16], strides = [1, 1]} : vector<4x32xf32> to vector<4x16xf32>
    %358 = vector.extract_strided_slice %323 {offsets = [0, 80], sizes = [4, 16], strides = [1, 1]} : vector<4x96xf32> to vector<4x16xf32>
    %359 = arith.mulf %357, %358 : vector<4x16xf32>
    %360 = arith.addf %356, %359 : vector<4x16xf32>
    %361 = math.tanh %360 : vector<4x16xf32>
    %362 = vector.extract_strided_slice %355 {offsets = [0, 16], sizes = [4, 16], strides = [1, 1]} : vector<4x32xf32> to vector<4x16xf32>
    %cst_61 = arith.constant 1.000000e+00 : f32
    %363 = vector.broadcast %cst_61 : f32 to vector<4x16xf32>
    %364 = arith.subf %363, %362 : vector<4x16xf32>
    %365 = arith.mulf %364, %361 : vector<4x16xf32>
    %366 = vector.extract_strided_slice %355 {offsets = [0, 16], sizes = [4, 16], strides = [1, 1]} : vector<4x32xf32> to vector<4x16xf32>
    %367 = vector.extract_strided_slice %318 {offsets = [0, 16], sizes = [4, 16], strides = [1, 1]} : vector<4x32xf32> to vector<4x16xf32>
    %368 = arith.mulf %366, %367 : vector<4x16xf32>
    %369 = arith.addf %365, %368 : vector<4x16xf32>
    %370 = tpu.concatenate %346, %369 in 1 : vector<4x16xf32>, vector<4x16xf32> -> vector<4x32xf32>
    %c24_62 = arith.constant 24 : index
    %c0_63 = arith.constant 0 : index
    %371 = vector.load %arg10[%c24_62, %c0_63] : memref<32x32xf32, #tpu.memory_space<vmem>>, vector<4x16xf32>
    tpu.vector_store %arg10[%c24_62, %c0_63], %346 {strides = array<i32>} : memref<32x32xf32, #tpu.memory_space<vmem>>, vector<4x16xf32>,
    %c4_64 = arith.constant 4 : index
    %c16_65 = arith.constant 16 : index
    %372 = vector.load %arg10[%c4_64, %c16_65] : memref<32x32xf32, #tpu.memory_space<vmem>>, vector<4x16xf32>
    tpu.vector_store %arg10[%c4_64, %c16_65], %369 {strides = array<i32>} : memref<32x32xf32, #tpu.memory_space<vmem>>, vector<4x16xf32>,
    %cst_66 = arith.constant dense<0.000000e+00> : vector<4x96xf32>
    %373 = tpu.matmul %370, %6, %cst_66 {dimension_numbers = #tpu.dot_dimension_numbers<[1], [0], [0], [1], [0, 0, 1, 1], [], []>} : vector<4x32xf32>, vector<32x96xf32>, vector<4x96xf32> -> vector<4x96xf32>
    %374 = vector.broadcast %7 : vector<1x96xf32> to vector<4x96xf32>
    %375 = arith.addf %373, %374 : vector<4x96xf32>
    %376 = vector.extract_strided_slice %5 {offsets = [28, 0], sizes = [4, 48], strides = [1, 1]} : vector<32x96xf32> to vector<4x48xf32>
    %377 = vector.extract_strided_slice %376 {offsets = [0, 0], sizes = [4, 32], strides = [1, 1]} : vector<4x48xf32> to vector<4x32xf32>
    %378 = vector.extract_strided_slice %375 {offsets = [0, 0], sizes = [4, 32], strides = [1, 1]} : vector<4x96xf32> to vector<4x32xf32>
    %379 = arith.addf %377, %378 : vector<4x32xf32>
    %380 = arith.negf %379 : vector<4x32xf32>
    %381 = math.exp %380 : vector<4x32xf32>
    %cst_67 = arith.constant 1.000000e+00 : f32
    %382 = vector.broadcast %cst_67 : f32 to vector<4x32xf32>
    %383 = arith.addf %382, %381 : vector<4x32xf32>
    %384 = arith.divf %382, %383 : vector<4x32xf32>
    %385 = vector.extract_strided_slice %376 {offsets = [0, 32], sizes = [4, 16], strides = [1, 1]} : vector<4x48xf32> to vector<4x16xf32>
    %386 = vector.extract_strided_slice %384 {offsets = [0, 0], sizes = [4, 16], strides = [1, 1]} : vector<4x32xf32> to vector<4x16xf32>
    %387 = vector.extract_strided_slice %375 {offsets = [0, 32], sizes = [4, 16], strides = [1, 1]} : vector<4x96xf32> to vector<4x16xf32>
    %388 = arith.mulf %386, %387 : vector<4x16xf32>
    %389 = arith.addf %385, %388 : vector<4x16xf32>
    %390 = math.tanh %389 : vector<4x16xf32>
    %391 = vector.extract_strided_slice %384 {offsets = [0, 16], sizes = [4, 16], strides = [1, 1]} : vector<4x32xf32> to vector<4x16xf32>
    %cst_68 = arith.constant 1.000000e+00 : f32
    %392 = vector.broadcast %cst_68 : f32 to vector<4x16xf32>
    %393 = arith.subf %392, %391 : vector<4x16xf32>
    %394 = arith.mulf %393, %390 : vector<4x16xf32>
    %395 = vector.extract_strided_slice %384 {offsets = [0, 16], sizes = [4, 16], strides = [1, 1]} : vector<4x32xf32> to vector<4x16xf32>
    %396 = vector.extract_strided_slice %370 {offsets = [0, 0], sizes = [4, 16], strides = [1, 1]} : vector<4x32xf32> to vector<4x16xf32>
    %397 = arith.mulf %395, %396 : vector<4x16xf32>
    %398 = arith.addf %394, %397 : vector<4x16xf32>
    %399 = vector.extract_strided_slice %5 {offsets = [0, 48], sizes = [4, 48], strides = [1, 1]} : vector<32x96xf32> to vector<4x48xf32>
    %400 = vector.extract_strided_slice %399 {offsets = [0, 0], sizes = [4, 32], strides = [1, 1]} : vector<4x48xf32> to vector<4x32xf32>
    %401 = vector.extract_strided_slice %375 {offsets = [0, 48], sizes = [4, 32], strides = [1, 1]} : vector<4x96xf32> to vector<4x32xf32>
    %402 = arith.addf %400, %401 : vector<4x32xf32>
    %403 = arith.negf %402 : vector<4x32xf32>
    %404 = math.exp %403 : vector<4x32xf32>
    %cst_69 = arith.constant 1.000000e+00 : f32
    %405 = vector.broadcast %cst_69 : f32 to vector<4x32xf32>
    %406 = arith.addf %405, %404 : vector<4x32xf32>
    %407 = arith.divf %405, %406 : vector<4x32xf32>
    %408 = vector.extract_strided_slice %399 {offsets = [0, 32], sizes = [4, 16], strides = [1, 1]} : vector<4x48xf32> to vector<4x16xf32>
    %409 = vector.extract_strided_slice %407 {offsets = [0, 0], sizes = [4, 16], strides = [1, 1]} : vector<4x32xf32> to vector<4x16xf32>
    %410 = vector.extract_strided_slice %375 {offsets = [0, 80], sizes = [4, 16], strides = [1, 1]} : vector<4x96xf32> to vector<4x16xf32>
    %411 = arith.mulf %409, %410 : vector<4x16xf32>
    %412 = arith.addf %408, %411 : vector<4x16xf32>
    %413 = math.tanh %412 : vector<4x16xf32>
    %414 = vector.extract_strided_slice %407 {offsets = [0, 16], sizes = [4, 16], strides = [1, 1]} : vector<4x32xf32> to vector<4x16xf32>
    %cst_70 = arith.constant 1.000000e+00 : f32
    %415 = vector.broadcast %cst_70 : f32 to vector<4x16xf32>
    %416 = arith.subf %415, %414 : vector<4x16xf32>
    %417 = arith.mulf %416, %413 : vector<4x16xf32>
    %418 = vector.extract_strided_slice %407 {offsets = [0, 16], sizes = [4, 16], strides = [1, 1]} : vector<4x32xf32> to vector<4x16xf32>
    %419 = vector.extract_strided_slice %370 {offsets = [0, 16], sizes = [4, 16], strides = [1, 1]} : vector<4x32xf32> to vector<4x16xf32>
    %420 = arith.mulf %418, %419 : vector<4x16xf32>
    %421 = arith.addf %417, %420 : vector<4x16xf32>
    %c28_71 = arith.constant 28 : index
    %c0_72 = arith.constant 0 : index
    %422 = vector.load %arg10[%c28_71, %c0_72] : memref<32x32xf32, #tpu.memory_space<vmem>>, vector<4x16xf32>
    tpu.vector_store %arg10[%c28_71, %c0_72], %398 {strides = array<i32>} : memref<32x32xf32, #tpu.memory_space<vmem>>, vector<4x16xf32>,
    %c0_73 = arith.constant 0 : index
    %c16_74 = arith.constant 16 : index
    %423 = vector.load %arg10[%c0_73, %c16_74] : memref<32x32xf32, #tpu.memory_space<vmem>>, vector<4x16xf32>
    tpu.vector_store %arg10[%c0_73, %c16_74], %421 {strides = array<i32>} : memref<32x32xf32, #tpu.memory_space<vmem>>, vector<4x16xf32>,
    %c0_75 = arith.constant 0 : index
    %c0_76 = arith.constant 0 : index
    %424 = vector.load %arg10[%c0_75, %c0_76] : memref<32x32xf32, #tpu.memory_space<vmem>>, vector<32x32xf32>
    %c0_77 = arith.constant 0 : index
    %c0_78 = arith.constant 0 : index
    %425 = vector.load %arg5[%c0_77, %c0_78] : memref<32x96xf32, #tpu.memory_space<vmem>>, vector<32x96xf32>
    %cst_79 = arith.constant dense<0.000000e+00> : vector<32x96xf32>
    %426 = tpu.matmul %424, %425, %cst_79 {dimension_numbers = #tpu.dot_dimension_numbers<[1], [0], [0], [1], [0, 0, 1, 1], [], []>} : vector<32x32xf32>, vector<32x96xf32>, vector<32x96xf32> -> vector<32x96xf32>
    %c0_80 = arith.constant 0 : index
    %c0_81 = arith.constant 0 : index
    %427 = vector.load %arg7[%c0_80, %c0_81] : memref<1x96xf32, #tpu.memory_space<vmem>>, vector<1x96xf32>
    %428 = vector.broadcast %427 : vector<1x96xf32> to vector<32x96xf32>
    %429 = arith.addf %426, %428 : vector<32x96xf32>
    %c0_82 = arith.constant 0 : index
    %c0_83 = arith.constant 0 : index
    %430 = vector.load %arg6[%c0_82, %c0_83] : memref<32x96xf32, #tpu.memory_space<vmem>>, vector<32x96xf32>
    %c0_84 = arith.constant 0 : index
    %c0_85 = arith.constant 0 : index
    %431 = vector.load %arg8[%c0_84, %c0_85] : memref<1x96xf32, #tpu.memory_space<vmem>>, vector<1x96xf32>
    %cst_86 = arith.constant 0.000000e+00 : f32
    %432 = vector.broadcast %cst_86 : f32 to vector<4x32xf32>
    %cst_87 = arith.constant dense<0.000000e+00> : vector<4x96xf32>
    %433 = tpu.matmul %432, %430, %cst_87 {dimension_numbers = #tpu.dot_dimension_numbers<[1], [0], [0], [1], [0, 0, 1, 1], [], []>} : vector<4x32xf32>, vector<32x96xf32>, vector<4x96xf32> -> vector<4x96xf32>
    %434 = vector.broadcast %431 : vector<1x96xf32> to vector<4x96xf32>
    %435 = arith.addf %433, %434 : vector<4x96xf32>
    %436 = vector.extract_strided_slice %429 {offsets = [0, 0], sizes = [4, 48], strides = [1, 1]} : vector<32x96xf32> to vector<4x48xf32>
    %437 = vector.extract_strided_slice %436 {offsets = [0, 0], sizes = [4, 32], strides = [1, 1]} : vector<4x48xf32> to vector<4x32xf32>
    %438 = vector.extract_strided_slice %435 {offsets = [0, 0], sizes = [4, 32], strides = [1, 1]} : vector<4x96xf32> to vector<4x32xf32>
    %439 = arith.addf %437, %438 : vector<4x32xf32>
    %440 = arith.negf %439 : vector<4x32xf32>
    %441 = math.exp %440 : vector<4x32xf32>
    %cst_88 = arith.constant 1.000000e+00 : f32
    %442 = vector.broadcast %cst_88 : f32 to vector<4x32xf32>
    %443 = arith.addf %442, %441 : vector<4x32xf32>
    %444 = arith.divf %442, %443 : vector<4x32xf32>
    %445 = vector.extract_strided_slice %436 {offsets = [0, 32], sizes = [4, 16], strides = [1, 1]} : vector<4x48xf32> to vector<4x16xf32>
    %446 = vector.extract_strided_slice %444 {offsets = [0, 0], sizes = [4, 16], strides = [1, 1]} : vector<4x32xf32> to vector<4x16xf32>
    %447 = vector.extract_strided_slice %435 {offsets = [0, 32], sizes = [4, 16], strides = [1, 1]} : vector<4x96xf32> to vector<4x16xf32>
    %448 = arith.mulf %446, %447 : vector<4x16xf32>
    %449 = arith.addf %445, %448 : vector<4x16xf32>
    %450 = math.tanh %449 : vector<4x16xf32>
    %451 = vector.extract_strided_slice %444 {offsets = [0, 16], sizes = [4, 16], strides = [1, 1]} : vector<4x32xf32> to vector<4x16xf32>
    %cst_89 = arith.constant 1.000000e+00 : f32
    %452 = vector.broadcast %cst_89 : f32 to vector<4x16xf32>
    %453 = arith.subf %452, %451 : vector<4x16xf32>
    %454 = arith.mulf %453, %450 : vector<4x16xf32>
    %455 = vector.extract_strided_slice %444 {offsets = [0, 16], sizes = [4, 16], strides = [1, 1]} : vector<4x32xf32> to vector<4x16xf32>
    %456 = vector.extract_strided_slice %432 {offsets = [0, 0], sizes = [4, 16], strides = [1, 1]} : vector<4x32xf32> to vector<4x16xf32>
    %457 = arith.mulf %455, %456 : vector<4x16xf32>
    %458 = arith.addf %454, %457 : vector<4x16xf32>
    %459 = vector.extract_strided_slice %429 {offsets = [28, 48], sizes = [4, 48], strides = [1, 1]} : vector<32x96xf32> to vector<4x48xf32>
    %460 = vector.extract_strided_slice %459 {offsets = [0, 0], sizes = [4, 32], strides = [1, 1]} : vector<4x48xf32> to vector<4x32xf32>
    %461 = vector.extract_strided_slice %435 {offsets = [0, 48], sizes = [4, 32], strides = [1, 1]} : vector<4x96xf32> to vector<4x32xf32>
    %462 = arith.addf %460, %461 : vector<4x32xf32>
    %463 = arith.negf %462 : vector<4x32xf32>
    %464 = math.exp %463 : vector<4x32xf32>
    %cst_90 = arith.constant 1.000000e+00 : f32
    %465 = vector.broadcast %cst_90 : f32 to vector<4x32xf32>
    %466 = arith.addf %465, %464 : vector<4x32xf32>
    %467 = arith.divf %465, %466 : vector<4x32xf32>
    %468 = vector.extract_strided_slice %459 {offsets = [0, 32], sizes = [4, 16], strides = [1, 1]} : vector<4x48xf32> to vector<4x16xf32>
    %469 = vector.extract_strided_slice %467 {offsets = [0, 0], sizes = [4, 16], strides = [1, 1]} : vector<4x32xf32> to vector<4x16xf32>
    %470 = vector.extract_strided_slice %435 {offsets = [0, 80], sizes = [4, 16], strides = [1, 1]} : vector<4x96xf32> to vector<4x16xf32>
    %471 = arith.mulf %469, %470 : vector<4x16xf32>
    %472 = arith.addf %468, %471 : vector<4x16xf32>
    %473 = math.tanh %472 : vector<4x16xf32>
    %474 = vector.extract_strided_slice %467 {offsets = [0, 16], sizes = [4, 16], strides = [1, 1]} : vector<4x32xf32> to vector<4x16xf32>
    %cst_91 = arith.constant 1.000000e+00 : f32
    %475 = vector.broadcast %cst_91 : f32 to vector<4x16xf32>
    %476 = arith.subf %475, %474 : vector<4x16xf32>
    %477 = arith.mulf %476, %473 : vector<4x16xf32>
    %478 = vector.extract_strided_slice %467 {offsets = [0, 16], sizes = [4, 16], strides = [1, 1]} : vector<4x32xf32> to vector<4x16xf32>
    %479 = vector.extract_strided_slice %432 {offsets = [0, 16], sizes = [4, 16], strides = [1, 1]} : vector<4x32xf32> to vector<4x16xf32>
    %480 = arith.mulf %478, %479 : vector<4x16xf32>
    %481 = arith.addf %477, %480 : vector<4x16xf32>
    %482 = tpu.concatenate %458, %481 in 1 : vector<4x16xf32>, vector<4x16xf32> -> vector<4x32xf32>
    %cst_92 = arith.constant dense<0.000000e+00> : vector<4x96xf32>
    %483 = tpu.matmul %482, %430, %cst_92 {dimension_numbers = #tpu.dot_dimension_numbers<[1], [0], [0], [1], [0, 0, 1, 1], [], []>} : vector<4x32xf32>, vector<32x96xf32>, vector<4x96xf32> -> vector<4x96xf32>
    %484 = vector.broadcast %431 : vector<1x96xf32> to vector<4x96xf32>
    %485 = arith.addf %483, %484 : vector<4x96xf32>
    %486 = vector.extract_strided_slice %429 {offsets = [4, 0], sizes = [4, 48], strides = [1, 1]} : vector<32x96xf32> to vector<4x48xf32>
    %487 = vector.extract_strided_slice %486 {offsets = [0, 0], sizes = [4, 32], strides = [1, 1]} : vector<4x48xf32> to vector<4x32xf32>
    %488 = vector.extract_strided_slice %485 {offsets = [0, 0], sizes = [4, 32], strides = [1, 1]} : vector<4x96xf32> to vector<4x32xf32>
    %489 = arith.addf %487, %488 : vector<4x32xf32>
    %490 = arith.negf %489 : vector<4x32xf32>
    %491 = math.exp %490 : vector<4x32xf32>
    %cst_93 = arith.constant 1.000000e+00 : f32
    %492 = vector.broadcast %cst_93 : f32 to vector<4x32xf32>
    %493 = arith.addf %492, %491 : vector<4x32xf32>
    %494 = arith.divf %492, %493 : vector<4x32xf32>
    %495 = vector.extract_strided_slice %486 {offsets = [0, 32], sizes = [4, 16], strides = [1, 1]} : vector<4x48xf32> to vector<4x16xf32>
    %496 = vector.extract_strided_slice %494 {offsets = [0, 0], sizes = [4, 16], strides = [1, 1]} : vector<4x32xf32> to vector<4x16xf32>
    %497 = vector.extract_strided_slice %485 {offsets = [0, 32], sizes = [4, 16], strides = [1, 1]} : vector<4x96xf32> to vector<4x16xf32>
    %498 = arith.mulf %496, %497 : vector<4x16xf32>
    %499 = arith.addf %495, %498 : vector<4x16xf32>
    %500 = math.tanh %499 : vector<4x16xf32>
    %501 = vector.extract_strided_slice %494 {offsets = [0, 16], sizes = [4, 16], strides = [1, 1]} : vector<4x32xf32> to vector<4x16xf32>
    %cst_94 = arith.constant 1.000000e+00 : f32
    %502 = vector.broadcast %cst_94 : f32 to vector<4x16xf32>
    %503 = arith.subf %502, %501 : vector<4x16xf32>
    %504 = arith.mulf %503, %500 : vector<4x16xf32>
    %505 = vector.extract_strided_slice %494 {offsets = [0, 16], sizes = [4, 16], strides = [1, 1]} : vector<4x32xf32> to vector<4x16xf32>
    %506 = vector.extract_strided_slice %482 {offsets = [0, 0], sizes = [4, 16], strides = [1, 1]} : vector<4x32xf32> to vector<4x16xf32>
    %507 = arith.mulf %505, %506 : vector<4x16xf32>
    %508 = arith.addf %504, %507 : vector<4x16xf32>
    %509 = vector.extract_strided_slice %429 {offsets = [24, 48], sizes = [4, 48], strides = [1, 1]} : vector<32x96xf32> to vector<4x48xf32>
    %510 = vector.extract_strided_slice %509 {offsets = [0, 0], sizes = [4, 32], strides = [1, 1]} : vector<4x48xf32> to vector<4x32xf32>
    %511 = vector.extract_strided_slice %485 {offsets = [0, 48], sizes = [4, 32], strides = [1, 1]} : vector<4x96xf32> to vector<4x32xf32>
    %512 = arith.addf %510, %511 : vector<4x32xf32>
    %513 = arith.negf %512 : vector<4x32xf32>
    %514 = math.exp %513 : vector<4x32xf32>
    %cst_95 = arith.constant 1.000000e+00 : f32
    %515 = vector.broadcast %cst_95 : f32 to vector<4x32xf32>
    %516 = arith.addf %515, %514 : vector<4x32xf32>
    %517 = arith.divf %515, %516 : vector<4x32xf32>
    %518 = vector.extract_strided_slice %509 {offsets = [0, 32], sizes = [4, 16], strides = [1, 1]} : vector<4x48xf32> to vector<4x16xf32>
    %519 = vector.extract_strided_slice %517 {offsets = [0, 0], sizes = [4, 16], strides = [1, 1]} : vector<4x32xf32> to vector<4x16xf32>
    %520 = vector.extract_strided_slice %485 {offsets = [0, 80], sizes = [4, 16], strides = [1, 1]} : vector<4x96xf32> to vector<4x16xf32>
    %521 = arith.mulf %519, %520 : vector<4x16xf32>
    %522 = arith.addf %518, %521 : vector<4x16xf32>
    %523 = math.tanh %522 : vector<4x16xf32>
    %524 = vector.extract_strided_slice %517 {offsets = [0, 16], sizes = [4, 16], strides = [1, 1]} : vector<4x32xf32> to vector<4x16xf32>
    %cst_96 = arith.constant 1.000000e+00 : f32
    %525 = vector.broadcast %cst_96 : f32 to vector<4x16xf32>
    %526 = arith.subf %525, %524 : vector<4x16xf32>
    %527 = arith.mulf %526, %523 : vector<4x16xf32>
    %528 = vector.extract_strided_slice %517 {offsets = [0, 16], sizes = [4, 16], strides = [1, 1]} : vector<4x32xf32> to vector<4x16xf32>
    %529 = vector.extract_strided_slice %482 {offsets = [0, 16], sizes = [4, 16], strides = [1, 1]} : vector<4x32xf32> to vector<4x16xf32>
    %530 = arith.mulf %528, %529 : vector<4x16xf32>
    %531 = arith.addf %527, %530 : vector<4x16xf32>
    %532 = tpu.concatenate %508, %531 in 1 : vector<4x16xf32>, vector<4x16xf32> -> vector<4x32xf32>
    %cst_97 = arith.constant dense<0.000000e+00> : vector<4x96xf32>
    %533 = tpu.matmul %532, %430, %cst_97 {dimension_numbers = #tpu.dot_dimension_numbers<[1], [0], [0], [1], [0, 0, 1, 1], [], []>} : vector<4x32xf32>, vector<32x96xf32>, vector<4x96xf32> -> vector<4x96xf32>
    %534 = vector.broadcast %431 : vector<1x96xf32> to vector<4x96xf32>
    %535 = arith.addf %533, %534 : vector<4x96xf32>
    %536 = vector.extract_strided_slice %429 {offsets = [8, 0], sizes = [4, 48], strides = [1, 1]} : vector<32x96xf32> to vector<4x48xf32>
    %537 = vector.extract_strided_slice %536 {offsets = [0, 0], sizes = [4, 32], strides = [1, 1]} : vector<4x48xf32> to vector<4x32xf32>
    %538 = vector.extract_strided_slice %535 {offsets = [0, 0], sizes = [4, 32], strides = [1, 1]} : vector<4x96xf32> to vector<4x32xf32>
    %539 = arith.addf %537, %538 : vector<4x32xf32>
    %540 = arith.negf %539 : vector<4x32xf32>
    %541 = math.exp %540 : vector<4x32xf32>
    %cst_98 = arith.constant 1.000000e+00 : f32
    %542 = vector.broadcast %cst_98 : f32 to vector<4x32xf32>
    %543 = arith.addf %542, %541 : vector<4x32xf32>
    %544 = arith.divf %542, %543 : vector<4x32xf32>
    %545 = vector.extract_strided_slice %536 {offsets = [0, 32], sizes = [4, 16], strides = [1, 1]} : vector<4x48xf32> to vector<4x16xf32>
    %546 = vector.extract_strided_slice %544 {offsets = [0, 0], sizes = [4, 16], strides = [1, 1]} : vector<4x32xf32> to vector<4x16xf32>
    %547 = vector.extract_strided_slice %535 {offsets = [0, 32], sizes = [4, 16], strides = [1, 1]} : vector<4x96xf32> to vector<4x16xf32>
    %548 = arith.mulf %546, %547 : vector<4x16xf32>
    %549 = arith.addf %545, %548 : vector<4x16xf32>
    %550 = math.tanh %549 : vector<4x16xf32>
    %551 = vector.extract_strided_slice %544 {offsets = [0, 16], sizes = [4, 16], strides = [1, 1]} : vector<4x32xf32> to vector<4x16xf32>
    %cst_99 = arith.constant 1.000000e+00 : f32
    %552 = vector.broadcast %cst_99 : f32 to vector<4x16xf32>
    %553 = arith.subf %552, %551 : vector<4x16xf32>
    %554 = arith.mulf %553, %550 : vector<4x16xf32>
    %555 = vector.extract_strided_slice %544 {offsets = [0, 16], sizes = [4, 16], strides = [1, 1]} : vector<4x32xf32> to vector<4x16xf32>
    %556 = vector.extract_strided_slice %532 {offsets = [0, 0], sizes = [4, 16], strides = [1, 1]} : vector<4x32xf32> to vector<4x16xf32>
    %557 = arith.mulf %555, %556 : vector<4x16xf32>
    %558 = arith.addf %554, %557 : vector<4x16xf32>
    %559 = vector.extract_strided_slice %429 {offsets = [20, 48], sizes = [4, 48], strides = [1, 1]} : vector<32x96xf32> to vector<4x48xf32>
    %560 = vector.extract_strided_slice %559 {offsets = [0, 0], sizes = [4, 32], strides = [1, 1]} : vector<4x48xf32> to vector<4x32xf32>
    %561 = vector.extract_strided_slice %535 {offsets = [0, 48], sizes = [4, 32], strides = [1, 1]} : vector<4x96xf32> to vector<4x32xf32>
    %562 = arith.addf %560, %561 : vector<4x32xf32>
    %563 = arith.negf %562 : vector<4x32xf32>
    %564 = math.exp %563 : vector<4x32xf32>
    %cst_100 = arith.constant 1.000000e+00 : f32
    %565 = vector.broadcast %cst_100 : f32 to vector<4x32xf32>
    %566 = arith.addf %565, %564 : vector<4x32xf32>
    %567 = arith.divf %565, %566 : vector<4x32xf32>
    %568 = vector.extract_strided_slice %559 {offsets = [0, 32], sizes = [4, 16], strides = [1, 1]} : vector<4x48xf32> to vector<4x16xf32>
    %569 = vector.extract_strided_slice %567 {offsets = [0, 0], sizes = [4, 16], strides = [1, 1]} : vector<4x32xf32> to vector<4x16xf32>
    %570 = vector.extract_strided_slice %535 {offsets = [0, 80], sizes = [4, 16], strides = [1, 1]} : vector<4x96xf32> to vector<4x16xf32>
    %571 = arith.mulf %569, %570 : vector<4x16xf32>
    %572 = arith.addf %568, %571 : vector<4x16xf32>
    %573 = math.tanh %572 : vector<4x16xf32>
    %574 = vector.extract_strided_slice %567 {offsets = [0, 16], sizes = [4, 16], strides = [1, 1]} : vector<4x32xf32> to vector<4x16xf32>
    %cst_101 = arith.constant 1.000000e+00 : f32
    %575 = vector.broadcast %cst_101 : f32 to vector<4x16xf32>
    %576 = arith.subf %575, %574 : vector<4x16xf32>
    %577 = arith.mulf %576, %573 : vector<4x16xf32>
    %578 = vector.extract_strided_slice %567 {offsets = [0, 16], sizes = [4, 16], strides = [1, 1]} : vector<4x32xf32> to vector<4x16xf32>
    %579 = vector.extract_strided_slice %532 {offsets = [0, 16], sizes = [4, 16], strides = [1, 1]} : vector<4x32xf32> to vector<4x16xf32>
    %580 = arith.mulf %578, %579 : vector<4x16xf32>
    %581 = arith.addf %577, %580 : vector<4x16xf32>
    %582 = tpu.concatenate %558, %581 in 1 : vector<4x16xf32>, vector<4x16xf32> -> vector<4x32xf32>
    %cst_102 = arith.constant dense<0.000000e+00> : vector<4x96xf32>
    %583 = tpu.matmul %582, %430, %cst_102 {dimension_numbers = #tpu.dot_dimension_numbers<[1], [0], [0], [1], [0, 0, 1, 1], [], []>} : vector<4x32xf32>, vector<32x96xf32>, vector<4x96xf32> -> vector<4x96xf32>
    %584 = vector.broadcast %431 : vector<1x96xf32> to vector<4x96xf32>
    %585 = arith.addf %583, %584 : vector<4x96xf32>
    %586 = vector.extract_strided_slice %429 {offsets = [12, 0], sizes = [4, 48], strides = [1, 1]} : vector<32x96xf32> to vector<4x48xf32>
    %587 = vector.extract_strided_slice %586 {offsets = [0, 0], sizes = [4, 32], strides = [1, 1]} : vector<4x48xf32> to vector<4x32xf32>
    %588 = vector.extract_strided_slice %585 {offsets = [0, 0], sizes = [4, 32], strides = [1, 1]} : vector<4x96xf32> to vector<4x32xf32>
    %589 = arith.addf %587, %588 : vector<4x32xf32>
    %590 = arith.negf %589 : vector<4x32xf32>
    %591 = math.exp %590 : vector<4x32xf32>
    %cst_103 = arith.constant 1.000000e+00 : f32
    %592 = vector.broadcast %cst_103 : f32 to vector<4x32xf32>
    %593 = arith.addf %592, %591 : vector<4x32xf32>
    %594 = arith.divf %592, %593 : vector<4x32xf32>
    %595 = vector.extract_strided_slice %586 {offsets = [0, 32], sizes = [4, 16], strides = [1, 1]} : vector<4x48xf32> to vector<4x16xf32>
    %596 = vector.extract_strided_slice %594 {offsets = [0, 0], sizes = [4, 16], strides = [1, 1]} : vector<4x32xf32> to vector<4x16xf32>
    %597 = vector.extract_strided_slice %585 {offsets = [0, 32], sizes = [4, 16], strides = [1, 1]} : vector<4x96xf32> to vector<4x16xf32>
    %598 = arith.mulf %596, %597 : vector<4x16xf32>
    %599 = arith.addf %595, %598 : vector<4x16xf32>
    %600 = math.tanh %599 : vector<4x16xf32>
    %601 = vector.extract_strided_slice %594 {offsets = [0, 16], sizes = [4, 16], strides = [1, 1]} : vector<4x32xf32> to vector<4x16xf32>
    %cst_104 = arith.constant 1.000000e+00 : f32
    %602 = vector.broadcast %cst_104 : f32 to vector<4x16xf32>
    %603 = arith.subf %602, %601 : vector<4x16xf32>
    %604 = arith.mulf %603, %600 : vector<4x16xf32>
    %605 = vector.extract_strided_slice %594 {offsets = [0, 16], sizes = [4, 16], strides = [1, 1]} : vector<4x32xf32> to vector<4x16xf32>
    %606 = vector.extract_strided_slice %582 {offsets = [0, 0], sizes = [4, 16], strides = [1, 1]} : vector<4x32xf32> to vector<4x16xf32>
    %607 = arith.mulf %605, %606 : vector<4x16xf32>
    %608 = arith.addf %604, %607 : vector<4x16xf32>
    %609 = vector.extract_strided_slice %429 {offsets = [16, 48], sizes = [4, 48], strides = [1, 1]} : vector<32x96xf32> to vector<4x48xf32>
    %610 = vector.extract_strided_slice %609 {offsets = [0, 0], sizes = [4, 32], strides = [1, 1]} : vector<4x48xf32> to vector<4x32xf32>
    %611 = vector.extract_strided_slice %585 {offsets = [0, 48], sizes = [4, 32], strides = [1, 1]} : vector<4x96xf32> to vector<4x32xf32>
    %612 = arith.addf %610, %611 : vector<4x32xf32>
    %613 = arith.negf %612 : vector<4x32xf32>
    %614 = math.exp %613 : vector<4x32xf32>
    %cst_105 = arith.constant 1.000000e+00 : f32
    %615 = vector.broadcast %cst_105 : f32 to vector<4x32xf32>
    %616 = arith.addf %615, %614 : vector<4x32xf32>
    %617 = arith.divf %615, %616 : vector<4x32xf32>
    %618 = vector.extract_strided_slice %609 {offsets = [0, 32], sizes = [4, 16], strides = [1, 1]} : vector<4x48xf32> to vector<4x16xf32>
    %619 = vector.extract_strided_slice %617 {offsets = [0, 0], sizes = [4, 16], strides = [1, 1]} : vector<4x32xf32> to vector<4x16xf32>
    %620 = vector.extract_strided_slice %585 {offsets = [0, 80], sizes = [4, 16], strides = [1, 1]} : vector<4x96xf32> to vector<4x16xf32>
    %621 = arith.mulf %619, %620 : vector<4x16xf32>
    %622 = arith.addf %618, %621 : vector<4x16xf32>
    %623 = math.tanh %622 : vector<4x16xf32>
    %624 = vector.extract_strided_slice %617 {offsets = [0, 16], sizes = [4, 16], strides = [1, 1]} : vector<4x32xf32> to vector<4x16xf32>
    %cst_106 = arith.constant 1.000000e+00 : f32
    %625 = vector.broadcast %cst_106 : f32 to vector<4x16xf32>
    %626 = arith.subf %625, %624 : vector<4x16xf32>
    %627 = arith.mulf %626, %623 : vector<4x16xf32>
    %628 = vector.extract_strided_slice %617 {offsets = [0, 16], sizes = [4, 16], strides = [1, 1]} : vector<4x32xf32> to vector<4x16xf32>
    %629 = vector.extract_strided_slice %582 {offsets = [0, 16], sizes = [4, 16], strides = [1, 1]} : vector<4x32xf32> to vector<4x16xf32>
    %630 = arith.mulf %628, %629 : vector<4x16xf32>
    %631 = arith.addf %627, %630 : vector<4x16xf32>
    %632 = tpu.concatenate %608, %631 in 1 : vector<4x16xf32>, vector<4x16xf32> -> vector<4x32xf32>
    %cst_107 = arith.constant dense<0.000000e+00> : vector<4x96xf32>
    %633 = tpu.matmul %632, %430, %cst_107 {dimension_numbers = #tpu.dot_dimension_numbers<[1], [0], [0], [1], [0, 0, 1, 1], [], []>} : vector<4x32xf32>, vector<32x96xf32>, vector<4x96xf32> -> vector<4x96xf32>
    %634 = vector.broadcast %431 : vector<1x96xf32> to vector<4x96xf32>
    %635 = arith.addf %633, %634 : vector<4x96xf32>
    %636 = vector.extract_strided_slice %429 {offsets = [16, 0], sizes = [4, 48], strides = [1, 1]} : vector<32x96xf32> to vector<4x48xf32>
    %637 = vector.extract_strided_slice %636 {offsets = [0, 0], sizes = [4, 32], strides = [1, 1]} : vector<4x48xf32> to vector<4x32xf32>
    %638 = vector.extract_strided_slice %635 {offsets = [0, 0], sizes = [4, 32], strides = [1, 1]} : vector<4x96xf32> to vector<4x32xf32>
    %639 = arith.addf %637, %638 : vector<4x32xf32>
    %640 = arith.negf %639 : vector<4x32xf32>
    %641 = math.exp %640 : vector<4x32xf32>
    %cst_108 = arith.constant 1.000000e+00 : f32
    %642 = vector.broadcast %cst_108 : f32 to vector<4x32xf32>
    %643 = arith.addf %642, %641 : vector<4x32xf32>
    %644 = arith.divf %642, %643 : vector<4x32xf32>
    %645 = vector.extract_strided_slice %636 {offsets = [0, 32], sizes = [4, 16], strides = [1, 1]} : vector<4x48xf32> to vector<4x16xf32>
    %646 = vector.extract_strided_slice %644 {offsets = [0, 0], sizes = [4, 16], strides = [1, 1]} : vector<4x32xf32> to vector<4x16xf32>
    %647 = vector.extract_strided_slice %635 {offsets = [0, 32], sizes = [4, 16], strides = [1, 1]} : vector<4x96xf32> to vector<4x16xf32>
    %648 = arith.mulf %646, %647 : vector<4x16xf32>
    %649 = arith.addf %645, %648 : vector<4x16xf32>
    %650 = math.tanh %649 : vector<4x16xf32>
    %651 = vector.extract_strided_slice %644 {offsets = [0, 16], sizes = [4, 16], strides = [1, 1]} : vector<4x32xf32> to vector<4x16xf32>
    %cst_109 = arith.constant 1.000000e+00 : f32
    %652 = vector.broadcast %cst_109 : f32 to vector<4x16xf32>
    %653 = arith.subf %652, %651 : vector<4x16xf32>
    %654 = arith.mulf %653, %650 : vector<4x16xf32>
    %655 = vector.extract_strided_slice %644 {offsets = [0, 16], sizes = [4, 16], strides = [1, 1]} : vector<4x32xf32> to vector<4x16xf32>
    %656 = vector.extract_strided_slice %632 {offsets = [0, 0], sizes = [4, 16], strides = [1, 1]} : vector<4x32xf32> to vector<4x16xf32>
    %657 = arith.mulf %655, %656 : vector<4x16xf32>
    %658 = arith.addf %654, %657 : vector<4x16xf32>
    %659 = vector.extract_strided_slice %429 {offsets = [12, 48], sizes = [4, 48], strides = [1, 1]} : vector<32x96xf32> to vector<4x48xf32>
    %660 = vector.extract_strided_slice %659 {offsets = [0, 0], sizes = [4, 32], strides = [1, 1]} : vector<4x48xf32> to vector<4x32xf32>
    %661 = vector.extract_strided_slice %635 {offsets = [0, 48], sizes = [4, 32], strides = [1, 1]} : vector<4x96xf32> to vector<4x32xf32>
    %662 = arith.addf %660, %661 : vector<4x32xf32>
    %663 = arith.negf %662 : vector<4x32xf32>
    %664 = math.exp %663 : vector<4x32xf32>
    %cst_110 = arith.constant 1.000000e+00 : f32
    %665 = vector.broadcast %cst_110 : f32 to vector<4x32xf32>
    %666 = arith.addf %665, %664 : vector<4x32xf32>
    %667 = arith.divf %665, %666 : vector<4x32xf32>
    %668 = vector.extract_strided_slice %659 {offsets = [0, 32], sizes = [4, 16], strides = [1, 1]} : vector<4x48xf32> to vector<4x16xf32>
    %669 = vector.extract_strided_slice %667 {offsets = [0, 0], sizes = [4, 16], strides = [1, 1]} : vector<4x32xf32> to vector<4x16xf32>
    %670 = vector.extract_strided_slice %635 {offsets = [0, 80], sizes = [4, 16], strides = [1, 1]} : vector<4x96xf32> to vector<4x16xf32>
    %671 = arith.mulf %669, %670 : vector<4x16xf32>
    %672 = arith.addf %668, %671 : vector<4x16xf32>
    %673 = math.tanh %672 : vector<4x16xf32>
    %674 = vector.extract_strided_slice %667 {offsets = [0, 16], sizes = [4, 16], strides = [1, 1]} : vector<4x32xf32> to vector<4x16xf32>
    %cst_111 = arith.constant 1.000000e+00 : f32
    %675 = vector.broadcast %cst_111 : f32 to vector<4x16xf32>
    %676 = arith.subf %675, %674 : vector<4x16xf32>
    %677 = arith.mulf %676, %673 : vector<4x16xf32>
    %678 = vector.extract_strided_slice %667 {offsets = [0, 16], sizes = [4, 16], strides = [1, 1]} : vector<4x32xf32> to vector<4x16xf32>
    %679 = vector.extract_strided_slice %632 {offsets = [0, 16], sizes = [4, 16], strides = [1, 1]} : vector<4x32xf32> to vector<4x16xf32>
    %680 = arith.mulf %678, %679 : vector<4x16xf32>
    %681 = arith.addf %677, %680 : vector<4x16xf32>
    %682 = tpu.concatenate %658, %681 in 1 : vector<4x16xf32>, vector<4x16xf32> -> vector<4x32xf32>
    %cst_112 = arith.constant dense<0.000000e+00> : vector<4x96xf32>
    %683 = tpu.matmul %682, %430, %cst_112 {dimension_numbers = #tpu.dot_dimension_numbers<[1], [0], [0], [1], [0, 0, 1, 1], [], []>} : vector<4x32xf32>, vector<32x96xf32>, vector<4x96xf32> -> vector<4x96xf32>
    %684 = vector.broadcast %431 : vector<1x96xf32> to vector<4x96xf32>
    %685 = arith.addf %683, %684 : vector<4x96xf32>
    %686 = vector.extract_strided_slice %429 {offsets = [20, 0], sizes = [4, 48], strides = [1, 1]} : vector<32x96xf32> to vector<4x48xf32>
    %687 = vector.extract_strided_slice %686 {offsets = [0, 0], sizes = [4, 32], strides = [1, 1]} : vector<4x48xf32> to vector<4x32xf32>
    %688 = vector.extract_strided_slice %685 {offsets = [0, 0], sizes = [4, 32], strides = [1, 1]} : vector<4x96xf32> to vector<4x32xf32>
    %689 = arith.addf %687, %688 : vector<4x32xf32>
    %690 = arith.negf %689 : vector<4x32xf32>
    %691 = math.exp %690 : vector<4x32xf32>
    %cst_113 = arith.constant 1.000000e+00 : f32
    %692 = vector.broadcast %cst_113 : f32 to vector<4x32xf32>
    %693 = arith.addf %692, %691 : vector<4x32xf32>
    %694 = arith.divf %692, %693 : vector<4x32xf32>
    %695 = vector.extract_strided_slice %686 {offsets = [0, 32], sizes = [4, 16], strides = [1, 1]} : vector<4x48xf32> to vector<4x16xf32>
    %696 = vector.extract_strided_slice %694 {offsets = [0, 0], sizes = [4, 16], strides = [1, 1]} : vector<4x32xf32> to vector<4x16xf32>
    %697 = vector.extract_strided_slice %685 {offsets = [0, 32], sizes = [4, 16], strides = [1, 1]} : vector<4x96xf32> to vector<4x16xf32>
    %698 = arith.mulf %696, %697 : vector<4x16xf32>
    %699 = arith.addf %695, %698 : vector<4x16xf32>
    %700 = math.tanh %699 : vector<4x16xf32>
    %701 = vector.extract_strided_slice %694 {offsets = [0, 16], sizes = [4, 16], strides = [1, 1]} : vector<4x32xf32> to vector<4x16xf32>
    %cst_114 = arith.constant 1.000000e+00 : f32
    %702 = vector.broadcast %cst_114 : f32 to vector<4x16xf32>
    %703 = arith.subf %702, %701 : vector<4x16xf32>
    %704 = arith.mulf %703, %700 : vector<4x16xf32>
    %705 = vector.extract_strided_slice %694 {offsets = [0, 16], sizes = [4, 16], strides = [1, 1]} : vector<4x32xf32> to vector<4x16xf32>
    %706 = vector.extract_strided_slice %682 {offsets = [0, 0], sizes = [4, 16], strides = [1, 1]} : vector<4x32xf32> to vector<4x16xf32>
    %707 = arith.mulf %705, %706 : vector<4x16xf32>
    %708 = arith.addf %704, %707 : vector<4x16xf32>
    %709 = vector.extract_strided_slice %429 {offsets = [8, 48], sizes = [4, 48], strides = [1, 1]} : vector<32x96xf32> to vector<4x48xf32>
    %710 = vector.extract_strided_slice %709 {offsets = [0, 0], sizes = [4, 32], strides = [1, 1]} : vector<4x48xf32> to vector<4x32xf32>
    %711 = vector.extract_strided_slice %685 {offsets = [0, 48], sizes = [4, 32], strides = [1, 1]} : vector<4x96xf32> to vector<4x32xf32>
    %712 = arith.addf %710, %711 : vector<4x32xf32>
    %713 = arith.negf %712 : vector<4x32xf32>
    %714 = math.exp %713 : vector<4x32xf32>
    %cst_115 = arith.constant 1.000000e+00 : f32
    %715 = vector.broadcast %cst_115 : f32 to vector<4x32xf32>
    %716 = arith.addf %715, %714 : vector<4x32xf32>
    %717 = arith.divf %715, %716 : vector<4x32xf32>
    %718 = vector.extract_strided_slice %709 {offsets = [0, 32], sizes = [4, 16], strides = [1, 1]} : vector<4x48xf32> to vector<4x16xf32>
    %719 = vector.extract_strided_slice %717 {offsets = [0, 0], sizes = [4, 16], strides = [1, 1]} : vector<4x32xf32> to vector<4x16xf32>
    %720 = vector.extract_strided_slice %685 {offsets = [0, 80], sizes = [4, 16], strides = [1, 1]} : vector<4x96xf32> to vector<4x16xf32>
    %721 = arith.mulf %719, %720 : vector<4x16xf32>
    %722 = arith.addf %718, %721 : vector<4x16xf32>
    %723 = math.tanh %722 : vector<4x16xf32>
    %724 = vector.extract_strided_slice %717 {offsets = [0, 16], sizes = [4, 16], strides = [1, 1]} : vector<4x32xf32> to vector<4x16xf32>
    %cst_116 = arith.constant 1.000000e+00 : f32
    %725 = vector.broadcast %cst_116 : f32 to vector<4x16xf32>
    %726 = arith.subf %725, %724 : vector<4x16xf32>
    %727 = arith.mulf %726, %723 : vector<4x16xf32>
    %728 = vector.extract_strided_slice %717 {offsets = [0, 16], sizes = [4, 16], strides = [1, 1]} : vector<4x32xf32> to vector<4x16xf32>
    %729 = vector.extract_strided_slice %682 {offsets = [0, 16], sizes = [4, 16], strides = [1, 1]} : vector<4x32xf32> to vector<4x16xf32>
    %730 = arith.mulf %728, %729 : vector<4x16xf32>
    %731 = arith.addf %727, %730 : vector<4x16xf32>
    %732 = tpu.concatenate %708, %731 in 1 : vector<4x16xf32>, vector<4x16xf32> -> vector<4x32xf32>
    %cst_117 = arith.constant dense<0.000000e+00> : vector<4x96xf32>
    %733 = tpu.matmul %732, %430, %cst_117 {dimension_numbers = #tpu.dot_dimension_numbers<[1], [0], [0], [1], [0, 0, 1, 1], [], []>} : vector<4x32xf32>, vector<32x96xf32>, vector<4x96xf32> -> vector<4x96xf32>
    %734 = vector.broadcast %431 : vector<1x96xf32> to vector<4x96xf32>
    %735 = arith.addf %733, %734 : vector<4x96xf32>
    %736 = vector.extract_strided_slice %429 {offsets = [24, 0], sizes = [4, 48], strides = [1, 1]} : vector<32x96xf32> to vector<4x48xf32>
    %737 = vector.extract_strided_slice %736 {offsets = [0, 0], sizes = [4, 32], strides = [1, 1]} : vector<4x48xf32> to vector<4x32xf32>
    %738 = vector.extract_strided_slice %735 {offsets = [0, 0], sizes = [4, 32], strides = [1, 1]} : vector<4x96xf32> to vector<4x32xf32>
    %739 = arith.addf %737, %738 : vector<4x32xf32>
    %740 = arith.negf %739 : vector<4x32xf32>
    %741 = math.exp %740 : vector<4x32xf32>
    %cst_118 = arith.constant 1.000000e+00 : f32
    %742 = vector.broadcast %cst_118 : f32 to vector<4x32xf32>
    %743 = arith.addf %742, %741 : vector<4x32xf32>
    %744 = arith.divf %742, %743 : vector<4x32xf32>
    %745 = vector.extract_strided_slice %736 {offsets = [0, 32], sizes = [4, 16], strides = [1, 1]} : vector<4x48xf32> to vector<4x16xf32>
    %746 = vector.extract_strided_slice %744 {offsets = [0, 0], sizes = [4, 16], strides = [1, 1]} : vector<4x32xf32> to vector<4x16xf32>
    %747 = vector.extract_strided_slice %735 {offsets = [0, 32], sizes = [4, 16], strides = [1, 1]} : vector<4x96xf32> to vector<4x16xf32>
    %748 = arith.mulf %746, %747 : vector<4x16xf32>
    %749 = arith.addf %745, %748 : vector<4x16xf32>
    %750 = math.tanh %749 : vector<4x16xf32>
    %751 = vector.extract_strided_slice %744 {offsets = [0, 16], sizes = [4, 16], strides = [1, 1]} : vector<4x32xf32> to vector<4x16xf32>
    %cst_119 = arith.constant 1.000000e+00 : f32
    %752 = vector.broadcast %cst_119 : f32 to vector<4x16xf32>
    %753 = arith.subf %752, %751 : vector<4x16xf32>
    %754 = arith.mulf %753, %750 : vector<4x16xf32>
    %755 = vector.extract_strided_slice %744 {offsets = [0, 16], sizes = [4, 16], strides = [1, 1]} : vector<4x32xf32> to vector<4x16xf32>
    %756 = vector.extract_strided_slice %732 {offsets = [0, 0], sizes = [4, 16], strides = [1, 1]} : vector<4x32xf32> to vector<4x16xf32>
    %757 = arith.mulf %755, %756 : vector<4x16xf32>
    %758 = arith.addf %754, %757 : vector<4x16xf32>
    %759 = vector.extract_strided_slice %429 {offsets = [4, 48], sizes = [4, 48], strides = [1, 1]} : vector<32x96xf32> to vector<4x48xf32>
    %760 = vector.extract_strided_slice %759 {offsets = [0, 0], sizes = [4, 32], strides = [1, 1]} : vector<4x48xf32> to vector<4x32xf32>
    %761 = vector.extract_strided_slice %735 {offsets = [0, 48], sizes = [4, 32], strides = [1, 1]} : vector<4x96xf32> to vector<4x32xf32>
    %762 = arith.addf %760, %761 : vector<4x32xf32>
    %763 = arith.negf %762 : vector<4x32xf32>
    %764 = math.exp %763 : vector<4x32xf32>
    %cst_120 = arith.constant 1.000000e+00 : f32
    %765 = vector.broadcast %cst_120 : f32 to vector<4x32xf32>
    %766 = arith.addf %765, %764 : vector<4x32xf32>
    %767 = arith.divf %765, %766 : vector<4x32xf32>
    %768 = vector.extract_strided_slice %759 {offsets = [0, 32], sizes = [4, 16], strides = [1, 1]} : vector<4x48xf32> to vector<4x16xf32>
    %769 = vector.extract_strided_slice %767 {offsets = [0, 0], sizes = [4, 16], strides = [1, 1]} : vector<4x32xf32> to vector<4x16xf32>
    %770 = vector.extract_strided_slice %735 {offsets = [0, 80], sizes = [4, 16], strides = [1, 1]} : vector<4x96xf32> to vector<4x16xf32>
    %771 = arith.mulf %769, %770 : vector<4x16xf32>
    %772 = arith.addf %768, %771 : vector<4x16xf32>
    %773 = math.tanh %772 : vector<4x16xf32>
    %774 = vector.extract_strided_slice %767 {offsets = [0, 16], sizes = [4, 16], strides = [1, 1]} : vector<4x32xf32> to vector<4x16xf32>
    %cst_121 = arith.constant 1.000000e+00 : f32
    %775 = vector.broadcast %cst_121 : f32 to vector<4x16xf32>
    %776 = arith.subf %775, %774 : vector<4x16xf32>
    %777 = arith.mulf %776, %773 : vector<4x16xf32>
    %778 = vector.extract_strided_slice %767 {offsets = [0, 16], sizes = [4, 16], strides = [1, 1]} : vector<4x32xf32> to vector<4x16xf32>
    %779 = vector.extract_strided_slice %732 {offsets = [0, 16], sizes = [4, 16], strides = [1, 1]} : vector<4x32xf32> to vector<4x16xf32>
    %780 = arith.mulf %778, %779 : vector<4x16xf32>
    %781 = arith.addf %777, %780 : vector<4x16xf32>
    %782 = tpu.concatenate %758, %781 in 1 : vector<4x16xf32>, vector<4x16xf32> -> vector<4x32xf32>
    %cst_122 = arith.constant dense<0.000000e+00> : vector<4x96xf32>
    %783 = tpu.matmul %782, %430, %cst_122 {dimension_numbers = #tpu.dot_dimension_numbers<[1], [0], [0], [1], [0, 0, 1, 1], [], []>} : vector<4x32xf32>, vector<32x96xf32>, vector<4x96xf32> -> vector<4x96xf32>
    %784 = vector.broadcast %431 : vector<1x96xf32> to vector<4x96xf32>
    %785 = arith.addf %783, %784 : vector<4x96xf32>
    %786 = vector.extract_strided_slice %429 {offsets = [28, 0], sizes = [4, 48], strides = [1, 1]} : vector<32x96xf32> to vector<4x48xf32>
    %787 = vector.extract_strided_slice %786 {offsets = [0, 0], sizes = [4, 32], strides = [1, 1]} : vector<4x48xf32> to vector<4x32xf32>
    %788 = vector.extract_strided_slice %785 {offsets = [0, 0], sizes = [4, 32], strides = [1, 1]} : vector<4x96xf32> to vector<4x32xf32>
    %789 = arith.addf %787, %788 : vector<4x32xf32>
    %790 = arith.negf %789 : vector<4x32xf32>
    %791 = math.exp %790 : vector<4x32xf32>
    %cst_123 = arith.constant 1.000000e+00 : f32
    %792 = vector.broadcast %cst_123 : f32 to vector<4x32xf32>
    %793 = arith.addf %792, %791 : vector<4x32xf32>
    %794 = arith.divf %792, %793 : vector<4x32xf32>
    %795 = vector.extract_strided_slice %786 {offsets = [0, 32], sizes = [4, 16], strides = [1, 1]} : vector<4x48xf32> to vector<4x16xf32>
    %796 = vector.extract_strided_slice %794 {offsets = [0, 0], sizes = [4, 16], strides = [1, 1]} : vector<4x32xf32> to vector<4x16xf32>
    %797 = vector.extract_strided_slice %785 {offsets = [0, 32], sizes = [4, 16], strides = [1, 1]} : vector<4x96xf32> to vector<4x16xf32>
    %798 = arith.mulf %796, %797 : vector<4x16xf32>
    %799 = arith.addf %795, %798 : vector<4x16xf32>
    %800 = math.tanh %799 : vector<4x16xf32>
    %801 = vector.extract_strided_slice %794 {offsets = [0, 16], sizes = [4, 16], strides = [1, 1]} : vector<4x32xf32> to vector<4x16xf32>
    %cst_124 = arith.constant 1.000000e+00 : f32
    %802 = vector.broadcast %cst_124 : f32 to vector<4x16xf32>
    %803 = arith.subf %802, %801 : vector<4x16xf32>
    %804 = arith.mulf %803, %800 : vector<4x16xf32>
    %805 = vector.extract_strided_slice %794 {offsets = [0, 16], sizes = [4, 16], strides = [1, 1]} : vector<4x32xf32> to vector<4x16xf32>
    %806 = vector.extract_strided_slice %782 {offsets = [0, 0], sizes = [4, 16], strides = [1, 1]} : vector<4x32xf32> to vector<4x16xf32>
    %807 = arith.mulf %805, %806 : vector<4x16xf32>
    %808 = arith.addf %804, %807 : vector<4x16xf32>
    %809 = vector.extract_strided_slice %429 {offsets = [0, 48], sizes = [4, 48], strides = [1, 1]} : vector<32x96xf32> to vector<4x48xf32>
    %810 = vector.extract_strided_slice %809 {offsets = [0, 0], sizes = [4, 32], strides = [1, 1]} : vector<4x48xf32> to vector<4x32xf32>
    %811 = vector.extract_strided_slice %785 {offsets = [0, 48], sizes = [4, 32], strides = [1, 1]} : vector<4x96xf32> to vector<4x32xf32>
    %812 = arith.addf %810, %811 : vector<4x32xf32>
    %813 = arith.negf %812 : vector<4x32xf32>
    %814 = math.exp %813 : vector<4x32xf32>
    %cst_125 = arith.constant 1.000000e+00 : f32
    %815 = vector.broadcast %cst_125 : f32 to vector<4x32xf32>
    %816 = arith.addf %815, %814 : vector<4x32xf32>
    %817 = arith.divf %815, %816 : vector<4x32xf32>
    %818 = vector.extract_strided_slice %809 {offsets = [0, 32], sizes = [4, 16], strides = [1, 1]} : vector<4x48xf32> to vector<4x16xf32>
    %819 = vector.extract_strided_slice %817 {offsets = [0, 0], sizes = [4, 16], strides = [1, 1]} : vector<4x32xf32> to vector<4x16xf32>
    %820 = vector.extract_strided_slice %785 {offsets = [0, 80], sizes = [4, 16], strides = [1, 1]} : vector<4x96xf32> to vector<4x16xf32>
    %821 = arith.mulf %819, %820 : vector<4x16xf32>
    %822 = arith.addf %818, %821 : vector<4x16xf32>
    %823 = math.tanh %822 : vector<4x16xf32>
    %824 = vector.extract_strided_slice %817 {offsets = [0, 16], sizes = [4, 16], strides = [1, 1]} : vector<4x32xf32> to vector<4x16xf32>
    %cst_126 = arith.constant 1.000000e+00 : f32
    %825 = vector.broadcast %cst_126 : f32 to vector<4x16xf32>
    %826 = arith.subf %825, %824 : vector<4x16xf32>
    %827 = arith.mulf %826, %823 : vector<4x16xf32>
    %828 = vector.extract_strided_slice %817 {offsets = [0, 16], sizes = [4, 16], strides = [1, 1]} : vector<4x32xf32> to vector<4x16xf32>
    %829 = vector.extract_strided_slice %782 {offsets = [0, 16], sizes = [4, 16], strides = [1, 1]} : vector<4x32xf32> to vector<4x16xf32>
    %830 = arith.mulf %828, %829 : vector<4x16xf32>
    %831 = arith.addf %827, %830 : vector<4x16xf32>
    %832 = tpu.concatenate %808, %831 in 1 : vector<4x16xf32>, vector<4x16xf32> -> vector<4x32xf32>
    %c0_127 = arith.constant 0 : index
    %c0_128 = arith.constant 0 : index
    %833 = vector.load %arg9[%c0_127, %c0_128] : memref<4x32xf32, #tpu.memory_space<vmem>>, vector<4x32xf32>
    tpu.vector_store %arg9[%c0_127, %c0_128], %832 {strides = array<i32>} : memref<4x32xf32, #tpu.memory_space<vmem>>, vector<4x32xf32>,
    return
  }
}

</mosaic_0001>

<bundles_post_ra>
// kernel: tpu_custom_call.1
= control target key start
LH: loop header
LB: loop body
LE: loop exit
PB: predicated region body
PF: predicated region fallthrough
CT: control target
= control target key end

     0   :  { %14 = vsyncpa [#allocation4], 0  ;;  %s4145_s0 = inlined_call_operand.hbm [shape: f32[32,32], index: 0, kind: input, shape index: {}]   ;;  %s4146_s1 = inlined_call_operand.hbm [shape: f32[32,96], index: 1, kind: input, shape index: {}]   ;;  %s4147_s2 = inlined_call_operand.hbm [shape: f32[32,96], index: 2, kind: input, shape index: {}]   ;;  %s4148_s3 = inlined_call_operand.vmem [shape: f32[1,96], index: 3, kind: input, shape index: {}]   ;;  %s4149_s4 = inlined_call_operand.vmem [shape: f32[1,96], index: 4, kind: input, shape index: {}]   ;;  %s4150_s5 = inlined_call_operand.hbm [shape: f32[32,96], index: 5, kind: input, shape index: {}]   ;;  %s4151_s6 = inlined_call_operand.hbm [shape: f32[32,96], index: 6, kind: input, shape index: {}]   ;;  %s4152_s7 = inlined_call_operand.vmem [shape: f32[1,96], index: 7, kind: input, shape index: {}]   ;;  %s4153_s8 = inlined_call_operand.vmem [shape: f32[1,96], index: 8, kind: input, shape index: {}]   ;;  %s4154_s9 = inlined_call_operand.hbm [shape: f32[4,32], index: 9, kind: output, shape index: {}]  }
   0x1   :  { %15 = vsyncpa [#allocation7], 0 }
   0x2   :  { %16 = vsyncpa [#allocation10], 0 }
   0x3   :  { %17 = vsyncpa [#allocation5], 0  ;;  %s3497_s30 = smov [#allocation6]   ;;  %s3498_s11 = smov [#allocation9]  }
   0x4   :  { %s35_s10 = sshll.u32 %s3497_s30, 4  ;;  %s63_s12 = sshll.u32 %s3498_s11, 4  ;;  %s36_s10 = int_to_ptr.vmem [resolvable:$true] %s35_s10  ;;  %s3564_s12 = int_to_ptr.vmem [resolvable:$true] %s63_s12 }
   0x5   :  { %s3357_s15 = scalar_lea.hbm %s4146_s1, 512 }
   0x6   :  { %p3358_p0 = scmp.ne.s32.totalorder %s4146_s1, %s3357_s15  ;;  %p3361_p1 = scmp.lt.u32.totalorder %s3357_s15, %s4146_s1 }
   0x8   :  { %p3363_p2 = pnand %p3361_p1, %p3358_p0 }
   0xa   :  { %3366 = shalt.err (!%p3363_p2)
}
   0xb   :  { %s3367_s20 = scalar_lea.vmem %s36_s10, 512  ;;  %p3372_p4 = scmp.lt.s32.totalorder %s36_s10, %s36_s10 }
   0xc   :  { %p3368_p3 = scmp.ne.s32.totalorder %s36_s10, %s3367_s20  ;;  %p3373_p5 = scmp.lt.s32.totalorder %s3367_s20, %s3367_s20 }
   0xe   :  { %p3374_p6 = por %p3373_p5, %p3372_p4 }
  0x10   :  { %p3375_p7 = pnand %p3374_p6, %p3368_p3 }
  0x12   :  { %3378 = shalt.err (!%p3375_p7)
}
  0x13   :  { %s3499_s21 = smov 128   ;;  %s3500_s22 = smov 8  }
  0x14   :  { %41 = dma.hbm_to_vmem [thread:$0]  %s4146_s1, 512, %s36_s10, [#allocation7], %s3499_s21, %s3499_s21, %s3500_s22  }
  0x15   :  { %s3379_s27 = scalar_lea.hbm %s4150_s5, 512 }
  0x16   :  { %p3380_p8 = scmp.ne.s32.totalorder %s4150_s5, %s3379_s27  ;;  %p3383_p9 = scmp.lt.u32.totalorder %s3379_s27, %s4150_s5 }
  0x18   :  { %p3385_p10 = pnand %p3383_p9, %p3380_p8 }
  0x1a   :  { %3388 = shalt.err (!%p3385_p10)
}
  0x1b   :  { %s3389_s13 = scalar_lea.vmem %s3564_s12, 512  ;;  %p3394_p12 = scmp.lt.s32.totalorder %s3564_s12, %s3564_s12 }
  0x1c   :  { %p3390_p11 = scmp.ne.s32.totalorder %s3564_s12, %s3389_s13  ;;  %p3395_p13 = scmp.lt.s32.totalorder %s3389_s13, %s3389_s13 }
  0x1e   :  { %p3396_p0 = por %p3395_p13, %p3394_p12 }
  0x20   :  { %p3397_p1 = pnand %p3396_p0, %p3390_p11 }
  0x22   :  { %3400 = shalt.err (!%p3397_p1)
}
  0x23   :  { %69 = dma.hbm_to_vmem [thread:$0]  %s4150_s5, 512, %s3564_s12, [#allocation10], %s3499_s21, %s3499_s21, %s3500_s22  }
  0x24   :  { %s3501_s14 = smov [#allocation3]   ;;  %s3502_s16 = smov [#allocation8]  }
  0x25   :  { %s23_s15 = sshll.u32 %s3501_s14, 4  ;;  %s47_s17 = sshll.u32 %s3502_s16, 4  ;;  %s24_s15 = int_to_ptr.vmem [resolvable:$true] %s23_s15  ;;  %s3601_s17 = int_to_ptr.vmem [resolvable:$true] %s47_s17 }
  0x26   :  { %s3401_s20 = scalar_lea.hbm %s4145_s0, 512 }
  0x27   :  { %p3402_p2 = scmp.ne.s32.totalorder %s4145_s0, %s3401_s20  ;;  %p3405_p3 = scmp.lt.u32.totalorder %s3401_s20, %s4145_s0 }
  0x29   :  { %p3407_p4 = pnand %p3405_p3, %p3402_p2 }
  0x2b   :  { %3410 = shalt.err (!%p3407_p4)
}
  0x2c   :  { %s3411_s5 = scalar_lea.vmem %s24_s15, 512  ;;  %p3416_p6 = scmp.lt.s32.totalorder %s24_s15, %s24_s15 }
  0x2d   :  { %p3412_p5 = scmp.ne.s32.totalorder %s24_s15, %s3411_s5  ;;  %p3417_p7 = scmp.lt.s32.totalorder %s3411_s5, %s3411_s5 }
  0x2f   :  { %p3418_p8 = por %p3417_p7, %p3416_p6 }
  0x31   :  { %p3419_p9 = pnand %p3418_p8, %p3412_p5 }
  0x33   :  { %3422 = shalt.err (!%p3419_p9)
}
  0x34   :  { %29 = dma.hbm_to_vmem [thread:$0]  %s4145_s0, 512, %s24_s15, [#allocation4], %s3499_s21, %s3499_s21, %s3500_s22  }
  0x35   :  { %s3423_s30 = scalar_lea.hbm %s4147_s2, 512 }
  0x36   :  { %p3424_p10 = scmp.ne.s32.totalorder %s4147_s2, %s3423_s30  ;;  %p3427_p11 = scmp.lt.u32.totalorder %s3423_s30, %s4147_s2 }
  0x38   :  { %p3429_p12 = pnand %p3427_p11, %p3424_p10 }
  0x3a   :  { %3432 = shalt.err (!%p3429_p12)
}
  0x3b   :  { %s3433_s14 = scalar_lea.vmem %s3601_s17, 512  ;;  %p3438_p0 = scmp.lt.s32.totalorder %s3601_s17, %s3601_s17 }
  0x3c   :  { %p3434_p13 = scmp.ne.s32.totalorder %s3601_s17, %s3433_s14  ;;  %p3439_p1 = scmp.lt.s32.totalorder %s3433_s14, %s3433_s14 }
  0x3e   :  { %p3440_p2 = por %p3439_p1, %p3438_p0 }
  0x40   :  { %p3441_p3 = pnand %p3440_p2, %p3434_p13 }
  0x42   :  { %3444 = shalt.err (!%p3441_p3)
}
  0x43   :  { %53 = dma.hbm_to_vmem [thread:$0]  %s4147_s2, 512, %s3601_s17, [#allocation7], %s3499_s21, %s3499_s21, %s3500_s22  }
  0x44   :  { %s3503_s16 = smov [#allocation11]   ;;  %s3445_s23 = scalar_lea.hbm %s4151_s6, 512 }
  0x45   :  { %s75_s18 = sshll.u32 %s3503_s16, 4  ;;  %p3446_p4 = scmp.ne.s32.totalorder %s4151_s6, %s3445_s23  ;;  %s76_s18 = int_to_ptr.vmem [resolvable:$true] %s75_s18 }
  0x46   :  { %p3449_p5 = scmp.lt.u32.totalorder %s3445_s23, %s4151_s6 }
  0x48   :  { %p3451_p6 = pnand %p3449_p5, %p3446_p4 }
  0x4a   :  { %3454 = shalt.err (!%p3451_p6)
}
  0x4b   :  { %s3455_s12 = scalar_lea.vmem %s76_s18, 512  ;;  %p3460_p8 = scmp.lt.s32.totalorder %s76_s18, %s76_s18 }
  0x4c   :  { %p3456_p7 = scmp.ne.s32.totalorder %s76_s18, %s3455_s12  ;;  %p3461_p9 = scmp.lt.s32.totalorder %s3455_s12, %s3455_s12 }
  0x4e   :  { %p3462_p10 = por %p3461_p9, %p3460_p8 }
  0x50   :  { %p3463_p11 = pnand %p3462_p10, %p3456_p7 }
  0x52   :  { %3466 = shalt.err (!%p3463_p11)
}
  0x53   :  { %81 = dma.hbm_to_vmem [thread:$0]  %s4151_s6, 512, %s76_s18, [#allocation10], %s3499_s21, %s3499_s21, %s3500_s22  }
  0x54   :  { %3489 = dma.done.wait [#allocation4], 512  }
  0x55   :  { %3490 = vsyncadd [#allocation4], 4294966784 }
  0x56   :  { %3491 = dma.done.wait [#allocation7], 1024  }
  0x57   :  { %3492 = vsyncadd [#allocation7], 4294966272 }
  0x58   :  { %3493 = dma.done.wait [#allocation10], 1024  }
  0x59   :  { %3494 = vsyncadd [#allocation10], 4294966272  ;;  %v3504_v0 = vmov 0.0|0.0   ;;  %vm3505_vm0 = vmmov 0   ;;  %v3506_v1 = vmov 0.0   ;;  %v105_v2 = vld [vmem:[#allocation6] sm:$0xff] }
  0x5a   :  { %3044 = vmatprep.subr.bf16.mxu1 %v3504_v0  ;;  %2854 = vmatprep.mubr.msk.f32.mxu1 %vm3505_vm0, %v3506_v1  ;;  %v106_v3 = vld [vmem:[#allocation6 + $0x8] sm:$0xff]  ;;  %v214_v4 = vld [vmem:[#allocation8] sm:$0xff]  ;;  %vm116_vm1 = vcmask 261120   ;;  %v107_v7 = vld [vmem:[#allocation6 + $0x10] sm:$0xff]  ;;  %s3507_s28 = smov 96   ;;  %s3510_s29 = smov 80  }
  0x5b   :  { %v3036_v5 = vpack.c.bf16 %v106_v3, %v105_v2  ;;  %v215_v6 = vld [vmem:[#allocation8 + $0x8] sm:$0xff]  ;;  %v108_v8 = vld [vmem:[#allocation6 + $0x18] sm:$0xff]  ;;  %v216_v11 = vld [vmem:[#allocation8 + $0x10] sm:$0xff]  ;;  %vm360_vm2 = vcmask 130048   ;;  %vm362_vm3 = vcmask 125952   ;;  %s3511_s30 = smov 48  }
  0x5c   :  { %v3656_v9 = vpack.c.bf16 %v215_v6, %v214_v4  ;;  %v3040_v10 = vpack.c.bf16 %v108_v8, %v107_v7  ;;  %v217_v12 = vld [vmem:[#allocation8 + $0x18] sm:$0xff]  ;;  %v101_v13 = vld [vmem:[#allocation3] sm:$0xff]  ;;  %v102_v15 = vld [vmem:[#allocation3 + $0x8] sm:$0xff]  ;;  %s3512_s11 = smov 16   ;;  %vm512_vm4 = vcmask 130052   ;;  %vm517_vm5 = vcmask 257152  }
  0x5d   :  { %3037 = vmatprep.subr.bf16.mxu0 %v3036_v5  ;;  %2840 = vmatprep.mubr.msk.f32.mxu0 %vm116_vm1, %v101_v13  ;;  %v3660_v14 = vpack.c.bf16 %v217_v12, %v216_v11  ;;  %v103_v16 = vld [vmem:[#allocation3 + $0x10] sm:$0xff]  ;;  %v104_v17 = vld [vmem:[#allocation3 + $0x18] sm:$0xff]  ;;  %v3685_v18 = vld [vmem:[%s4149_s4] ss:$0 sm:$0xff]  ;;  %s3509_s4 = smov 112   ;;  %vm367_vm6 = vcmask 261252  }
  0x5e   :  { %3046 = vmatpush3.bf16.msra.mxu1 %v3656_v9  ;;  %3039 = vmatpush3.bf16.msra.mxu0 %v3036_v5  ;;  %v2678_v21 = vld [vmem:[%s4148_s3] ss:$0 sm:$0xff]  ;;  %s3508_s3 = smov 32   ;;  %vm2659_vm7 = vcmask 261124  }
  0x5f   :  { %3047 = vmatprep.subr.bf16.mxu1 %v3504_v0  ;;  %3041 = vmatprep.subr.bf16.mxu0 %v3040_v10 }
  0x62   :  { %3049 = vmatpush3.bf16.msra.mxu1 %v3660_v14  ;;  %3043 = vmatpush3.bf16.msra.mxu0 %v3040_v10 }
  0x63   :  { %3050 = vmatprep.subr.bf16.mxu0 %v3504_v0  ;;  %3056 = vmatprep.subr.bf16.mxu1 %v3504_v0 }
  0x65   :  { %2855 = vmatmul.mubr.f32.vlgmr.msra.gmra.mrb[0].mxu1 %v3506_v1  ;;  %2841 = vmatmul.mubr.msk.f32.vlgmr.msra.gmra.mrb[0].mxu0 %vm116_vm1, %v102_v15 }
  0x66   :  { %2843 = vmatprep.mubr.msk.f32.mxu0 %vm116_vm1, %v103_v16  ;;  %3052 = vmatpush3.bf16.msra.mxu0 %v3656_v9 }
  0x67   :  { %3053 = vmatprep.subr.bf16.mxu0 %v3504_v0  ;;  %3058 = vmatpush3.bf16.msra.mxu1 %v3656_v9 }
  0x68   :  { %3059 = vmatprep.subr.bf16.mxu1 %v3504_v0  ;;  %2876 = vmatprep.mubr.msk.f32.mxu1 %vm3505_vm0, %v3506_v1 }
  0x69   :  { %2844 = vmatmul.mubr.msk.f32.gmra.mrb[2].mxu0 %vm116_vm1, %v104_v17 }
  0x6a   :  { %3055 = vmatpush3.bf16.msra.mxu0 %v3660_v14  ;;  %2865 = vmatprep.mubr.msk.f32.mxu0 %vm3505_vm0, %v3506_v1 }
  0x6b   :  { %3061 = vmatpush3.bf16.msra.mxu1 %v3660_v14  ;;  %3062 = vmatprep.subr.bf16.mxu0 %v3504_v0 }
  0x6c   :  { %3068 = vmatprep.subr.bf16.mxu1 %v3504_v0 }
 0x138   :  { %v294_v19 = vpop.f32.mrb[0].mxu1  ;;  %v2842_v20 = vpop.f32.mrb[0].mxu0 }
 0x139   :  { %v295_v22 = vadd.f32 %v3685_v18, %v294_v19  ;;  %v3691_v23 = vadd.f32 %v2842_v20, %v2678_v21  ;;  %v2856_v24 = vpop.f32.mrb[1].mxu1  ;;  %v195_v25 = vpop.f32.mrb[1].mxu0 }
 0x13a   :  { %v3699_v31 = vadd.f32 %v2678_v21, %v195_v25 }
 0x13b   :  { %v324_v26 = vrot.slane %v295_v22, 4 }
 0x13c   :  { %v2845_v27 = vpop.f32.mrb[2].mxu0  ;;  %v298_v34 = vadd.f32 %v295_v22, %v3699_v31 }
 0x13d   :  { %333 = vrot.lane.b32.xlu0 %v324_v26, %s3507_s28  ;;  %v205_v28 = vpop.f32.mrb[3].mxu0  ;;  %v3697_v30 = vadd.f32 %v2845_v27, %v2678_v21 }
 0x13e   :  { %v3694_v29 = vadd.f32 %v2678_v21, %v205_v28  ;;  %v2684_v35 = vmul.f32 -1.442695, %v298_v34 }
 0x13f   :  { %v326_v32 = vadd.f32 %v324_v26, %v3697_v30 }
 0x141   :  { %306 = vrot.lane.b32.xlu0 %v295_v22, %s3507_s28  ;;  %v2685_v33 = vmul.f32 -1.442695, %v326_v32 }
 0x143   :  { %3165 = vpow2.f32 %v2685_v33 }
 0x144   :  { %3167 = vpow2.f32 %v2684_v35 }
 0x14d   :  { %v3166_v36 = vpop.eup %3165 }
 0x14e   :  { %v330_v37 = vadd.f32 1.0, %v3166_v36  ;;  %v3168_v38 = vpop.eup %3167 }
 0x14f   :  { %v302_v39 = vadd.f32 1.0, %v3168_v38 }
 0x150   :  { %3169 = vrcp.f32 %v330_v37 }
 0x151   :  { %3171 = vrcp.f32 %v302_v39 }
 0x15a   :  { %v3170_v40 = vpop.eup %3169 }
 0x15b   :  { %v3172_v43 = vpop.eup %3171  ;;  %v343_v52 = vsub.f32 1.0, %v3170_v40  ;;  %v349_v54 = vmul.f32 0.0, %v3170_v40 }
 0x15c   :  { %v316_v57 = vsub.f32 1.0, %v3172_v43  ;;  %v322_v59 = vmul.f32 0.0, %v3172_v43 }
 0x1af   :  { %v334_v41 = vpop.permute.xlu0 %333 }
 0x1b0   :  { %v336_v42 = vmul.f32 %v3170_v40, %v334_v41 }
 0x1b2   :  { %338 = vrot.lane.b32.xlu1 %v336_v42, %s3508_s3 }
 0x1b3   :  { %v307_v44 = vpop.permute.xlu0 %306 }
 0x1b4   :  { %v309_v45 = vmul.f32 %v3172_v43, %v307_v44 }
 0x1b6   :  { %311 = vrot.lane.b32.xlu1 %v309_v45, %s3508_s3 }
 0x224   :  { %v339_v46 = vpop.permute.xlu1 %338 }
 0x225   :  { %v341_v47 = vadd.f32 %v339_v46, %v3697_v30 }
 0x227   :  { %3173 = vtanh.f32 %v341_v47 }
 0x228   :  { %v312_v48 = vpop.permute.xlu1 %311 }
 0x229   :  { %v314_v49 = vadd.f32 %v312_v48, %v3699_v31 }
 0x22b   :  { %3175 = vtanh.f32 %v314_v49 }
 0x231   :  { %v3174_v50 = vpop.eup %3173 }
 0x232   :  { %345 = vrot.lane.b32.xlu0 %v3174_v50, %s3509_s4 }
 0x235   :  { %v3176_v51 = vpop.eup %3175 }
 0x236   :  { %318 = vrot.lane.b32.xlu1 %v3176_v51, %s3509_s4 }
 0x2a4   :  { %v346_v53 = vpop.permute.xlu0 %345 }
 0x2a5   :  { %v348_v55 = vmul.f32 %v346_v53, %v343_v52 }
 0x2a7   :  { %v3709_v56 = vadd.f32 %v349_v54, %v348_v55 }
 0x2a8   :  { %v319_v58 = vpop.permute.xlu1 %318 }
 0x2a9   :  { %v321_v60 = vmul.f32 %v319_v58, %v316_v57  ;;  %v356_v61 = vrot.slane %v3709_v56, 4 }
 0x2ab   :  { %v323_v62 = vadd.f32 %v322_v59, %v321_v60  ;;  %357 = vrot.lane.b32.xlu1 %v356_v61, %s3510_s29 }
 0x2ad   :  { %352 = vrot.lane.b32.xlu0 %v323_v62, %s3509_s4 }
 0x31d   :  { %v358_v63 = vpop.permute.xlu1 %357 }
 0x31f   :  { %v353_v2 = vpop.permute.xlu0 %352 }
 0x320   :  { %v361_v3 = vsel %vm360_vm2, %v353_v2, %v358_v63  ;;  %363 = vst.msk [vmem:[#allocation2] sm:$0xf] %vm362_vm3, %v353_v2 }
 0x321   :  { %2866 = vmatmul.mubr.msk.f32.vlgmr.msra.gmra.mrb[4].mxu0 %vm116_vm1, %v361_v3  ;;  %v468_v26 = vrot.slane %v361_v3, 4 }
 0x322   :  { %3064 = vmatpush3.bf16.msra.mxu0 %v3656_v9  ;;  %2887 = vmatprep.mubr.msk.f32.mxu0 %vm3505_vm0, %v3506_v1 }
 0x323   :  { %3065 = vmatprep.subr.bf16.mxu0 %v3504_v0 }
 0x326   :  { %3067 = vmatpush3.bf16.msra.mxu0 %v3660_v14 }
 0x327   :  { %3074 = vmatprep.subr.bf16.mxu0 %v3504_v0 }
 0x3f4   :  { %v438_v4 = vpop.f32.mrb[4].mxu0 }
 0x3f5   :  { %v439_v5 = vadd.f32 %v3685_v18, %v438_v4  ;;  %v2867_v6 = vpop.f32.mrb[5].mxu0 }
 0x3f7   :  { %481 = vrot.lane.b32.xlu0 %v439_v5, %s3507_s28  ;;  %v443_v7 = vrot.slane %v439_v5, 4  ;;  %v474_v8 = vadd.f32 %v439_v5, %v3697_v30 }
 0x3f9   :  { %452 = vrot.lane.b32.xlu1 %v443_v7, %s3507_s28  ;;  %v445_v10 = vadd.f32 %v443_v7, %v3699_v31  ;;  %v2688_v11 = vmul.f32 -1.442695, %v474_v8 }
 0x3fb   :  { %v2687_v12 = vmul.f32 -1.442695, %v445_v10  ;;  %3177 = vpow2.f32 %v2688_v11 }
 0x3fd   :  { %3179 = vpow2.f32 %v2687_v12 }
 0x405   :  { %v3178_v13 = vpop.eup %3177 }
 0x406   :  { %v478_v16 = vadd.f32 1.0, %v3178_v13 }
 0x407   :  { %v3180_v15 = vpop.eup %3179 }
 0x408   :  { %v449_v17 = vadd.f32 1.0, %v3180_v15  ;;  %3181 = vrcp.f32 %v478_v16 }
 0x40a   :  { %3183 = vrcp.f32 %v449_v17 }
 0x412   :  { %v3182_v19 = vpop.eup %3181 }
 0x413   :  { %v491_v37 = vsub.f32 1.0, %v3182_v19 }
 0x414   :  { %v3184_v22 = vpop.eup %3183 }
 0x415   :  { %v462_v43 = vsub.f32 1.0, %v3184_v22 }
 0x469   :  { %v482_v20 = vpop.permute.xlu0 %481 }
 0x46a   :  { %v484_v21 = vmul.f32 %v3182_v19, %v482_v20 }
 0x46b   :  { %v453_v24 = vpop.permute.xlu1 %452 }
 0x46c   :  { %v455_v25 = vmul.f32 %v3184_v22, %v453_v24  ;;  %486 = vrot.lane.b32.xlu0 %v484_v21, %s3508_s3 }
 0x46e   :  { %457 = vrot.lane.b32.xlu1 %v455_v25, %s3508_s3 }
 0x472   :  { %497 = vrot.lane.b32.xlu1 %v361_v3, %s3511_s30 }
 0x476   :  { %469 = vrot.lane.b32.xlu1 %v468_v26, %s3512_s11 }
 0x4de   :  { %v487_v27 = vpop.permute.xlu0 %486 }
 0x4df   :  { %v489_v28 = vadd.f32 %v487_v27, %v3697_v30 }
 0x4e0   :  { %v458_v32 = vpop.permute.xlu1 %457 }
 0x4e1   :  { %3185 = vtanh.f32 %v489_v28  ;;  %v460_v33 = vadd.f32 %v458_v32, %v3699_v31 }
 0x4e3   :  { %3187 = vtanh.f32 %v460_v33 }
 0x4e4   :  { %v498_v36 = vpop.permute.xlu1 %497 }
 0x4e5   :  { %v500_v39 = vmul.f32 %v3182_v19, %v498_v36 }
 0x4e8   :  { %v470_v41 = vpop.permute.xlu1 %469 }
 0x4e9   :  { %v472_v45 = vmul.f32 %v3184_v22, %v470_v41 }
 0x4eb   :  { %v3186_v34 = vpop.eup %3185 }
 0x4ec   :  { %493 = vrot.lane.b32.xlu0 %v3186_v34, %s3509_s4 }
 0x4ed   :  { %v3188_v35 = vpop.eup %3187 }
 0x4f0   :  { %464 = vrot.lane.b32.xlu0 %v3188_v35, %s3509_s4 }
 0x55e   :  { %v494_v38 = vpop.permute.xlu0 %493 }
 0x55f   :  { %v496_v40 = vmul.f32 %v494_v38, %v491_v37 }
 0x561   :  { %v3736_v42 = vadd.f32 %v500_v39, %v496_v40 }
 0x562   :  { %v465_v44 = vpop.permute.xlu0 %464 }
 0x563   :  { %v467_v46 = vmul.f32 %v465_v44, %v462_v43  ;;  %v507_v47 = vrot.slane %v3736_v42, 4 }
 0x565   :  { %v473_v48 = vadd.f32 %v472_v45, %v467_v46  ;;  %508 = vrot.lane.b32.xlu1 %v507_v47, %s3510_s29 }
 0x567   :  { %503 = vrot.lane.b32.xlu0 %v473_v48, %s3509_s4 }
 0x5d7   :  { %v509_v49 = vpop.permute.xlu1 %508 }
 0x5d9   :  { %v504_v50 = vpop.permute.xlu0 %503 }
 0x5da   :  { %v511_v51 = vsel %vm360_vm2, %v504_v50, %v509_v49  ;;  %513 = vst.msk [vmem:[#allocation2] sm:$0xf0] %vm512_vm4, %v504_v50 }
 0x5db   :  { %v520_v52 = vrot.slane %v511_v51, 4 }
 0x5dd   :  { %2877 = vmatmul.mubr.msk.f32.vlgmr.msra.gmra.mrb[2].mxu1 %vm116_vm1, %v520_v52 }
 0x5de   :  { %3070 = vmatpush3.bf16.msra.mxu1 %v3656_v9  ;;  %2898 = vmatprep.mubr.msk.f32.mxu1 %vm3505_vm0, %v3506_v1 }
 0x5df   :  { %3071 = vmatprep.subr.bf16.mxu1 %v3504_v0 }
 0x5e2   :  { %3073 = vmatpush3.bf16.msra.mxu1 %v3660_v14 }
 0x5e3   :  { %3080 = vmatprep.subr.bf16.mxu1 %v3504_v0 }
 0x6b0   :  { %v589_v53 = vpop.f32.mrb[2].mxu1 }
 0x6b1   :  { %v590_v54 = vadd.f32 %v3685_v18, %v589_v53  ;;  %v2878_v55 = vpop.f32.mrb[3].mxu1 }
 0x6b3   :  { %601 = vrot.lane.b32.xlu1 %v590_v54, %s3507_s28  ;;  %v622_v57 = vrot.slane %v590_v54, 4  ;;  %v593_v58 = vadd.f32 %v590_v54, %v3691_v23 }
 0x6b5   :  { %631 = vrot.lane.b32.xlu0 %v622_v57, %s3507_s28  ;;  %v624_v59 = vadd.f32 %v622_v57, %v3694_v29  ;;  %v2690_v60 = vmul.f32 -1.442695, %v593_v58 }
 0x6b7   :  { %v2691_v61 = vmul.f32 -1.442695, %v624_v59  ;;  %3189 = vpow2.f32 %v2690_v60 }
 0x6b9   :  { %3191 = vpow2.f32 %v2691_v61 }
 0x6c1   :  { %v3190_v62 = vpop.eup %3189 }
 0x6c2   :  { %v597_v2 = vadd.f32 1.0, %v3190_v62 }
 0x6c3   :  { %v3192_v63 = vpop.eup %3191 }
 0x6c4   :  { %v628_v3 = vadd.f32 1.0, %v3192_v63  ;;  %3193 = vrcp.f32 %v597_v2 }
 0x6c6   :  { %3195 = vrcp.f32 %v628_v3 }
 0x6ce   :  { %v3194_v4 = vpop.eup %3193 }
 0x6cf   :  { %v611_v27 = vsub.f32 1.0, %v3194_v4 }
 0x6d0   :  { %v3196_v7 = vpop.eup %3195 }
 0x6d1   :  { %v641_v20 = vsub.f32 1.0, %v3196_v7 }
 0x725   :  { %v602_v5 = vpop.permute.xlu1 %601 }
 0x726   :  { %v604_v6 = vmul.f32 %v3194_v4, %v602_v5 }
 0x727   :  { %v632_v8 = vpop.permute.xlu0 %631 }
 0x728   :  { %v634_v10 = vmul.f32 %v3196_v7, %v632_v8  ;;  %606 = vrot.lane.b32.xlu1 %v604_v6, %s3508_s3 }
 0x72a   :  { %636 = vrot.lane.b32.xlu0 %v634_v10, %s3508_s3 }
 0x72c   :  { %647 = vrot.lane.b32.xlu1 %v511_v51, %s3511_s30 }
 0x730   :  { %617 = vrot.lane.b32.xlu1 %v520_v52, %s3512_s11 }
 0x79a   :  { %v607_v11 = vpop.permute.xlu1 %606 }
 0x79b   :  { %v609_v15 = vadd.f32 %v607_v11, %v3691_v23 }
 0x79c   :  { %v637_v12 = vpop.permute.xlu0 %636 }
 0x79d   :  { %v639_v13 = vadd.f32 %v637_v12, %v3694_v29 }
 0x79e   :  { %v648_v19 = vpop.permute.xlu1 %647 }
 0x79f   :  { %3197 = vtanh.f32 %v639_v13  ;;  %v650_v22 = vmul.f32 %v3196_v7, %v648_v19 }
 0x7a0   :  { %3199 = vtanh.f32 %v609_v15 }
 0x7a2   :  { %v618_v25 = vpop.permute.xlu1 %617 }
 0x7a3   :  { %v620_v32 = vmul.f32 %v3194_v4, %v618_v25 }
 0x7a9   :  { %v3198_v16 = vpop.eup %3197 }
 0x7aa   :  { %643 = vrot.lane.b32.xlu0 %v3198_v16, %s3509_s4  ;;  %v3200_v17 = vpop.eup %3199 }
 0x7ae   :  { %613 = vrot.lane.b32.xlu0 %v3200_v17, %s3509_s4 }
 0x81c   :  { %v644_v21 = vpop.permute.xlu0 %643 }
 0x81d   :  { %v646_v24 = vmul.f32 %v644_v21, %v641_v20 }
 0x81f   :  { %v3763_v26 = vadd.f32 %v650_v22, %v646_v24 }
 0x820   :  { %v614_v28 = vpop.permute.xlu0 %613 }
 0x821   :  { %v616_v33 = vmul.f32 %v614_v28, %v611_v27  ;;  %v657_v34 = vrot.slane %v3763_v26, 4 }
 0x823   :  { %v621_v35 = vadd.f32 %v620_v32, %v616_v33  ;;  %658 = vrot.lane.b32.xlu1 %v657_v34, %s3510_s29 }
 0x825   :  { %653 = vrot.lane.b32.xlu0 %v621_v35, %s3509_s4 }
 0x895   :  { %v659_v36 = vpop.permute.xlu1 %658 }
 0x897   :  { %v654_v37 = vpop.permute.xlu0 %653 }
 0x898   :  { %v661_v38 = vsel %vm360_vm2, %v654_v37, %v659_v36  ;;  %662 = vst.msk [vmem:[#allocation2 + $0x8] sm:$0xf] %vm362_vm3, %v654_v37 }
 0x899   :  { %2888 = vmatmul.mubr.msk.f32.vlgmr.msra.gmra.mrb[6].mxu0 %vm116_vm1, %v661_v38  ;;  %v766_v59 = vrot.slane %v661_v38, 4 }
 0x89a   :  { %3076 = vmatpush3.bf16.msra.mxu0 %v3656_v9  ;;  %2909 = vmatprep.mubr.msk.f32.mxu0 %vm3505_vm0, %v3506_v1 }
 0x89b   :  { %3077 = vmatprep.subr.bf16.mxu0 %v3504_v0 }
 0x89e   :  { %3079 = vmatpush3.bf16.msra.mxu0 %v3660_v14 }
 0x89f   :  { %3086 = vmatprep.subr.bf16.mxu0 %v3504_v0 }
 0x96c   :  { %v736_v39 = vpop.f32.mrb[6].mxu0 }
 0x96d   :  { %v737_v40 = vadd.f32 %v3685_v18, %v736_v39  ;;  %v2889_v41 = vpop.f32.mrb[7].mxu0 }
 0x96f   :  { %779 = vrot.lane.b32.xlu0 %v737_v40, %s3507_s28  ;;  %v741_v43 = vrot.slane %v737_v40, 4  ;;  %v772_v44 = vadd.f32 %v737_v40, %v3694_v29 }
 0x971   :  { %750 = vrot.lane.b32.xlu1 %v741_v43, %s3507_s28  ;;  %v743_v45 = vadd.f32 %v741_v43, %v3691_v23  ;;  %v2694_v46 = vmul.f32 -1.442695, %v772_v44 }
 0x973   :  { %v2693_v47 = vmul.f32 -1.442695, %v743_v45  ;;  %3201 = vpow2.f32 %v2694_v46 }
 0x975   :  { %3203 = vpow2.f32 %v2693_v47 }
 0x97d   :  { %v3202_v48 = vpop.eup %3201 }
 0x97e   :  { %v776_v50 = vadd.f32 1.0, %v3202_v48 }
 0x97f   :  { %v3204_v49 = vpop.eup %3203 }
 0x980   :  { %v747_v51 = vadd.f32 1.0, %v3204_v49  ;;  %3205 = vrcp.f32 %v776_v50 }
 0x982   :  { %3207 = vrcp.f32 %v747_v51 }
 0x98a   :  { %v3206_v52 = vpop.eup %3205 }
 0x98b   :  { %v789_v5 = vsub.f32 1.0, %v3206_v52 }
 0x98c   :  { %v3208_v55 = vpop.eup %3207 }
 0x98d   :  { %v760_v12 = vsub.f32 1.0, %v3208_v55 }
 0x9e1   :  { %v780_v53 = vpop.permute.xlu0 %779 }
 0x9e2   :  { %v782_v54 = vmul.f32 %v3206_v52, %v780_v53 }
 0x9e3   :  { %v751_v57 = vpop.permute.xlu1 %750 }
 0x9e4   :  { %v753_v58 = vmul.f32 %v3208_v55, %v751_v57  ;;  %784 = vrot.lane.b32.xlu0 %v782_v54, %s3508_s3 }
 0x9e6   :  { %755 = vrot.lane.b32.xlu1 %v753_v58, %s3508_s3 }
 0x9ea   :  { %795 = vrot.lane.b32.xlu1 %v661_v38, %s3511_s30 }
 0x9ee   :  { %767 = vrot.lane.b32.xlu1 %v766_v59, %s3512_s11 }
 0xa56   :  { %v785_v60 = vpop.permute.xlu0 %784 }
 0xa57   :  { %v787_v61 = vadd.f32 %v785_v60, %v3694_v29 }
 0xa58   :  { %v756_v62 = vpop.permute.xlu1 %755 }
 0xa59   :  { %3209 = vtanh.f32 %v787_v61  ;;  %v758_v63 = vadd.f32 %v756_v62, %v3691_v23 }
 0xa5b   :  { %3211 = vtanh.f32 %v758_v63 }
 0xa5c   :  { %v796_v4 = vpop.permute.xlu1 %795 }
 0xa5d   :  { %v798_v7 = vmul.f32 %v3206_v52, %v796_v4 }
 0xa60   :  { %v768_v10 = vpop.permute.xlu1 %767 }
 0xa61   :  { %v770_v15 = vmul.f32 %v3208_v55, %v768_v10 }
 0xa63   :  { %v3210_v2 = vpop.eup %3209 }
 0xa64   :  { %791 = vrot.lane.b32.xlu0 %v3210_v2, %s3509_s4 }
 0xa65   :  { %v3212_v3 = vpop.eup %3211 }
 0xa68   :  { %762 = vrot.lane.b32.xlu0 %v3212_v3, %s3509_s4 }
 0xad6   :  { %v792_v6 = vpop.permute.xlu0 %791 }
 0xad7   :  { %v794_v8 = vmul.f32 %v792_v6, %v789_v5 }
 0xad9   :  { %v3790_v11 = vadd.f32 %v798_v7, %v794_v8 }
 0xada   :  { %v763_v13 = vpop.permute.xlu0 %762 }
 0xadb   :  { %v765_v16 = vmul.f32 %v763_v13, %v760_v12  ;;  %v805_v17 = vrot.slane %v3790_v11, 4 }
 0xadd   :  { %v771_v19 = vadd.f32 %v770_v15, %v765_v16  ;;  %806 = vrot.lane.b32.xlu1 %v805_v17, %s3510_s29 }
 0xadf   :  { %801 = vrot.lane.b32.xlu0 %v771_v19, %s3509_s4 }
 0xb4f   :  { %v807_v20 = vpop.permute.xlu1 %806 }
 0xb51   :  { %v802_v21 = vpop.permute.xlu0 %801 }
 0xb52   :  { %v809_v22 = vsel %vm360_vm2, %v802_v21, %v807_v20  ;;  %810 = vst.msk [vmem:[#allocation2 + $0x8] sm:$0xf0] %vm512_vm4, %v802_v21 }
 0xb53   :  { %v816_v24 = vrot.slane %v809_v22, 4 }
 0xb55   :  { %2899 = vmatmul.mubr.msk.f32.vlgmr.msra.gmra.mrb[4].mxu1 %vm116_vm1, %v816_v24 }
 0xb56   :  { %3082 = vmatpush3.bf16.msra.mxu1 %v3656_v9  ;;  %2920 = vmatprep.mubr.msk.f32.mxu1 %vm3505_vm0, %v3506_v1 }
 0xb57   :  { %3083 = vmatprep.subr.bf16.mxu1 %v3504_v0 }
 0xb5a   :  { %3085 = vmatpush3.bf16.msra.mxu1 %v3660_v14 }
 0xc28   :  { %v885_v25 = vpop.f32.mrb[4].mxu1 }
 0xc29   :  { %v886_v27 = vadd.f32 %v3685_v18, %v885_v25  ;;  %v2900_v28 = vpop.f32.mrb[5].mxu1 }
 0xc2b   :  { %897 = vrot.lane.b32.xlu1 %v886_v27, %s3507_s28  ;;  %v918_v32 = vrot.slane %v886_v27, 4  ;;  %v889_v33 = vadd.f32 %v886_v27, %v3694_v29 }
 0xc2d   :  { %927 = vrot.lane.b32.xlu0 %v918_v32, %s3507_s28  ;;  %v920_v34 = vadd.f32 %v918_v32, %v3691_v23  ;;  %v2696_v35 = vmul.f32 -1.442695, %v889_v33 }
 0xc2f   :  { %v2697_v36 = vmul.f32 -1.442695, %v920_v34  ;;  %3213 = vpow2.f32 %v2696_v35 }
 0xc31   :  { %3215 = vpow2.f32 %v2697_v36 }
 0xc39   :  { %v3214_v37 = vpop.eup %3213 }
 0xc3a   :  { %v893_v39 = vadd.f32 1.0, %v3214_v37 }
 0xc3b   :  { %v3216_v38 = vpop.eup %3215 }
 0xc3c   :  { %v924_v40 = vadd.f32 1.0, %v3216_v38  ;;  %3217 = vrcp.f32 %v893_v39 }
 0xc3e   :  { %3219 = vrcp.f32 %v924_v40 }
 0xc46   :  { %v3218_v41 = vpop.eup %3217 }
 0xc47   :  { %v907_v62 = vsub.f32 1.0, %v3218_v41 }
 0xc48   :  { %v3220_v45 = vpop.eup %3219 }
 0xc49   :  { %v937_v55 = vsub.f32 1.0, %v3220_v45 }
 0xc9d   :  { %v898_v43 = vpop.permute.xlu1 %897 }
 0xc9e   :  { %v900_v44 = vmul.f32 %v3218_v41, %v898_v43 }
 0xc9f   :  { %v928_v46 = vpop.permute.xlu0 %927 }
 0xca0   :  { %v930_v47 = vmul.f32 %v3220_v45, %v928_v46  ;;  %902 = vrot.lane.b32.xlu1 %v900_v44, %s3508_s3 }
 0xca2   :  { %932 = vrot.lane.b32.xlu0 %v930_v47, %s3508_s3 }
 0xca4   :  { %943 = vrot.lane.b32.xlu1 %v809_v22, %s3511_s30 }
 0xca8   :  { %913 = vrot.lane.b32.xlu1 %v816_v24, %s3512_s11 }
 0xd12   :  { %v903_v48 = vpop.permute.xlu1 %902 }
 0xd13   :  { %v905_v51 = vadd.f32 %v903_v48, %v3694_v29 }
 0xd14   :  { %v933_v49 = vpop.permute.xlu0 %932 }
 0xd15   :  { %v935_v50 = vadd.f32 %v933_v49, %v3691_v23 }
 0xd16   :  { %v944_v54 = vpop.permute.xlu1 %943 }
 0xd17   :  { %3221 = vtanh.f32 %v935_v50  ;;  %v946_v58 = vmul.f32 %v3220_v45, %v944_v54 }
 0xd18   :  { %3223 = vtanh.f32 %v905_v51 }
 0xd1a   :  { %v914_v60 = vpop.permute.xlu1 %913 }
 0xd1b   :  { %v916_v2 = vmul.f32 %v3218_v41, %v914_v60 }
 0xd21   :  { %v3222_v52 = vpop.eup %3221 }
 0xd22   :  { %939 = vrot.lane.b32.xlu0 %v3222_v52, %s3509_s4  ;;  %v3224_v53 = vpop.eup %3223 }
 0xd26   :  { %909 = vrot.lane.b32.xlu0 %v3224_v53, %s3509_s4 }
 0xd94   :  { %v940_v57 = vpop.permute.xlu0 %939 }
 0xd95   :  { %v942_v59 = vmul.f32 %v940_v57, %v937_v55 }
 0xd97   :  { %v3816_v61 = vadd.f32 %v946_v58, %v942_v59 }
 0xd98   :  { %v910_v63 = vpop.permute.xlu0 %909 }
 0xd99   :  { %v912_v3 = vmul.f32 %v910_v63, %v907_v62  ;;  %v953_v4 = vrot.slane %v3816_v61, 4 }
 0xd9b   :  { %v917_v5 = vadd.f32 %v916_v2, %v912_v3  ;;  %954 = vrot.lane.b32.xlu1 %v953_v4, %s3510_s29 }
 0xd9d   :  { %949 = vrot.lane.b32.xlu0 %v917_v5, %s3509_s4 }
 0xe0d   :  { %v955_v6 = vpop.permute.xlu1 %954 }
 0xe0f   :  { %v3821_v7 = vpop.permute.xlu0 %949 }
 0xe10   :  { %v957_v8 = vsel %vm360_vm2, %v3821_v7, %v955_v6 }
 0xe11   :  { %2910 = vmatmul.mubr.msk.f32.vlgmr.msra.gmra.mrb[8].mxu0 %vm116_vm1, %v957_v8  ;;  %v1062_v34 = vrot.slane %v957_v8, 4 }
 0xe12   :  { %3088 = vmatpush3.bf16.msra.mxu0 %v3656_v9  ;;  %2931 = vmatprep.mubr.msk.f32.mxu0 %vm3505_vm0, %v3506_v1 }
 0xe13   :  { %3089 = vmatprep.subr.bf16.mxu0 %v3504_v0 }
 0xe16   :  { %3091 = vmatpush3.bf16.msra.mxu0 %v3660_v14 }
 0xe17   :  { %3100 = vmatprep.subr.bf16.mxu0 %v3504_v0 }
 0xee4   :  { %v1032_v10 = vpop.f32.mrb[8].mxu0 }
 0xee5   :  { %v1033_v12 = vadd.f32 %v3685_v18, %v1032_v10  ;;  %v2911_v13 = vpop.f32.mrb[9].mxu0 }
 0xee7   :  { %1075 = vrot.lane.b32.xlu0 %v1033_v12, %s3507_s28  ;;  %v1037_v15 = vrot.slane %v1033_v12, 4  ;;  %v1068_v9 = vadd.f32 %v1033_v12, %v3691_v23 }
 0xee9   :  { %1046 = vrot.lane.b32.xlu1 %v1037_v15, %s3507_s28  ;;  %v1039_v16 = vadd.f32 %v1037_v15, %v3694_v29  ;;  %v2700_v17 = vmul.f32 -1.442695, %v1068_v9 }
 0xeeb   :  { %v2699_v19 = vmul.f32 -1.442695, %v1039_v16  ;;  %3225 = vpow2.f32 %v2700_v17 }
 0xeed   :  { %3227 = vpow2.f32 %v2699_v19 }
 0xef5   :  { %v3226_v14 = vpop.eup %3225 }
 0xef6   :  { %v1072_v21 = vadd.f32 1.0, %v3226_v14 }
 0xef7   :  { %v3228_v20 = vpop.eup %3227 }
 0xef8   :  { %v1043_v22 = vadd.f32 1.0, %v3228_v20  ;;  %3229 = vrcp.f32 %v1072_v21 }
 0xefa   :  { %3231 = vrcp.f32 %v1043_v22 }
 0xf02   :  { %v3230_v24 = vpop.eup %3229 }
 0xf03   :  { %v1085_v43 = vsub.f32 1.0, %v3230_v24 }
 0xf04   :  { %v3232_v28 = vpop.eup %3231 }
 0xf59   :  { %v1076_v25 = vpop.permute.xlu0 %1075 }
 0xf5a   :  { %v1078_v27 = vmul.f32 %v3230_v24, %v1076_v25 }
 0xf5b   :  { %v1047_v32 = vpop.permute.xlu1 %1046 }
 0xf5c   :  { %v1049_v33 = vmul.f32 %v3232_v28, %v1047_v32  ;;  %1080 = vrot.lane.b32.xlu0 %v1078_v27, %s3508_s3 }
 0xf5e   :  { %1051 = vrot.lane.b32.xlu1 %v1049_v33, %s3508_s3 }
 0xf62   :  { %1091 = vrot.lane.b32.xlu1 %v957_v8, %s3511_s30 }
 0xf66   :  { %1063 = vrot.lane.b32.xlu1 %v1062_v34, %s3512_s11 }
 0xfce   :  { %v1081_v35 = vpop.permute.xlu0 %1080 }
 0xfcf   :  { %v1083_v36 = vadd.f32 %v1081_v35, %v3691_v23  ;;  %v1056_v23 = vsub.f32 1.0, %v3232_v28 }
 0xfd0   :  { %v1052_v37 = vpop.permute.xlu1 %1051 }
 0xfd1   :  { %3233 = vtanh.f32 %v1083_v36  ;;  %v1054_v38 = vadd.f32 %v1052_v37, %v3694_v29 }
 0xfd3   :  { %3235 = vtanh.f32 %v1054_v38 }
 0xfd4   :  { %v1092_v41 = vpop.permute.xlu1 %1091 }
 0xfd5   :  { %v1094_v45 = vmul.f32 %v3230_v24, %v1092_v41 }
 0xfd8   :  { %v1064_v47 = vpop.permute.xlu1 %1063 }
 0xfd9   :  { %v1066_v50 = vmul.f32 %v3232_v28, %v1064_v47 }
 0xfdb   :  { %v3234_v39 = vpop.eup %3233 }
 0xfdc   :  { %1087 = vrot.lane.b32.xlu0 %v3234_v39, %s3509_s4 }
 0xfdd   :  { %v3236_v40 = vpop.eup %3235 }
 0xfe0   :  { %1058 = vrot.lane.b32.xlu0 %v3236_v40, %s3509_s4 }
0x104e   :  { %v1088_v44 = vpop.permute.xlu0 %1087 }
0x104f   :  { %v1090_v46 = vmul.f32 %v1088_v44, %v1085_v43 }
0x1051   :  { %v3845_v48 = vadd.f32 %v1094_v45, %v1090_v46 }
0x1052   :  { %v1059_v49 = vpop.permute.xlu0 %1058 }
0x1053   :  { %v1061_v51 = vmul.f32 %v1059_v49, %v1056_v23  ;;  %v1101_v29 = vrot.slane %v3845_v48, 4 }
0x1055   :  { %v1067_v52 = vadd.f32 %v1066_v50, %v1061_v51  ;;  %1102 = vrot.lane.b32.xlu1 %v1101_v29, %s3510_s29 }
0x1057   :  { %1097 = vrot.lane.b32.xlu0 %v1067_v52, %s3509_s4 }
0x10c7   :  { %v1103_v53 = vpop.permute.xlu1 %1102 }
0x10c9   :  { %v3850_v54 = vpop.permute.xlu0 %1097 }
0x10ca   :  { %v1105_v55 = vsel %vm360_vm2, %v3850_v54, %v1103_v53 }
0x10cb   :  { %v1112_v57 = vrot.slane %v1105_v55, 4 }
0x10cd   :  { %2921 = vmatmul.mubr.msk.f32.vlgmr.msra.gmra.mrb[6].mxu1 %vm116_vm1, %v1112_v57 }
0x11a0   :  { %v1181_v58 = vpop.f32.mrb[6].mxu1 }
0x11a1   :  { %v1182_v59 = vadd.f32 %v3685_v18, %v1181_v58  ;;  %v2922_v60 = vpop.f32.mrb[7].mxu1 }
0x11a3   :  { %1193 = vrot.lane.b32.xlu1 %v1182_v59, %s3507_s28  ;;  %v1214_v62 = vrot.slane %v1182_v59, 4  ;;  %v1185_v63 = vadd.f32 %v1182_v59, %v3697_v30 }
0x11a5   :  { %1223 = vrot.lane.b32.xlu0 %v1214_v62, %s3507_s28  ;;  %v1216_v2 = vadd.f32 %v1214_v62, %v3699_v31  ;;  %v2702_v3 = vmul.f32 -1.442695, %v1185_v63 }
0x11a7   :  { %v2703_v4 = vmul.f32 -1.442695, %v1216_v2  ;;  %3237 = vpow2.f32 %v2702_v3 }
0x11a9   :  { %3239 = vpow2.f32 %v2703_v4 }
0x11b1   :  { %v3238_v5 = vpop.eup %3237 }
0x11b2   :  { %v1189_v8 = vadd.f32 1.0, %v3238_v5 }
0x11b3   :  { %v3240_v6 = vpop.eup %3239 }
0x11b4   :  { %v1220_v10 = vadd.f32 1.0, %v3240_v6  ;;  %3241 = vrcp.f32 %v1189_v8 }
0x11b6   :  { %3243 = vrcp.f32 %v1220_v10 }
0x11be   :  { %v3242_v12 = vpop.eup %3241 }
0x11bf   :  { %v1203_v36 = vsub.f32 1.0, %v3242_v12 }
0x11c0   :  { %v3244_v9 = vpop.eup %3243 }
0x11c1   :  { %v1233_v27 = vsub.f32 1.0, %v3244_v9 }
0x1215   :  { %v1194_v13 = vpop.permute.xlu1 %1193 }
0x1216   :  { %v1196_v15 = vmul.f32 %v3242_v12, %v1194_v13 }
0x1217   :  { %v1224_v16 = vpop.permute.xlu0 %1223 }
0x1218   :  { %v1226_v17 = vmul.f32 %v3244_v9, %v1224_v16  ;;  %1198 = vrot.lane.b32.xlu1 %v1196_v15, %s3508_s3 }
0x121a   :  { %1228 = vrot.lane.b32.xlu0 %v1226_v17, %s3508_s3  ;;  %v1517_v17 = vld [vmem:[#allocation11 + $0x18] sm:$0xff] }
0x121c   :  { %1239 = vrot.lane.b32.xlu1 %v1105_v55, %s3511_s30 }
0x1220   :  { %1209 = vrot.lane.b32.xlu1 %v1112_v57, %s3512_s11 }
0x128a   :  { %v1199_v19 = vpop.permute.xlu1 %1198 }
0x128b   :  { %v1201_v21 = vadd.f32 %v1199_v19, %v3697_v30 }
0x128c   :  { %v1229_v14 = vpop.permute.xlu0 %1228 }
0x128d   :  { %v1231_v20 = vadd.f32 %v1229_v14, %v3699_v31 }
0x128e   :  { %v1240_v25 = vpop.permute.xlu1 %1239 }
0x128f   :  { %3245 = vtanh.f32 %v1231_v20  ;;  %v1242_v32 = vmul.f32 %v3244_v9, %v1240_v25  ;;  %v1516_v9 = vld [vmem:[#allocation11 + $0x10] sm:$0xff]  ;;  %v1409_v20 = vld [vmem:[#allocation9 + $0x18] sm:$0xff] }
0x1290   :  { %3247 = vtanh.f32 %v1201_v21  ;;  %v3912_v19 = vpack.c.bf16 %v1517_v17, %v1516_v9 }
0x1292   :  { %v1210_v34 = vpop.permute.xlu1 %1209 }
0x1293   :  { %v1212_v38 = vmul.f32 %v3242_v12, %v1210_v34 }
0x1299   :  { %v3246_v22 = vpop.eup %3245 }
0x129a   :  { %1235 = vrot.lane.b32.xlu0 %v3246_v22, %s3509_s4  ;;  %v3248_v24 = vpop.eup %3247 }
0x129e   :  { %1205 = vrot.lane.b32.xlu0 %v3248_v24, %s3509_s4 }
0x130c   :  { %v1236_v28 = vpop.permute.xlu0 %1235 }
0x130d   :  { %v1238_v33 = vmul.f32 %v1236_v28, %v1233_v27 }
0x130f   :  { %v3868_v35 = vadd.f32 %v1242_v32, %v1238_v33 }
0x1310   :  { %v1206_v37 = vpop.permute.xlu0 %1205 }
0x1311   :  { %v1208_v39 = vmul.f32 %v1206_v37, %v1203_v36  ;;  %v1249_v40 = vrot.slane %v3868_v35, 4 }
0x1313   :  { %v1213_v41 = vadd.f32 %v1212_v38, %v1208_v39  ;;  %1250 = vrot.lane.b32.xlu1 %v1249_v40, %s3510_s29  ;;  %v3944_v40 = vld [vmem:[%s4153_s8] ss:$0 sm:$0xff] }
0x1315   :  { %1245 = vrot.lane.b32.xlu0 %v1213_v41, %s3509_s4 }
0x1385   :  { %v1251_v43 = vpop.permute.xlu1 %1250 }
0x1387   :  { %v3873_v44 = vpop.permute.xlu0 %1245 }
0x1388   :  { %v1253_v45 = vsel %vm360_vm2, %v3873_v44, %v1251_v43 }
0x1389   :  { %2932 = vmatmul.mubr.msk.f32.vlgmr.msra.gmra.mrb[10].mxu0 %vm116_vm1, %v1253_v45  ;;  %v1358_v3 = vrot.slane %v1253_v45, 4 }
0x138a   :  { %2956 = vmatprep.mubr.msk.f32.mxu0 %vm3505_vm0, %v3506_v1 }
0x145c   :  { %v1328_v46 = vpop.f32.mrb[10].mxu0 }
0x145d   :  { %v1329_v47 = vadd.f32 %v3685_v18, %v1328_v46  ;;  %v2933_v23 = vpop.f32.mrb[11].mxu0 }
0x145f   :  { %1371 = vrot.lane.b32.xlu0 %v1329_v47, %s3507_s28  ;;  %v1333_v49 = vrot.slane %v1329_v47, 4  ;;  %v1364_v50 = vadd.f32 %v1329_v47, %v3699_v31 }
0x1461   :  { %1342 = vrot.lane.b32.xlu1 %v1333_v49, %s3507_s28  ;;  %v1335_v51 = vadd.f32 %v1333_v49, %v3697_v30  ;;  %v2706_v29 = vmul.f32 -1.442695, %v1364_v50 }
0x1463   :  { %v2705_v52 = vmul.f32 -1.442695, %v1335_v51  ;;  %3249 = vpow2.f32 %v2706_v29 }
0x1465   :  { %3251 = vpow2.f32 %v2705_v52 }
0x146d   :  { %v3250_v53 = vpop.eup %3249 }
0x146e   :  { %v1368_v57 = vadd.f32 1.0, %v3250_v53 }
0x146f   :  { %v3252_v55 = vpop.eup %3251 }
0x1470   :  { %v1339_v58 = vadd.f32 1.0, %v3252_v55  ;;  %3253 = vrcp.f32 %v1368_v57 }
0x1472   :  { %3255 = vrcp.f32 %v1339_v58 }
0x147a   :  { %v3885_v18 = vpop.eup %3253 }
0x147b   :  { %v1381_v22 = vsub.f32 1.0, %v3885_v18 }
0x147c   :  { %v3888_v62 = vpop.eup %3255 }
0x147d   :  { %v1352_v28 = vsub.f32 1.0, %v3888_v62 }
0x14d1   :  { %v1372_v59 = vpop.permute.xlu0 %1371 }
0x14d2   :  { %v1374_v60 = vmul.f32 %v3885_v18, %v1372_v59 }
0x14d3   :  { %v1343_v63 = vpop.permute.xlu1 %1342 }
0x14d4   :  { %v1345_v2 = vmul.f32 %v3888_v62, %v1343_v63  ;;  %1376 = vrot.lane.b32.xlu0 %v1374_v60, %s3508_s3 }
0x14d6   :  { %1347 = vrot.lane.b32.xlu1 %v1345_v2, %s3508_s3 }
0x14da   :  { %1387 = vrot.lane.b32.xlu1 %v1253_v45, %s3511_s30 }
0x14de   :  { %1359 = vrot.lane.b32.xlu1 %v1358_v3, %s3512_s11 }
0x14e2   :  { %1107 = vrot.lane.b32.xlu1 %v3845_v48, %s3510_s29 }
0x14e6   :  { %811 = vrot.lane.b32.xlu1 %v3790_v11, %s3510_s29 }
0x1546   :  { %v1377_v4 = vpop.permute.xlu0 %1376 }
0x1547   :  { %v1379_v5 = vadd.f32 %v1377_v4, %v3699_v31  ;;  %v1515_v31 = vld [vmem:[#allocation11 + $0x8] sm:$0xff] }
0x1548   :  { %v1348_v6 = vpop.permute.xlu1 %1347 }
0x1549   :  { %3257 = vtanh.f32 %v1379_v5  ;;  %v1350_v8 = vadd.f32 %v1348_v6, %v3697_v30  ;;  %v1514_v30 = vld [vmem:[#allocation11] sm:$0xff] }
0x154a   :  { %v3909_v16 = vpack.c.bf16 %v1515_v31, %v1514_v30 }
0x154b   :  { %3259 = vtanh.f32 %v1350_v8 }
0x154c   :  { %v1388_v10 = vpop.permute.xlu1 %1387  ;;  %3102 = vmatpush3.bf16.msra.mxu0 %v3909_v16 }
0x154d   :  { %3103 = vmatprep.subr.bf16.mxu0 %v3504_v0 }
0x1550   :  { %v1360_v12 = vpop.permute.xlu1 %1359  ;;  %3105 = vmatpush3.bf16.msra.mxu0 %v3912_v19 }
0x1551   :  { %3112 = vmatprep.subr.bf16.mxu0 %v3504_v0  ;;  %v1362_v33 = vmul.f32 %v3888_v62, %v1360_v12 }
0x1553   :  { %v3258_v13 = vpop.eup %3257  ;;  %2957 = vmatmul.mubr.f32.vlgmr.msra.gmra.mrb[12].mxu0 %v3506_v1 }
0x1554   :  { %1383 = vrot.lane.b32.xlu0 %v3258_v13, %s3509_s4  ;;  %v1108_v15 = vpop.permute.xlu1 %1107  ;;  %3114 = vmatpush3.bf16.msra.mxu0 %v3909_v16 }
0x1555   :  { %1110 = vst.msk [vmem:[#allocation2 + $0x8] sm:$0xf] %vm517_vm5, %v1108_v15  ;;  %v3260_v48 = vpop.eup %3259  ;;  %2978 = vmatprep.mubr.msk.f32.mxu0 %vm3505_vm0, %v3506_v1  ;;  %3115 = vmatprep.subr.bf16.mxu0 %v3504_v0 }
0x1558   :  { %1354 = vrot.lane.b32.xlu0 %v3260_v48, %s3509_s4  ;;  %v812_v11 = vpop.permute.xlu1 %811  ;;  %3117 = vmatpush3.bf16.msra.mxu0 %v3912_v19 }
0x1559   :  { %814 = vst.msk [vmem:[#allocation2 + $0x10] sm:$0xf] %vm517_vm5, %v812_v11  ;;  %3124 = vmatprep.subr.bf16.mxu0 %v3504_v0 }
0x155a   :  { %958 = vst.msk [vmem:[#allocation2 + $0x10] sm:$0xf] %vm362_vm3, %v3821_v7  ;;  %v1407_v7 = vld [vmem:[#allocation9 + $0x8] sm:$0xff] }
0x155c   :  { %1255 = vrot.lane.b32.xlu0 %v3868_v35, %s3510_s29 }
0x1560   :  { %959 = vrot.lane.b32.xlu0 %v3816_v61, %s3510_s29  ;;  %v1406_v61 = vld [vmem:[#allocation9] sm:$0xff] }
0x1561   :  { %v3092_v14 = vpack.c.bf16 %v1407_v7, %v1406_v61 }
0x1563   :  { %3093 = vmatprep.subr.bf16.mxu1 %v3092_v14 }
0x1564   :  { %663 = vrot.lane.b32.xlu0 %v3763_v26, %s3510_s29  ;;  %3095 = vmatpush3.bf16.msra.mxu1 %v3092_v14  ;;  %v1408_v26 = vld [vmem:[#allocation9 + $0x10] sm:$0xff] }
0x1565   :  { %v3096_v21 = vpack.c.bf16 %v1409_v20, %v1408_v26 }
0x1567   :  { %3097 = vmatprep.subr.bf16.mxu1 %v3096_v21 }
0x1568   :  { %364 = vrot.lane.b32.xlu0 %v3709_v56, %s3510_s29  ;;  %3099 = vmatpush3.bf16.msra.mxu1 %v3096_v21  ;;  %v1390_v56 = vmul.f32 %v3885_v18, %v1388_v10 }
0x1569   :  { %3106 = vmatprep.subr.bf16.mxu1 %v3504_v0 }
0x15c6   :  { %v1384_v24 = vpop.permute.xlu0 %1383 }
0x15c7   :  { %v1386_v25 = vmul.f32 %v1384_v24, %v1381_v22 }
0x15c9   :  { %v1391_v27 = vadd.f32 %v1390_v56, %v1386_v25 }
0x15ca   :  { %v1355_v32 = vpop.permute.xlu0 %1354 }
0x15cb   :  { %v1357_v34 = vmul.f32 %v1355_v32, %v1352_v28  ;;  %1398 = vrot.lane.b32.xlu1 %v1391_v27, %s3510_s29 }
0x15cd   :  { %v1363_v35 = vadd.f32 %v1362_v33, %v1357_v34 }
0x15ce   :  { %v1256_v36 = vpop.permute.xlu0 %1255 }
0x15cf   :  { %1258 = vst.msk [vmem:[#allocation2] sm:$0xf0] %vm367_vm6, %v1256_v36  ;;  %514 = vrot.lane.b32.xlu1 %v3736_v42, %s3510_s29  ;;  %1393 = vrot.lane.b32.xlu0 %v1363_v35, %s3509_s4 }
0x15d2   :  { %v960_v37 = vpop.permute.xlu0 %959 }
0x15d3   :  { %962 = vst.msk [vmem:[#allocation2 + $0x8] sm:$0xf0] %vm367_vm6, %v960_v37 }
0x15d6   :  { %v664_v38 = vpop.permute.xlu0 %663 }
0x15d7   :  { %666 = vst.msk [vmem:[#allocation2 + $0x10] sm:$0xf0] %vm367_vm6, %v664_v38 }
0x15d8   :  { %1106 = vst.msk [vmem:[#allocation2 + $0x10] sm:$0xf0] %vm512_vm4, %v3850_v54 }
0x15da   :  { %v365_v39 = vpop.permute.xlu0 %364  ;;  %v1403_v49 = vld [vmem:[#allocation2 + $0x8] sm:$0xff] }
0x15db   :  { %368 = vst.msk [vmem:[#allocation2 + $0x18] sm:$0xf0] %vm367_vm6, %v365_v39 }
0x15df   :  { %v1404_v50 = vld [vmem:[#allocation2 + $0x10] sm:$0xff] }
0x1626   :  { %v1591_v41 = vpop.f32.mrb[12].mxu0 }
0x1627   :  { %v1592_v43 = vadd.f32 %v3944_v40, %v1591_v41  ;;  %v2958_v42 = vpop.f32.mrb[13].mxu0 }
0x1629   :  { %1603 = vrot.lane.b32.xlu0 %v1592_v43, %s3507_s28  ;;  %v1621_v45 = vrot.slane %v1592_v43, 4 }
0x162b   :  { %1630 = vrot.lane.b32.xlu1 %v1621_v45, %s3507_s28 }
0x163d   :  { %v1399_v46 = vpop.permute.xlu1 %1398 }
0x163e   :  { %1401 = vst.msk [vmem:[#allocation2] sm:$0xf] %vm517_vm5, %v1399_v46 }
0x1641   :  { %v1394_v54 = vpop.permute.xlu0 %1393  ;;  %v515_v47 = vpop.permute.xlu1 %514 }
0x1642   :  { %1396 = vst.msk [vmem:[#allocation2 + $0x18] sm:$0xf0] %vm512_vm4, %v1394_v54 }
0x1643   :  { %518 = vst.msk [vmem:[#allocation2 + $0x18] sm:$0xf] %vm517_vm5, %v515_v47 }
0x1644   :  { %1254 = vst.msk [vmem:[#allocation2 + $0x18] sm:$0xf] %vm362_vm3, %v3873_v44  ;;  %v2707_v44 = vld [vmem:[%s4152_s7] ss:$0 sm:$0xff]  ;;  %s3513_s7 = smov [#allocation12]  }
0x1645   :  { %v1402_v23 = vld [vmem:[#allocation2] sm:$0xff]  ;;  %s2667_s14 = sshll.u32 %s3513_s7, 4  ;;  %s2668_s14 = int_to_ptr.vmem [resolvable:$true] %s2667_s14 }
0x1646   :  { %2942 = vmatprep.mubr.msk.f32.mxu1 %vm116_vm1, %v1402_v23  ;;  %s3467_s0 = scalar_lea.vmem %s2668_s14, 64  ;;  %p3472_p13 = scmp.lt.s32.totalorder %s2668_s14, %s2668_s14 }
0x1647   :  { %2943 = vmatmul.mubr.msk.f32.vlgmr.msra.gmra.mrb[8].mxu1 %vm116_vm1, %v1403_v49  ;;  %p3468_p12 = scmp.ne.s32.totalorder %s2668_s14, %s3467_s0  ;;  %p3473_p0 = scmp.lt.s32.totalorder %s3467_s0, %s3467_s0 }
0x1648   :  { %2945 = vmatprep.mubr.msk.f32.mxu1 %vm116_vm1, %v1404_v50  ;;  %3108 = vmatpush3.bf16.msra.mxu1 %v3909_v16 }
0x1649   :  { %3109 = vmatprep.subr.bf16.mxu1 %v3504_v0  ;;  %p3474_p1 = por %p3473_p0, %p3472_p13 }
0x164b   :  { %v1405_v51 = vld [vmem:[#allocation2 + $0x18] sm:$0xff]  ;;  %p3475_p2 = pnand %p3474_p1, %p3468_p12 }
0x164c   :  { %2946 = vmatmul.mubr.msk.f32.gmra.mrb[10].mxu1 %vm116_vm1, %v1405_v51 }
0x164d   :  { %3111 = vmatpush3.bf16.msra.mxu1 %v3912_v19  ;;  %2967 = vmatprep.mubr.msk.f32.mxu1 %vm3505_vm0, %v3506_v1 }
0x164e   :  { %3118 = vmatprep.subr.bf16.mxu1 %v3504_v0 }
0x169b   :  { %v1604_v8 = vpop.permute.xlu0 %1603 }
0x169d   :  { %v1631_v13 = vpop.permute.xlu1 %1630 }
0x171a   :  { %v2944_v29 = vpop.f32.mrb[8].mxu1 }
0x171b   :  { %v3967_v52 = vadd.f32 %v2944_v29, %v2707_v44  ;;  %v1495_v53 = vpop.f32.mrb[9].mxu1 }
0x171c   :  { %v3969_v55 = vadd.f32 %v2707_v44, %v1495_v53 }
0x171e   :  { %v1595_v58 = vadd.f32 %v1592_v43, %v3969_v55 }
0x171f   :  { %v2947_v57 = vpop.f32.mrb[10].mxu1 }
0x1720   :  { %v3972_v18 = vadd.f32 %v2947_v57, %v2707_v44  ;;  %v1505_v59 = vpop.f32.mrb[11].mxu1  ;;  %v2713_v62 = vmul.f32 -1.442695, %v1595_v58 }
0x1721   :  { %v3974_v60 = vadd.f32 %v2707_v44, %v1505_v59 }
0x1722   :  { %v1623_v63 = vadd.f32 %v1621_v45, %v3972_v18  ;;  %3261 = vpow2.f32 %v2713_v62 }
0x1724   :  { %v2714_v2 = vmul.f32 -1.442695, %v1623_v63 }
0x1726   :  { %3263 = vpow2.f32 %v2714_v2 }
0x172c   :  { %v3262_v3 = vpop.eup %3261 }
0x172d   :  { %v1599_v4 = vadd.f32 1.0, %v3262_v3 }
0x172f   :  { %3265 = vrcp.f32 %v1599_v4 }
0x1730   :  { %v3264_v5 = vpop.eup %3263 }
0x1731   :  { %v1627_v6 = vadd.f32 1.0, %v3264_v5 }
0x1733   :  { %3267 = vrcp.f32 %v1627_v6 }
0x1739   :  { %v3266_v10 = vpop.eup %3265 }
0x173a   :  { %v1606_v12 = vmul.f32 %v3266_v10, %v1604_v8  ;;  %v1613_v7 = vsub.f32 1.0, %v3266_v10  ;;  %v1619_v26 = vmul.f32 0.0, %v3266_v10 }
0x173c   :  { %1608 = vrot.lane.b32.xlu0 %v1606_v12, %s3508_s3 }
0x173d   :  { %v3268_v15 = vpop.eup %3267 }
0x173e   :  { %v1633_v48 = vmul.f32 %v3268_v15, %v1631_v13  ;;  %v1640_v21 = vsub.f32 1.0, %v3268_v15  ;;  %v1646_v56 = vmul.f32 0.0, %v3268_v15 }
0x1740   :  { %1635 = vrot.lane.b32.xlu1 %v1633_v48, %s3508_s3 }
0x17ae   :  { %v1609_v11 = vpop.permute.xlu0 %1608 }
0x17af   :  { %v1611_v30 = vadd.f32 %v1609_v11, %v3969_v55 }
0x17b1   :  { %3269 = vtanh.f32 %v1611_v30 }
0x17b2   :  { %v1636_v31 = vpop.permute.xlu1 %1635 }
0x17b3   :  { %v1638_v9 = vadd.f32 %v1636_v31, %v3972_v18 }
0x17b5   :  { %3271 = vtanh.f32 %v1638_v9 }
0x17bb   :  { %v3270_v17 = vpop.eup %3269 }
0x17bc   :  { %1615 = vrot.lane.b32.xlu0 %v3270_v17, %s3509_s4 }
0x17bf   :  { %v3272_v61 = vpop.eup %3271 }
0x17c0   :  { %1642 = vrot.lane.b32.xlu1 %v3272_v61, %s3509_s4 }
0x182e   :  { %v1616_v14 = vpop.permute.xlu0 %1615 }
0x182f   :  { %v1618_v20 = vmul.f32 %v1616_v14, %v1613_v7 }
0x1831   :  { %v1620_v22 = vadd.f32 %v1619_v26, %v1618_v20 }
0x1832   :  { %v1643_v24 = vpop.permute.xlu1 %1642 }
0x1833   :  { %v1645_v25 = vmul.f32 %v1643_v24, %v1640_v21  ;;  %1649 = vrot.lane.b32.xlu1 %v1620_v22, %s3509_s4 }
0x1835   :  { %v1647_v27 = vadd.f32 %v1646_v56, %v1645_v25 }
0x1837   :  { %v1653_v28 = vrot.slane %v1647_v27, 4 }
0x1839   :  { %1654 = vrot.lane.b32.xlu0 %v1653_v28, %s3510_s29 }
0x18a5   :  { %v1650_v32 = vpop.permute.xlu1 %1649 }
0x18ab   :  { %v1655_v33 = vpop.permute.xlu0 %1654 }
0x18ac   :  { %v1657_v34 = vsel %vm360_vm2, %v1650_v32, %v1655_v33 }
0x18ad   :  { %2968 = vmatmul.mubr.msk.f32.vlgmr.msra.gmra.mrb[12].mxu1 %vm116_vm1, %v1657_v34  ;;  %v1757_v53 = vrot.slane %v1657_v34, 4 }
0x18ae   :  { %3120 = vmatpush3.bf16.msra.mxu1 %v3909_v16  ;;  %2989 = vmatprep.mubr.msk.f32.mxu1 %vm3505_vm0, %v3506_v1 }
0x18af   :  { %3121 = vmatprep.subr.bf16.mxu1 %v3504_v0 }
0x18b2   :  { %3123 = vmatpush3.bf16.msra.mxu1 %v3912_v19 }
0x18b3   :  { %3130 = vmatprep.subr.bf16.mxu1 %v3504_v0 }
0x1980   :  { %v1727_v35 = vpop.f32.mrb[12].mxu1 }
0x1981   :  { %v1728_v36 = vadd.f32 %v3944_v40, %v1727_v35  ;;  %v2969_v37 = vpop.f32.mrb[13].mxu1 }
0x1983   :  { %1770 = vrot.lane.b32.xlu1 %v1728_v36, %s3507_s28  ;;  %v1732_v38 = vrot.slane %v1728_v36, 4  ;;  %v1763_v39 = vadd.f32 %v1728_v36, %v3972_v18 }
0x1985   :  { %1741 = vrot.lane.b32.xlu0 %v1732_v38, %s3507_s28  ;;  %v1734_v41 = vadd.f32 %v1732_v38, %v3969_v55  ;;  %v2717_v43 = vmul.f32 -1.442695, %v1763_v39 }
0x1987   :  { %v2716_v42 = vmul.f32 -1.442695, %v1734_v41  ;;  %3273 = vpow2.f32 %v2717_v43 }
0x1989   :  { %3275 = vpow2.f32 %v2716_v42 }
0x1991   :  { %v3274_v45 = vpop.eup %3273 }
0x1992   :  { %v1767_v54 = vadd.f32 1.0, %v3274_v45 }
0x1993   :  { %v3276_v46 = vpop.eup %3275 }
0x1994   :  { %v1738_v47 = vadd.f32 1.0, %v3276_v46  ;;  %3277 = vrcp.f32 %v1767_v54 }
0x1996   :  { %3279 = vrcp.f32 %v1738_v47 }
0x199e   :  { %v3278_v23 = vpop.eup %3277 }
0x199f   :  { %v1780_v4 = vsub.f32 1.0, %v3278_v23 }
0x19a0   :  { %v3280_v51 = vpop.eup %3279 }
0x19a1   :  { %v1751_v13 = vsub.f32 1.0, %v3280_v51 }
0x19f5   :  { %v1771_v49 = vpop.permute.xlu1 %1770 }
0x19f6   :  { %v1773_v50 = vmul.f32 %v3278_v23, %v1771_v49 }
0x19f7   :  { %v1742_v44 = vpop.permute.xlu0 %1741 }
0x19f8   :  { %v1744_v29 = vmul.f32 %v3280_v51, %v1742_v44  ;;  %1775 = vrot.lane.b32.xlu1 %v1773_v50, %s3508_s3 }
0x19fa   :  { %1746 = vrot.lane.b32.xlu0 %v1744_v29, %s3508_s3 }
0x19fe   :  { %1786 = vrot.lane.b32.xlu0 %v1657_v34, %s3511_s30 }
0x1a02   :  { %1758 = vrot.lane.b32.xlu0 %v1757_v53, %s3512_s11 }
0x1a6a   :  { %v1776_v57 = vpop.permute.xlu1 %1775 }
0x1a6b   :  { %v1778_v58 = vadd.f32 %v1776_v57, %v3972_v18 }
0x1a6c   :  { %v1747_v59 = vpop.permute.xlu0 %1746 }
0x1a6d   :  { %3281 = vtanh.f32 %v1778_v58  ;;  %v1749_v62 = vadd.f32 %v1747_v59, %v3969_v55 }
0x1a6f   :  { %3283 = vtanh.f32 %v1749_v62 }
0x1a70   :  { %v1787_v3 = vpop.permute.xlu0 %1786 }
0x1a71   :  { %v1789_v6 = vmul.f32 %v3278_v23, %v1787_v3 }
0x1a74   :  { %v1759_v10 = vpop.permute.xlu0 %1758 }
0x1a75   :  { %v1761_v48 = vmul.f32 %v3280_v51, %v1759_v10 }
0x1a77   :  { %v3282_v63 = vpop.eup %3281 }
0x1a78   :  { %1782 = vrot.lane.b32.xlu1 %v3282_v63, %s3509_s4 }
0x1a79   :  { %v3284_v2 = vpop.eup %3283 }
0x1a7c   :  { %1753 = vrot.lane.b32.xlu1 %v3284_v2, %s3509_s4 }
0x1aea   :  { %v1783_v5 = vpop.permute.xlu1 %1782 }
0x1aeb   :  { %v1785_v8 = vmul.f32 %v1783_v5, %v1780_v4 }
0x1aed   :  { %v1790_v12 = vadd.f32 %v1789_v6, %v1785_v8 }
0x1aee   :  { %v1754_v15 = vpop.permute.xlu1 %1753 }
0x1aef   :  { %v1796_v11 = vrot.slane %v1790_v12, 4  ;;  %v1756_v30 = vmul.f32 %v1754_v15, %v1751_v13 }
0x1af1   :  { %v1762_v31 = vadd.f32 %v1761_v48, %v1756_v30  ;;  %1797 = vrot.lane.b32.xlu0 %v1796_v11, %s3510_s29 }
0x1af3   :  { %1792 = vrot.lane.b32.xlu1 %v1762_v31, %s3509_s4 }
0x1b63   :  { %v1798_v9 = vpop.permute.xlu0 %1797 }
0x1b65   :  { %v1793_v17 = vpop.permute.xlu1 %1792 }
0x1b66   :  { %v1800_v61 = vsel %vm360_vm2, %v1793_v17, %v1798_v9 }
0x1b67   :  { %v1802_v7 = vrot.slane %v1800_v61, 4 }
0x1b69   :  { %2979 = vmatmul.mubr.msk.f32.vlgmr.msra.gmra.mrb[14].mxu0 %vm116_vm1, %v1802_v7 }
0x1b6a   :  { %3126 = vmatpush3.bf16.msra.mxu0 %v3909_v16  ;;  %3000 = vmatprep.mubr.msk.f32.mxu0 %vm3505_vm0, %v3506_v1 }
0x1b6b   :  { %3127 = vmatprep.subr.bf16.mxu0 %v3504_v0 }
0x1b6e   :  { %3129 = vmatpush3.bf16.msra.mxu0 %v3912_v19 }
0x1b6f   :  { %3136 = vmatprep.subr.bf16.mxu0 %v3504_v0 }
0x1c3c   :  { %v1871_v14 = vpop.f32.mrb[14].mxu0 }
0x1c3d   :  { %v1872_v26 = vadd.f32 %v3944_v40, %v1871_v14  ;;  %v2980_v20 = vpop.f32.mrb[15].mxu0 }
0x1c3f   :  { %v1904_v21 = vrot.slane %v1872_v26, 4  ;;  %1883 = vrot.lane.b32.xlu0 %v1872_v26, %s3507_s28  ;;  %v1875_v22 = vadd.f32 %v1872_v26, %v3967_v52 }
0x1c41   :  { %1913 = vrot.lane.b32.xlu1 %v1904_v21, %s3507_s28  ;;  %v1906_v24 = vadd.f32 %v1904_v21, %v3974_v60  ;;  %v2719_v56 = vmul.f32 -1.442695, %v1875_v22 }
0x1c43   :  { %v2720_v25 = vmul.f32 -1.442695, %v1906_v24  ;;  %3285 = vpow2.f32 %v2719_v56 }
0x1c45   :  { %3287 = vpow2.f32 %v2720_v25 }
0x1c4d   :  { %v3286_v27 = vpop.eup %3285 }
0x1c4e   :  { %v1879_v32 = vadd.f32 1.0, %v3286_v27 }
0x1c4f   :  { %v3288_v28 = vpop.eup %3287 }
0x1c50   :  { %v1910_v33 = vadd.f32 1.0, %v3288_v28  ;;  %3289 = vrcp.f32 %v1879_v32 }
0x1c52   :  { %3291 = vrcp.f32 %v1910_v33 }
0x1c5a   :  { %v3290_v34 = vpop.eup %3289 }
0x1c5b   :  { %v1893_v53 = vsub.f32 1.0, %v3290_v34 }
0x1c5c   :  { %v3292_v37 = vpop.eup %3291 }
0x1c5d   :  { %v1923_v23 = vsub.f32 1.0, %v3292_v37 }
0x1cb1   :  { %v1884_v35 = vpop.permute.xlu0 %1883 }
0x1cb2   :  { %v1886_v36 = vmul.f32 %v3290_v34, %v1884_v35 }
0x1cb3   :  { %v1914_v38 = vpop.permute.xlu1 %1913 }
0x1cb4   :  { %v1916_v39 = vmul.f32 %v3292_v37, %v1914_v38  ;;  %1888 = vrot.lane.b32.xlu0 %v1886_v36, %s3508_s3 }
0x1cb6   :  { %1918 = vrot.lane.b32.xlu1 %v1916_v39, %s3508_s3 }
0x1cb8   :  { %1929 = vrot.lane.b32.xlu0 %v1800_v61, %s3511_s30 }
0x1cbc   :  { %1899 = vrot.lane.b32.xlu0 %v1802_v7, %s3512_s11 }
0x1d26   :  { %v1889_v41 = vpop.permute.xlu0 %1888 }
0x1d27   :  { %v1891_v45 = vadd.f32 %v1889_v41, %v3967_v52 }
0x1d28   :  { %v1919_v43 = vpop.permute.xlu1 %1918 }
0x1d29   :  { %v1921_v42 = vadd.f32 %v1919_v43, %v3974_v60 }
0x1d2a   :  { %v1930_v47 = vpop.permute.xlu0 %1929 }
0x1d2b   :  { %3293 = vtanh.f32 %v1921_v42  ;;  %v1932_v50 = vmul.f32 %v3292_v37, %v1930_v47 }
0x1d2c   :  { %3295 = vtanh.f32 %v1891_v45 }
0x1d2e   :  { %v1900_v44 = vpop.permute.xlu0 %1899 }
0x1d2f   :  { %v1902_v58 = vmul.f32 %v3290_v34, %v1900_v44 }
0x1d35   :  { %v3294_v46 = vpop.eup %3293 }
0x1d36   :  { %1925 = vrot.lane.b32.xlu1 %v3294_v46, %s3509_s4  ;;  %v3296_v54 = vpop.eup %3295 }
0x1d3a   :  { %1895 = vrot.lane.b32.xlu1 %v3296_v54, %s3509_s4 }
0x1da8   :  { %v1926_v49 = vpop.permute.xlu1 %1925 }
0x1da9   :  { %v1928_v51 = vmul.f32 %v1926_v49, %v1923_v23 }
0x1dab   :  { %v1933_v29 = vadd.f32 %v1932_v50, %v1928_v51 }
0x1dac   :  { %v1896_v57 = vpop.permute.xlu1 %1895 }
0x1dad   :  { %v1939_v59 = vrot.slane %v1933_v29, 4  ;;  %v1898_v62 = vmul.f32 %v1896_v57, %v1893_v53 }
0x1daf   :  { %v1903_v63 = vadd.f32 %v1902_v58, %v1898_v62  ;;  %1940 = vrot.lane.b32.xlu0 %v1939_v59, %s3510_s29 }
0x1db1   :  { %1935 = vrot.lane.b32.xlu1 %v1903_v63, %s3509_s4 }
0x1e21   :  { %v1941_v2 = vpop.permute.xlu0 %1940 }
0x1e23   :  { %v1936_v3 = vpop.permute.xlu1 %1935 }
0x1e24   :  { %v1943_v4 = vsel %vm360_vm2, %v1936_v3, %v1941_v2 }
0x1e25   :  { %2990 = vmatmul.mubr.msk.f32.vlgmr.msra.gmra.mrb[14].mxu1 %vm116_vm1, %v1943_v4  ;;  %v2043_v21 = vrot.slane %v1943_v4, 4 }
0x1e26   :  { %3132 = vmatpush3.bf16.msra.mxu1 %v3909_v16  ;;  %3011 = vmatprep.mubr.msk.f32.mxu1 %vm3505_vm0, %v3506_v1 }
0x1e27   :  { %3133 = vmatprep.subr.bf16.mxu1 %v3504_v0 }
0x1e2a   :  { %3135 = vmatpush3.bf16.msra.mxu1 %v3912_v19 }
0x1e2b   :  { %3142 = vmatprep.subr.bf16.mxu1 %v3504_v0 }
0x1ef8   :  { %v2013_v5 = vpop.f32.mrb[14].mxu1 }
0x1ef9   :  { %v2014_v6 = vadd.f32 %v3944_v40, %v2013_v5  ;;  %v2991_v8 = vpop.f32.mrb[15].mxu1 }
0x1efb   :  { %v2018_v10 = vrot.slane %v2014_v6, 4  ;;  %2056 = vrot.lane.b32.xlu1 %v2014_v6, %s3507_s28  ;;  %v2049_v12 = vadd.f32 %v2014_v6, %v3974_v60 }
0x1efd   :  { %2027 = vrot.lane.b32.xlu0 %v2018_v10, %s3507_s28  ;;  %v2020_v13 = vadd.f32 %v2018_v10, %v3967_v52  ;;  %v2723_v15 = vmul.f32 -1.442695, %v2049_v12 }
0x1eff   :  { %v2722_v48 = vmul.f32 -1.442695, %v2020_v13  ;;  %3297 = vpow2.f32 %v2723_v15 }
0x1f01   :  { %3299 = vpow2.f32 %v2722_v48 }
0x1f09   :  { %v3298_v11 = vpop.eup %3297 }
0x1f0a   :  { %v2053_v31 = vadd.f32 1.0, %v3298_v11 }
0x1f0b   :  { %v3300_v30 = vpop.eup %3299 }
0x1f0c   :  { %v2024_v9 = vadd.f32 1.0, %v3300_v30  ;;  %3301 = vrcp.f32 %v2053_v31 }
0x1f0e   :  { %3303 = vrcp.f32 %v2024_v9 }
0x1f16   :  { %v3302_v17 = vpop.eup %3301 }
0x1f17   :  { %v2066_v33 = vsub.f32 1.0, %v3302_v17 }
0x1f18   :  { %v3304_v14 = vpop.eup %3303 }
0x1f19   :  { %v2037_v39 = vsub.f32 1.0, %v3304_v14 }
0x1f6d   :  { %v2057_v61 = vpop.permute.xlu1 %2056 }
0x1f6e   :  { %v2059_v7 = vmul.f32 %v3302_v17, %v2057_v61 }
0x1f6f   :  { %v2028_v26 = vpop.permute.xlu0 %2027 }
0x1f70   :  { %v2030_v20 = vmul.f32 %v3304_v14, %v2028_v26  ;;  %2061 = vrot.lane.b32.xlu1 %v2059_v7, %s3508_s3 }
0x1f72   :  { %2032 = vrot.lane.b32.xlu0 %v2030_v20, %s3508_s3 }
0x1f76   :  { %2072 = vrot.lane.b32.xlu0 %v1943_v4, %s3511_s30 }
0x1f7a   :  { %2044 = vrot.lane.b32.xlu0 %v2043_v21, %s3512_s11 }
0x1fe2   :  { %v2062_v22 = vpop.permute.xlu1 %2061 }
0x1fe3   :  { %v2064_v24 = vadd.f32 %v2062_v22, %v3974_v60 }
0x1fe4   :  { %v2033_v56 = vpop.permute.xlu0 %2032 }
0x1fe5   :  { %3305 = vtanh.f32 %v2064_v24  ;;  %v2035_v25 = vadd.f32 %v2033_v56, %v3967_v52 }
0x1fe7   :  { %3307 = vtanh.f32 %v2035_v25 }
0x1fe8   :  { %v2073_v32 = vpop.permute.xlu0 %2072 }
0x1fe9   :  { %v2075_v35 = vmul.f32 %v3302_v17, %v2073_v32 }
0x1fec   :  { %v2045_v37 = vpop.permute.xlu0 %2044 }
0x1fed   :  { %v2047_v43 = vmul.f32 %v3304_v14, %v2045_v37 }
0x1fef   :  { %v3306_v27 = vpop.eup %3305 }
0x1ff0   :  { %2068 = vrot.lane.b32.xlu1 %v3306_v27, %s3509_s4 }
0x1ff1   :  { %v3308_v28 = vpop.eup %3307 }
0x1ff4   :  { %2039 = vrot.lane.b32.xlu1 %v3308_v28, %s3509_s4 }
0x2062   :  { %v2069_v34 = vpop.permute.xlu1 %2068 }
0x2063   :  { %v2071_v36 = vmul.f32 %v2069_v34, %v2066_v33 }
0x2065   :  { %v2076_v38 = vadd.f32 %v2075_v35, %v2071_v36 }
0x2066   :  { %v2040_v41 = vpop.permute.xlu1 %2039 }
0x2067   :  { %v2082_v42 = vrot.slane %v2076_v38, 4  ;;  %v2042_v45 = vmul.f32 %v2040_v41, %v2037_v39 }
0x2069   :  { %v2048_v46 = vadd.f32 %v2047_v43, %v2042_v45  ;;  %2083 = vrot.lane.b32.xlu0 %v2082_v42, %s3510_s29 }
0x206b   :  { %2078 = vrot.lane.b32.xlu1 %v2048_v46, %s3509_s4 }
0x20db   :  { %v2084_v54 = vpop.permute.xlu0 %2083 }
0x20dd   :  { %v2079_v47 = vpop.permute.xlu1 %2078 }
0x20de   :  { %v2086_v23 = vsel %vm360_vm2, %v2079_v47, %v2084_v54 }
0x20df   :  { %v2088_v49 = vrot.slane %v2086_v23, 4 }
0x20e1   :  { %3001 = vmatmul.mubr.msk.f32.vlgmr.msra.gmra.mrb[16].mxu0 %vm116_vm1, %v2088_v49 }
0x20e2   :  { %3138 = vmatpush3.bf16.msra.mxu0 %v3909_v16  ;;  %3022 = vmatprep.mubr.msk.f32.mxu0 %vm3505_vm0, %v3506_v1 }
0x20e3   :  { %3139 = vmatprep.subr.bf16.mxu0 %v3504_v0 }
0x20e6   :  { %3141 = vmatpush3.bf16.msra.mxu0 %v3912_v19 }
0x21b4   :  { %v2157_v50 = vpop.f32.mrb[16].mxu0 }
0x21b5   :  { %v2158_v51 = vadd.f32 %v3944_v40, %v2157_v50  ;;  %v3002_v44 = vpop.f32.mrb[17].mxu0 }
0x21b7   :  { %v2190_v29 = vrot.slane %v2158_v51, 4  ;;  %2169 = vrot.lane.b32.xlu0 %v2158_v51, %s3507_s28  ;;  %v2161_v53 = vadd.f32 %v2158_v51, %v3974_v60 }
0x21b9   :  { %2199 = vrot.lane.b32.xlu1 %v2190_v29, %s3507_s28  ;;  %v2192_v57 = vadd.f32 %v2190_v29, %v3967_v52  ;;  %v2725_v58 = vmul.f32 -1.442695, %v2161_v53 }
0x21bb   :  { %v2726_v59 = vmul.f32 -1.442695, %v2192_v57  ;;  %3309 = vpow2.f32 %v2725_v58 }
0x21bd   :  { %3311 = vpow2.f32 %v2726_v59 }
0x21c5   :  { %v3310_v62 = vpop.eup %3309 }
0x21c6   :  { %v2165_v2 = vadd.f32 1.0, %v3310_v62 }
0x21c7   :  { %v3312_v63 = vpop.eup %3311 }
0x21c8   :  { %v2196_v3 = vadd.f32 1.0, %v3312_v63  ;;  %3313 = vrcp.f32 %v2165_v2 }
0x21ca   :  { %3315 = vrcp.f32 %v2196_v3 }
0x21d2   :  { %v3314_v4 = vpop.eup %3313 }
0x21d3   :  { %v2179_v21 = vsub.f32 1.0, %v3314_v4 }
0x21d4   :  { %v3316_v8 = vpop.eup %3315 }
0x21d5   :  { %v2209_v17 = vsub.f32 1.0, %v3316_v8 }
0x2229   :  { %v2170_v5 = vpop.permute.xlu0 %2169 }
0x222a   :  { %v2172_v6 = vmul.f32 %v3314_v4, %v2170_v5 }
0x222b   :  { %v2200_v10 = vpop.permute.xlu1 %2199 }
0x222c   :  { %v2202_v12 = vmul.f32 %v3316_v8, %v2200_v10  ;;  %2174 = vrot.lane.b32.xlu0 %v2172_v6, %s3508_s3 }
0x222e   :  { %2204 = vrot.lane.b32.xlu1 %v2202_v12, %s3508_s3 }
0x2230   :  { %2215 = vrot.lane.b32.xlu0 %v2086_v23, %s3511_s30 }
0x2234   :  { %2185 = vrot.lane.b32.xlu0 %v2088_v49, %s3512_s11 }
0x229e   :  { %v2175_v13 = vpop.permute.xlu0 %2174 }
0x229f   :  { %v2177_v11 = vadd.f32 %v2175_v13, %v3974_v60 }
0x22a0   :  { %v2205_v15 = vpop.permute.xlu1 %2204 }
0x22a1   :  { %v2207_v48 = vadd.f32 %v2205_v15, %v3967_v52 }
0x22a2   :  { %v2216_v9 = vpop.permute.xlu0 %2215 }
0x22a3   :  { %3317 = vtanh.f32 %v2207_v48  ;;  %v2218_v7 = vmul.f32 %v3316_v8, %v2216_v9 }
0x22a4   :  { %3319 = vtanh.f32 %v2177_v11 }
0x22a6   :  { %v2186_v26 = vpop.permute.xlu0 %2185 }
0x22a7   :  { %v2188_v24 = vmul.f32 %v3314_v4, %v2186_v26 }
0x22ad   :  { %v3318_v30 = vpop.eup %3317 }
0x22ae   :  { %2211 = vrot.lane.b32.xlu1 %v3318_v30, %s3509_s4  ;;  %v3320_v31 = vpop.eup %3319 }
0x22b2   :  { %2181 = vrot.lane.b32.xlu1 %v3320_v31, %s3509_s4 }
0x2320   :  { %v2212_v61 = vpop.permute.xlu1 %2211 }
0x2321   :  { %v2214_v14 = vmul.f32 %v2212_v61, %v2209_v17 }
0x2323   :  { %v2219_v20 = vadd.f32 %v2218_v7, %v2214_v14 }
0x2324   :  { %v2182_v22 = vpop.permute.xlu1 %2181 }
0x2325   :  { %v2225_v56 = vrot.slane %v2219_v20, 4  ;;  %v2184_v25 = vmul.f32 %v2182_v22, %v2179_v21 }
0x2327   :  { %v2189_v27 = vadd.f32 %v2188_v24, %v2184_v25  ;;  %2226 = vrot.lane.b32.xlu0 %v2225_v56, %s3510_s29 }
0x2329   :  { %2221 = vrot.lane.b32.xlu1 %v2189_v27, %s3509_s4 }
0x2399   :  { %v2227_v28 = vpop.permute.xlu0 %2226 }
0x239b   :  { %v2222_v32 = vpop.permute.xlu1 %2221 }
0x239c   :  { %v2229_v33 = vsel %vm360_vm2, %v2222_v32, %v2227_v28 }
0x239d   :  { %3012 = vmatmul.mubr.msk.f32.vlgmr.msra.gmra.mrb[16].mxu1 %vm116_vm1, %v2229_v33  ;;  %v2329_v49 = vrot.slane %v2229_v33, 4 }
0x239e   :  { %3144 = vmatpush3.bf16.msra.mxu1 %v3909_v16  ;;  %3033 = vmatprep.mubr.msk.f32.mxu1 %vm3505_vm0, %v3506_v1 }
0x239f   :  { %3145 = vmatprep.subr.bf16.mxu1 %v3504_v0 }
0x23a2   :  { %3147 = vmatpush3.bf16.msra.mxu1 %v3912_v19 }
0x2470   :  { %v2299_v34 = vpop.f32.mrb[16].mxu1 }
0x2471   :  { %v2300_v35 = vadd.f32 %v3944_v40, %v2299_v34  ;;  %v3013_v36 = vpop.f32.mrb[17].mxu1 }
0x2473   :  { %v2304_v37 = vrot.slane %v2300_v35, 4  ;;  %2342 = vrot.lane.b32.xlu1 %v2300_v35, %s3507_s28  ;;  %v2335_v38 = vadd.f32 %v2300_v35, %v3967_v52 }
0x2475   :  { %2313 = vrot.lane.b32.xlu0 %v2304_v37, %s3507_s28  ;;  %v2306_v16 = vadd.f32 %v2304_v37, %v3974_v60  ;;  %v2729_v39 = vmul.f32 -1.442695, %v2335_v38 }
0x2477   :  { %v2728_v41 = vmul.f32 -1.442695, %v2306_v16  ;;  %3321 = vpow2.f32 %v2729_v39 }
0x2479   :  { %3323 = vpow2.f32 %v2728_v41 }
0x2481   :  { %v3322_v0 = vpop.eup %3321 }
0x2482   :  { %v2339_v19 = vadd.f32 1.0, %v3322_v0 }
0x2483   :  { %v3324_v1 = vpop.eup %3323 }
0x2484   :  { %v2310_v43 = vadd.f32 1.0, %v3324_v1  ;;  %3325 = vrcp.f32 %v2339_v19 }
0x2486   :  { %3327 = vrcp.f32 %v2310_v43 }
0x248e   :  { %v3326_v42 = vpop.eup %3325 }
0x248f   :  { %v2352_v59 = vsub.f32 1.0, %v3326_v42 }
0x2490   :  { %v3328_v54 = vpop.eup %3327 }
0x2491   :  { %v2323_v5 = vsub.f32 1.0, %v3328_v54 }
0x24e5   :  { %v2343_v45 = vpop.permute.xlu1 %2342 }
0x24e6   :  { %v2345_v46 = vmul.f32 %v3326_v42, %v2343_v45 }
0x24e7   :  { %v2314_v47 = vpop.permute.xlu0 %2313 }
0x24e8   :  { %v2316_v23 = vmul.f32 %v3328_v54, %v2314_v47  ;;  %2347 = vrot.lane.b32.xlu1 %v2345_v46, %s3508_s3 }
0x24ea   :  { %2318 = vrot.lane.b32.xlu0 %v2316_v23, %s3508_s3 }
0x24ee   :  { %2358 = vrot.lane.b32.xlu0 %v2229_v33, %s3511_s30 }
0x24f2   :  { %2330 = vrot.lane.b32.xlu0 %v2329_v49, %s3512_s11 }
0x255a   :  { %v2348_v50 = vpop.permute.xlu1 %2347 }
0x255b   :  { %v2350_v51 = vadd.f32 %v2348_v50, %v3967_v52 }
0x255c   :  { %v2319_v44 = vpop.permute.xlu0 %2318 }
0x255d   :  { %3329 = vtanh.f32 %v2350_v51  ;;  %v2321_v29 = vadd.f32 %v2319_v44, %v3974_v60 }
0x255f   :  { %3331 = vtanh.f32 %v2321_v29 }
0x2560   :  { %v2359_v58 = vpop.permute.xlu0 %2358 }
0x2561   :  { %v2361_v63 = vmul.f32 %v3326_v42, %v2359_v58 }
0x2564   :  { %v2331_v3 = vpop.permute.xlu0 %2330 }
0x2565   :  { %v2333_v6 = vmul.f32 %v3328_v54, %v2331_v3 }
0x2567   :  { %v3330_v53 = vpop.eup %3329 }
0x2568   :  { %2354 = vrot.lane.b32.xlu1 %v3330_v53, %s3509_s4 }
0x2569   :  { %v3332_v57 = vpop.eup %3331 }
0x256c   :  { %2325 = vrot.lane.b32.xlu1 %v3332_v57, %s3509_s4 }
0x25da   :  { %v2355_v62 = vpop.permute.xlu1 %2354 }
0x25db   :  { %v2357_v2 = vmul.f32 %v2355_v62, %v2352_v59 }
0x25dd   :  { %v2362_v4 = vadd.f32 %v2361_v63, %v2357_v2 }
0x25de   :  { %v2326_v52 = vpop.permute.xlu1 %2325 }
0x25df   :  { %v2368_v8 = vrot.slane %v2362_v4, 4  ;;  %v2328_v10 = vmul.f32 %v2326_v52, %v2323_v5 }
0x25e1   :  { %v2334_v60 = vadd.f32 %v2333_v6, %v2328_v10  ;;  %2369 = vrot.lane.b32.xlu0 %v2368_v8, %s3510_s29 }
0x25e3   :  { %2364 = vrot.lane.b32.xlu1 %v2334_v60, %s3509_s4 }
0x2653   :  { %v2370_v12 = vpop.permute.xlu0 %2369 }
0x2655   :  { %v2365_v13 = vpop.permute.xlu1 %2364 }
0x2656   :  { %v2372_v15 = vsel %vm360_vm2, %v2365_v13, %v2370_v12 }
0x2657   :  { %v2374_v48 = vrot.slane %v2372_v15, 4 }
0x2659   :  { %3023 = vmatmul.mubr.msk.f32.vlgmr.msra.gmra.mrb[18].mxu0 %vm116_vm1, %v2374_v48 }
0x272c   :  { %v2443_v11 = vpop.f32.mrb[18].mxu0 }
0x272d   :  { %v2444_v30 = vadd.f32 %v3944_v40, %v2443_v11  ;;  %v3024_v31 = vpop.f32.mrb[19].mxu0 }
0x272f   :  { %v2476_v9 = vrot.slane %v2444_v30, 4  ;;  %2455 = vrot.lane.b32.xlu0 %v2444_v30, %s3507_s28  ;;  %v2447_v17 = vadd.f32 %v2444_v30, %v3972_v18 }
0x2731   :  { %2485 = vrot.lane.b32.xlu1 %v2476_v9, %s3507_s28  ;;  %v2478_v61 = vadd.f32 %v2476_v9, %v3969_v55  ;;  %v2731_v7 = vmul.f32 -1.442695, %v2447_v17 }
0x2733   :  { %v2732_v14 = vmul.f32 -1.442695, %v2478_v61  ;;  %3333 = vpow2.f32 %v2731_v7 }
0x2735   :  { %3335 = vpow2.f32 %v2732_v14 }
0x273d   :  { %v3334_v26 = vpop.eup %3333 }
0x273e   :  { %v2451_v21 = vadd.f32 1.0, %v3334_v26 }
0x273f   :  { %v3336_v20 = vpop.eup %3335 }
0x2740   :  { %v2482_v22 = vadd.f32 1.0, %v3336_v20  ;;  %3337 = vrcp.f32 %v2451_v21 }
0x2742   :  { %3339 = vrcp.f32 %v2482_v22 }
0x274a   :  { %v3338_v24 = vpop.eup %3337 }
0x274b   :  { %v2465_v42 = vsub.f32 1.0, %v3338_v24 }
0x274c   :  { %v3340_v27 = vpop.eup %3339 }
0x274d   :  { %v2495_v39 = vsub.f32 1.0, %v3340_v27 }
0x27a1   :  { %v2456_v56 = vpop.permute.xlu0 %2455 }
0x27a2   :  { %v2458_v25 = vmul.f32 %v3338_v24, %v2456_v56 }
0x27a3   :  { %v2486_v28 = vpop.permute.xlu1 %2485 }
0x27a4   :  { %v2488_v32 = vmul.f32 %v3340_v27, %v2486_v28  ;;  %2460 = vrot.lane.b32.xlu0 %v2458_v25, %s3508_s3 }
0x27a6   :  { %2490 = vrot.lane.b32.xlu1 %v2488_v32, %s3508_s3 }
0x27a8   :  { %2501 = vrot.lane.b32.xlu0 %v2372_v15, %s3511_s30 }
0x27ac   :  { %2471 = vrot.lane.b32.xlu0 %v2374_v48, %s3512_s11 }
0x2816   :  { %v2461_v33 = vpop.permute.xlu0 %2460 }
0x2817   :  { %v2463_v36 = vadd.f32 %v2461_v33, %v3972_v18 }
0x2818   :  { %v2491_v34 = vpop.permute.xlu1 %2490 }
0x2819   :  { %v2493_v35 = vadd.f32 %v2491_v34, %v3969_v55 }
0x281a   :  { %v2502_v16 = vpop.permute.xlu0 %2501 }
0x281b   :  { %3341 = vtanh.f32 %v2493_v35  ;;  %v2504_v0 = vmul.f32 %v3340_v27, %v2502_v16 }
0x281c   :  { %3343 = vtanh.f32 %v2463_v36 }
0x281e   :  { %v2472_v19 = vpop.permute.xlu0 %2471 }
0x281f   :  { %v2474_v46 = vmul.f32 %v3338_v24, %v2472_v19 }
0x2825   :  { %v3342_v37 = vpop.eup %3341 }
0x2826   :  { %2497 = vrot.lane.b32.xlu1 %v3342_v37, %s3509_s4  ;;  %v3344_v38 = vpop.eup %3343 }
0x282a   :  { %2467 = vrot.lane.b32.xlu1 %v3344_v38, %s3509_s4 }
0x2898   :  { %v2498_v41 = vpop.permute.xlu1 %2497 }
0x2899   :  { %v2500_v1 = vmul.f32 %v2498_v41, %v2495_v39 }
0x289b   :  { %v2505_v43 = vadd.f32 %v2504_v0, %v2500_v1 }
0x289c   :  { %v2468_v45 = vpop.permute.xlu1 %2467 }
0x289d   :  { %v2511_v54 = vrot.slane %v2505_v43, 4  ;;  %v2470_v47 = vmul.f32 %v2468_v45, %v2465_v42 }
0x289f   :  { %v2475_v23 = vadd.f32 %v2474_v46, %v2470_v47  ;;  %2512 = vrot.lane.b32.xlu0 %v2511_v54, %s3510_s29 }
0x28a1   :  { %2507 = vrot.lane.b32.xlu1 %v2475_v23, %s3509_s4 }
0x2911   :  { %v2513_v49 = vpop.permute.xlu0 %2512 }
0x2913   :  { %v2508_v50 = vpop.permute.xlu1 %2507 }
0x2914   :  { %v2515_v51 = vsel %vm360_vm2, %v2508_v50, %v2513_v49 }
0x2915   :  { %3034 = vmatmul.mubr.msk.f32.vlgmr.msra.gmra.mrb[18].mxu1 %vm116_vm1, %v2515_v51  ;;  %v2615_v12 = vrot.slane %v2515_v51, 4 }
0x29e8   :  { %v2585_v44 = vpop.f32.mrb[18].mxu1 }
0x29e9   :  { %v2586_v29 = vadd.f32 %v3944_v40, %v2585_v44  ;;  %v3035_v53 = vpop.f32.mrb[19].mxu1 }
0x29eb   :  { %v2590_v57 = vrot.slane %v2586_v29, 4  ;;  %2628 = vrot.lane.b32.xlu1 %v2586_v29, %s3507_s28  ;;  %v2621_v58 = vadd.f32 %v2586_v29, %v3969_v55 }
0x29ed   :  { %2599 = vrot.lane.b32.xlu0 %v2590_v57, %s3507_s28  ;;  %v2592_v59 = vadd.f32 %v2590_v57, %v3972_v18  ;;  %v2735_v62 = vmul.f32 -1.442695, %v2621_v58 }
0x29ef   :  { %v2734_v63 = vmul.f32 -1.442695, %v2592_v59  ;;  %3345 = vpow2.f32 %v2735_v62 }
0x29f1   :  { %3347 = vpow2.f32 %v2734_v63 }
0x29f9   :  { %v3346_v2 = vpop.eup %3345 }
0x29fa   :  { %v2625_v4 = vadd.f32 1.0, %v3346_v2 }
0x29fb   :  { %v3348_v3 = vpop.eup %3347 }
0x29fc   :  { %v2596_v5 = vadd.f32 1.0, %v3348_v3  ;;  %3349 = vrcp.f32 %v2625_v4 }
0x29fe   :  { %3351 = vrcp.f32 %v2596_v5 }
0x2a06   :  { %v3350_v40 = vpop.eup %3349 }
0x2a07   :  { %v2638_v17 = vsub.f32 1.0, %v3350_v40 }
0x2a08   :  { %v3352_v8 = vpop.eup %3351 }
0x2a09   :  { %v2609_v21 = vsub.f32 1.0, %v3352_v8 }
0x2a5d   :  { %v2629_v52 = vpop.permute.xlu1 %2628 }
0x2a5e   :  { %v2631_v6 = vmul.f32 %v3350_v40, %v2629_v52 }
0x2a5f   :  { %v2600_v10 = vpop.permute.xlu0 %2599 }
0x2a60   :  { %v2602_v60 = vmul.f32 %v3352_v8, %v2600_v10  ;;  %2633 = vrot.lane.b32.xlu1 %v2631_v6, %s3508_s3 }
0x2a62   :  { %2604 = vrot.lane.b32.xlu0 %v2602_v60, %s3508_s3 }
0x2a66   :  { %2644 = vrot.lane.b32.xlu0 %v2515_v51, %s3511_s30 }
0x2a6a   :  { %2616 = vrot.lane.b32.xlu0 %v2615_v12, %s3512_s11 }
0x2ad2   :  { %v2634_v13 = vpop.permute.xlu1 %2633 }
0x2ad3   :  { %v2636_v15 = vadd.f32 %v2634_v13, %v3969_v55 }
0x2ad4   :  { %v2605_v48 = vpop.permute.xlu0 %2604 }
0x2ad5   :  { %3353 = vtanh.f32 %v2636_v15  ;;  %v2607_v11 = vadd.f32 %v2605_v48, %v3972_v18 }
0x2ad7   :  { %3355 = vtanh.f32 %v2607_v11 }
0x2ad8   :  { %v2645_v9 = vpop.permute.xlu0 %2644 }
0x2ad9   :  { %v2647_v7 = vmul.f32 %v3350_v40, %v2645_v9 }
0x2adc   :  { %v2617_v26 = vpop.permute.xlu0 %2616 }
0x2add   :  { %v2619_v22 = vmul.f32 %v3352_v8, %v2617_v26 }
0x2adf   :  { %v3354_v30 = vpop.eup %3353 }
0x2ae0   :  { %2640 = vrot.lane.b32.xlu1 %v3354_v30, %s3509_s4 }
0x2ae1   :  { %v3356_v31 = vpop.eup %3355 }
0x2ae4   :  { %2611 = vrot.lane.b32.xlu1 %v3356_v31, %s3509_s4 }
0x2b52   :  { %v2641_v61 = vpop.permute.xlu1 %2640 }
0x2b53   :  { %v2643_v14 = vmul.f32 %v2641_v61, %v2638_v17 }
0x2b55   :  { %v2648_v20 = vadd.f32 %v2647_v7, %v2643_v14 }
0x2b56   :  { %v2612_v55 = vpop.permute.xlu1 %2611 }
0x2b57   :  { %v2654_v24 = vrot.slane %v2648_v20, 4  ;;  %v2614_v56 = vmul.f32 %v2612_v55, %v2609_v21 }
0x2b59   :  { %v2620_v18 = vadd.f32 %v2619_v22, %v2614_v56  ;;  %2655 = vrot.lane.b32.xlu0 %v2654_v24, %s3510_s29 }
0x2b5b   :  { %2650 = vrot.lane.b32.xlu1 %v2620_v18, %s3509_s4 }
0x2bcb   :  { %v2656_v25 = vpop.permute.xlu0 %2655 }
0x2bcd   :  { %v2651_v27 = vpop.permute.xlu1 %2650 }
0x2bce   :  { %v2658_v28 = vsel %vm360_vm2, %v2651_v27, %v2656_v25 }
0x2bcf   :  { %2660 = vst.msk [vmem:[#allocation12 - $0x4] sm:$0xf0] %vm2659_vm7, %v2658_v28 }
0x2bd0   :  { %3478 = shalt.err (!%p3475_p2)
}
0x2bd1   :  { %s3479_s18 = scalar_lea.hbm %s4154_s9, 64 }
0x2bd2   :  { %p3480_p3 = scmp.ne.s32.totalorder %s4154_s9, %s3479_s18  ;;  %p3483_p4 = scmp.lt.u32.totalorder %s3479_s18, %s4154_s9 }
0x2bd4   :  { %p3485_p5 = pnand %p3483_p4, %p3480_p3 }
0x2bd6   :  { %3488 = shalt.err (!%p3485_p5)
}
0x2bd7   :  { %2670 = dma.vmem_to_hbm [thread:$0]  %s2668_s14, 64, %s4154_s9, [#allocation5]  }
0x2bd8   :  { %3495 = dma.done.wait [#allocation5], 64  }
0x2bd9   :  { %3496 = vsyncadd [#allocation5], 4294967232 }
0x2bda   :  { %2674 = vsyncpa [#allocation4], 1 }
0x2bdb   :  { %2675 = vsyncpa [#allocation7], 1 }
0x2bdc   :  { %2676 = vsyncpa [#allocation10], 1 }
0x2bdd   :  { %2677 = vsyncpa [#allocation5], 1 }

</bundles_post_ra>
